<compile_context>
chip_gen: v7x
topology: tpu7x:2x2x1
jax: 0.10.0
libtpu: 0.0.40
codegen_flags: <defaults>
</compile_context>

<pallas_src>
import math
from functools import partial

import jax
import jax.numpy as jnp
from jax import lax
from jax.experimental import pallas as pl
from jax.experimental.pallas import tpu as pltpu


_VMEM_LIMIT = 48 * 1024 * 1024   # budgeted against v7x's 64 MiB/TC physical VMEM (headroom kept)
_TM, _TN, _TK = 256, 256, 512    # matmul tile targets (256-multiples for v6e/v7x 2x256^2 MXU)


def _pick_tile(dim, target, base):
    """Largest block <= target obeying the (8,128) rule: either the full dim, or a
    multiple of `base` that evenly divides `dim` (so no out-of-bounds K blocks)."""
    if dim <= target:
        return dim
    t = (target // base) * base
    while t >= base:
        if dim % t == 0:
            return t
        t -= base
    return dim


# ----------------------------- in-kernel activation helpers -----------------------------

def _silu(x):
    return x * lax.logistic(x)


def _gelu(x):
    # exact (erf) GELU, matching PyTorch nn.GELU() default
    return 0.5 * x * (1.0 + lax.erf(x * 0.7071067811865476))


def _softplus(x):
    return jnp.maximum(x, 0.0) + jnp.log1p(jnp.exp(-jnp.abs(x)))


def _apply_act(x, activation):
    if activation is None:
        return x
    if activation == "gelu":
        return _gelu(x)
    if activation == "silu":
        return _silu(x)
    if activation == "softplus":
        return _softplus(x)
    raise ValueError(activation)


# ----------------------------- tiled linear (+ fused epilogues) -----------------------------

def _linear_kernel(x_ref, w_ref, b_ref, o_ref, acc_ref, *, activation):
    @pl.when(pl.program_id(2) == 0)
    def _():
        acc_ref[...] = jnp.zeros_like(acc_ref)

    acc_ref[...] += jnp.dot(x_ref[...].astype(jnp.bfloat16),
                            w_ref[...].astype(jnp.bfloat16),
                            preferred_element_type=jnp.float32)

    @pl.when(pl.program_id(2) == pl.num_programs(2) - 1)
    def _():
        y = acc_ref[...] + b_ref[...]
        y = _apply_act(y, activation)
        o_ref[...] = y.astype(o_ref.dtype)


def linear(x, w, b=None, activation=None):
    # x: (M, K); w: (K, N); b: (N,) or None
    M, K = x.shape
    N = w.shape[1]
    b2 = jnp.zeros((1, N), jnp.float32) if b is None else b.reshape(1, N).astype(jnp.float32)
    tm = _pick_tile(M, _TM, 8)
    tn = _pick_tile(N, _TN, 128)
    tk = _pick_tile(K, _TK, 128)
    grid = (M // tm, N // tn, K // tk)
    return pl.pallas_call(
        partial(_linear_kernel, activation=activation),
        out_shape=jax.ShapeDtypeStruct((M, N), x.dtype),
        grid=grid,
        in_specs=[pl.BlockSpec((tm, tk), lambda i, j, k: (i, k)),
                  pl.BlockSpec((tk, tn), lambda i, j, k: (k, j)),
                  pl.BlockSpec((1, tn), lambda i, j, k: (0, j))],
        out_specs=pl.BlockSpec((tm, tn), lambda i, j, k: (i, j)),
        scratch_shapes=[pltpu.VMEM((tm, tn), jnp.float32)],
        compiler_params=pltpu.CompilerParams(
            dimension_semantics=("parallel", "parallel", "arbitrary"),
            vmem_limit_bytes=_VMEM_LIMIT),
    )(x, w, b2)


def _linear_res_bn_kernel(x_ref, w_ref, b_ref, r_ref, s_ref, t_ref, o_ref, acc_ref):
    @pl.when(pl.program_id(2) == 0)
    def _():
        acc_ref[...] = jnp.zeros_like(acc_ref)

    acc_ref[...] += jnp.dot(x_ref[...].astype(jnp.bfloat16),
                            w_ref[...].astype(jnp.bfloat16),
                            preferred_element_type=jnp.float32)

    @pl.when(pl.program_id(2) == pl.num_programs(2) - 1)
    def _():
        y = acc_ref[...] + b_ref[...] + r_ref[...].astype(jnp.float32)
        o_ref[...] = (y * s_ref[...] + t_ref[...]).astype(o_ref.dtype)


def linear_res_bn(x, w, b, residual, scale, shift):
    # out = BatchNorm_eval(residual + x @ w + b); x:(M,K) w:(K,N) residual:(M,N)
    M, K = x.shape
    N = w.shape[1]
    b2 = jnp.zeros((1, N), jnp.float32) if b is None else b.reshape(1, N).astype(jnp.float32)
    tm = _pick_tile(M, _TM, 8)
    tn = _pick_tile(N, _TN, 128)
    tk = _pick_tile(K, _TK, 128)
    grid = (M // tm, N // tn, K // tk)
    return pl.pallas_call(
        _linear_res_bn_kernel,
        out_shape=jax.ShapeDtypeStruct((M, N), x.dtype),
        grid=grid,
        in_specs=[pl.BlockSpec((tm, tk), lambda i, j, k: (i, k)),
                  pl.BlockSpec((tk, tn), lambda i, j, k: (k, j)),
                  pl.BlockSpec((1, tn), lambda i, j, k: (0, j)),
                  pl.BlockSpec((tm, tn), lambda i, j, k: (i, j)),
                  pl.BlockSpec((1, tn), lambda i, j, k: (0, j)),
                  pl.BlockSpec((1, tn), lambda i, j, k: (0, j))],
        out_specs=pl.BlockSpec((tm, tn), lambda i, j, k: (i, j)),
        scratch_shapes=[pltpu.VMEM((tm, tn), jnp.float32)],
        compiler_params=pltpu.CompilerParams(
            dimension_semantics=("parallel", "parallel", "arbitrary"),
            vmem_limit_bytes=_VMEM_LIMIT),
    )(x, w, b2, residual, scale.reshape(1, N).astype(jnp.float32),
      shift.reshape(1, N).astype(jnp.float32))


def _ffn_res_bn_kernel(x_ref, w1_ref, b1_ref, w2_ref, b2_ref, s_ref, t_ref, o_ref):
    x = x_ref[...]
    h = jnp.dot(x.astype(jnp.bfloat16), w1_ref[...].astype(jnp.bfloat16),
                preferred_element_type=jnp.float32) + b1_ref[...]
    h = _gelu(h)
    y = jnp.dot(h.astype(jnp.bfloat16), w2_ref[...].astype(jnp.bfloat16),
                preferred_element_type=jnp.float32) + b2_ref[...]
    y = y + x.astype(jnp.float32)                       # residual (input of the FFN)
    o_ref[...] = (y * s_ref[...] + t_ref[...]).astype(o_ref.dtype)


def ffn_res_bn(x, w1, b1, w2, b2, scale, shift):
    # out = BatchNorm_eval(x + W2 @ GELU(W1 @ x + b1) + b2); both weights VMEM-resident.
    # TODO(synk): for very large d_model/d_ff add a K-tiled variant; fine for this model.
    M, D = x.shape
    F = w1.shape[1]
    tm = _pick_tile(M, _TM, 8)
    return pl.pallas_call(
        _ffn_res_bn_kernel,
        out_shape=jax.ShapeDtypeStruct((M, D), x.dtype),
        grid=(M // tm,),
        in_specs=[pl.BlockSpec((tm, D), lambda i: (i, 0)),
                  pl.BlockSpec((D, F), lambda i: (0, 0)),
                  pl.BlockSpec((1, F), lambda i: (0, 0)),
                  pl.BlockSpec((F, D), lambda i: (0, 0)),
                  pl.BlockSpec((1, D), lambda i: (0, 0)),
                  pl.BlockSpec((1, D), lambda i: (0, 0)),
                  pl.BlockSpec((1, D), lambda i: (0, 0))],
        out_specs=pl.BlockSpec((tm, D), lambda i: (i, 0)),
        compiler_params=pltpu.CompilerParams(
            dimension_semantics=("parallel",), vmem_limit_bytes=_VMEM_LIMIT),
    )(x, w1, b1.reshape(1, F).astype(jnp.float32), w2, b2.reshape(1, D).astype(jnp.float32),
      scale.reshape(1, D).astype(jnp.float32), shift.reshape(1, D).astype(jnp.float32))


# ----------------------------- attention (fused QKV slab, all heads per step) ---------------

def _attn_kernel(qkv_ref, o_ref, *, n_heads, d_k, d_v, scale):
    qkv = qkv_ref[...]                     # (L, H*dk + H*dk + H*dv)
    HK = n_heads * d_k
    outs = []
    for h in range(n_heads):               # static unroll over heads
        qh = qkv[:, h * d_k:(h + 1) * d_k].astype(jnp.bfloat16)
        kh = qkv[:, HK + h * d_k:HK + (h + 1) * d_k].astype(jnp.bfloat16)
        vh = qkv[:, 2 * HK + h * d_v:2 * HK + (h + 1) * d_v].astype(jnp.bfloat16)
        # q @ k^T without materializing a transpose (NT dot_general)
        s = lax.dot_general(qh, kh, dimension_numbers=(((1,), (1,)), ((), ())),
                            preferred_element_type=jnp.float32) * scale
        s = s - jnp.max(s, axis=-1, keepdims=True)
        p = jnp.exp(s)
        p = p * pl.reciprocal(jnp.sum(p, axis=-1, keepdims=True), approx=True)
        outs.append(jnp.dot(p.astype(jnp.bfloat16), vh,
                            preferred_element_type=jnp.float32))
    o_ref[...] = jnp.concatenate(outs, axis=-1).astype(o_ref.dtype)


def attention_fused(qkv, n_heads, d_k, d_v, scale):
    # qkv: (B, L, 2*H*dk + H*dv) -> out: (B, L, H*dv)
    # TODO(synk): for long L convert to a KV-tiled online-softmax (flash) kernel; the full
    #             per-head (L, L) score block assumes q_len fits comfortably in VMEM.
    B, L, W = qkv.shape
    HV = n_heads * d_v
    return pl.pallas_call(
        partial(_attn_kernel, n_heads=n_heads, d_k=d_k, d_v=d_v, scale=scale),
        out_shape=jax.ShapeDtypeStruct((B, L, HV), qkv.dtype),
        grid=(B,),
        in_specs=[pl.BlockSpec((None, L, W), lambda b: (b, 0, 0))],
        out_specs=pl.BlockSpec((None, L, HV), lambda b: (b, 0, 0)),
        compiler_params=pltpu.CompilerParams(
            dimension_semantics=("parallel",), vmem_limit_bytes=_VMEM_LIMIT),
    )(qkv)


# ----------------------------- fused Mamba inner path (per batch) ---------------------------

def _mamba_inner_kernel(xz_ref, cw_ref, cb_ref, wx_ref, wdt_ref, bdt_ref, At_ref, D_ref,
                        o_ref, dA_scr, dBx_scr, cC_scr, y_scr,
                        *, L, d_inner, d_conv, dt_rank, d_state):
    xm = xz_ref[:, :d_inner].astype(jnp.float32)      # conv branch
    zm = xz_ref[:, d_inner:].astype(jnp.float32)      # gate branch

    # ---- causal depthwise conv1d + SiLU.  The causal shift x[t - s] is realised with a
    #      sublane rotate (XLU slot, no unaligned VMEM stores) + an iota mask for the
    #      zero-padded prefix. ----
    acc = jnp.broadcast_to(cb_ref[...], (L, d_inner))
    row = lax.broadcasted_iota(jnp.int32, (L, d_inner), 0)
    for k in range(d_conv):                           # d_conv is tiny (4): static unroll
        shift = d_conv - 1 - k
        if shift == 0:
            xs = xm
        else:
            xs = jnp.where(row >= shift, pltpu.roll(xm, shift=shift, axis=0), 0.0)
        acc = acc + cw_ref[k:k + 1, :] * xs
    xc = _silu(acc)                                   # (L, d_inner)

    # ---- input-dependent SSM parameters, all vectorized over time ----
    xdbl = jnp.dot(xc, wx_ref[...], preferred_element_type=jnp.float32)  # (L, dt_rank+2*ds)
    dt_low = xdbl[:, :dt_rank]
    Bm = xdbl[:, dt_rank:dt_rank + d_state]           # (L, ds)
    Cm = xdbl[:, dt_rank + d_state:]                  # (L, ds)
    dt = _softplus(jnp.dot(dt_low, wdt_ref[...], preferred_element_type=jnp.float32)
                   + bdt_ref[...])                    # (L, d_inner)

    At = At_ref[...]                                  # (ds, d_inner), A^T with A = -exp(A_log)
    dtx = dt * xc
    # Hoist the exp (EUP) and all lane-broadcasts out of the serial recurrence: per state n,
    # precompute dA, dB*x and the broadcast C for the whole sequence.
    for n in range(d_state):                          # d_state is tiny (4): static unroll
        dA_scr[n * L:(n + 1) * L, :] = jnp.exp(dt * At[n:n + 1, :])
        dBx_scr[n * L:(n + 1) * L, :] = dtx * Bm[:, n:n + 1]
        cC_scr[n * L:(n + 1) * L, :] = jnp.broadcast_to(Cm[:, n:n + 1], (L, d_inner))

    # ---- serial scan over time: only multiply-adds on register-resident state rows ----
    def step(t, hs):
        y = jnp.zeros((1, d_inner), jnp.float32)
        new_hs = []
        for n in range(d_state):
            h_n = dA_scr[pl.ds(n * L + t, 1), :] * hs[n] + dBx_scr[pl.ds(n * L + t, 1), :]
            y = y + h_n * cC_scr[pl.ds(n * L + t, 1), :]
            new_hs.append(h_n)
        y_scr[pl.ds(t, 1), :] = y
        return tuple(new_hs)

    h0 = tuple(jnp.zeros((1, d_inner), jnp.float32) for _ in range(d_state))
    lax.fori_loop(0, L, step, h0)

    # ---- skip connection + SiLU gating (vectorized epilogue) ----
    y = y_scr[...] + D_ref[...] * xc
    o_ref[...] = (y * _silu(zm)).astype(o_ref.dtype)


def mamba_inner(xz, m):
    # xz: (B, L, 2*d_inner) (in-proj output); returns y: (B, L, d_inner) (pre out-proj)
    B, L, _ = xz.shape
    d_inner, ds = m["d_inner"], m["d_state"]
    d_conv, dt_rank = m["d_conv"], m["dt_rank"]
    n_proj = dt_rank + 2 * ds
    At = (-jnp.exp(m["A_log"])).T                      # (ds, d_inner)
    return pl.pallas_call(
        partial(_mamba_inner_kernel, L=L, d_inner=d_inner, d_conv=d_conv,
                dt_rank=dt_rank, d_state=ds),
        out_shape=jax.ShapeDtypeStruct((B, L, d_inner), xz.dtype),
        grid=(B,),
        in_specs=[pl.BlockSpec((None, L, 2 * d_inner), lambda b: (b, 0, 0)),
                  pl.BlockSpec((d_conv, d_inner), lambda b: (0, 0)),
                  pl.BlockSpec((1, d_inner), lambda b: (0, 0)),
                  pl.BlockSpec((d_inner, n_proj), lambda b: (0, 0)),
                  pl.BlockSpec((dt_rank, d_inner), lambda b: (0, 0)),
                  pl.BlockSpec((1, d_inner), lambda b: (0, 0)),
                  pl.BlockSpec((ds, d_inner), lambda b: (0, 0)),
                  pl.BlockSpec((1, d_inner), lambda b: (0, 0))],
        out_specs=pl.BlockSpec((None, L, d_inner), lambda b: (b, 0, 0)),
        scratch_shapes=[pltpu.VMEM((ds * L, d_inner), jnp.float32),          # dA
                        pltpu.VMEM((ds * L, d_inner), jnp.float32),          # dB*x
                        pltpu.VMEM((ds * L, d_inner), jnp.float32),          # broadcast C
                        pltpu.VMEM((L, d_inner), jnp.float32)],              # y
        compiler_params=pltpu.CompilerParams(
            dimension_semantics=("parallel",), vmem_limit_bytes=_VMEM_LIMIT),
    )(xz, m["conv_w"], m["conv_b"].reshape(1, d_inner), m["W_xproj"],
      m["W_dt"], m["b_dt"].reshape(1, d_inner), At, m["D"].reshape(1, d_inner))


# ----------------------------- parameter initialization -----------------------------

def _dense(key, fan_in, fan_out, bias=True, scale=0.1):
    kw, kb = jax.random.split(key)
    W = jax.random.normal(kw, (fan_in, fan_out), jnp.float32) * scale
    b = jax.random.normal(kb, (fan_out,), jnp.float32) * scale if bias else None
    return W, b


def _bn(key, d, eps=1e-5):
    # eval-mode BatchNorm1d folded into a per-channel affine
    kg, kb = jax.random.split(key)
    gamma = 1.0 + 0.1 * jax.random.normal(kg, (d,), jnp.float32)
    beta = 0.1 * jax.random.normal(kb, (d,), jnp.float32)
    running_mean = jnp.zeros((d,), jnp.float32)
    running_var = jnp.ones((d,), jnp.float32)
    scale = gamma / jnp.sqrt(running_var + eps)
    shift = beta - running_mean * scale
    return scale, shift


def init_tst_layer(key, d_model, n_heads, d_ff):
    d_k = d_v = d_model // n_heads
    ks = jax.random.split(key, 8)
    Wq, bq = _dense(ks[0], d_model, d_k * n_heads)
    Wk, bk = _dense(ks[1], d_model, d_k * n_heads)
    Wv, bv = _dense(ks[2], d_model, d_v * n_heads)
    p = {"n_heads": n_heads, "d_k": d_k, "d_v": d_v,
         "attn_scale": float((d_model // n_heads) ** -0.5),
         # fused QKV projection: read x once, one lane-dense output slab
         "Wqkv": jnp.concatenate([Wq, Wk, Wv], axis=1),
         "bqkv": jnp.concatenate([bq, bk, bv], axis=0)}
    p["Wo"], p["bo"] = _dense(ks[3], n_heads * d_v, d_model)
    p["bn_attn_scale"], p["bn_attn_shift"] = _bn(ks[4], d_model)
    p["Wff1"], p["bff1"] = _dense(ks[5], d_model, d_ff)
    p["Wff2"], p["bff2"] = _dense(ks[6], d_ff, d_model)
    p["bn_ffn_scale"], p["bn_ffn_shift"] = _bn(ks[7], d_model)
    return p


def init_mamba(key, d_model, d_state, d_conv, expand):
    # mamba_ssm defaults: in/x/out proj bias=False, conv bias=True, dt_proj bias=True
    d_inner = expand * d_model
    dt_rank = math.ceil(d_model / 16)
    ks = jax.random.split(key, 6)
    m = {"d_inner": d_inner, "dt_rank": dt_rank, "d_state": d_state, "d_conv": d_conv}
    m["W_in"], _ = _dense(ks[0], d_model, 2 * d_inner, bias=False)
    m["conv_w"] = 0.1 * jax.random.normal(ks[1], (d_conv, d_inner), jnp.float32)
    m["conv_b"] = 0.1 * jax.random.normal(ks[2], (d_inner,), jnp.float32)
    m["W_xproj"], _ = _dense(ks[3], d_inner, dt_rank + 2 * d_state, bias=False)
    m["W_dt"], m["b_dt"] = _dense(ks[4], dt_rank, d_inner)
    m["A_log"] = jnp.log(jnp.broadcast_to(
        jnp.arange(1, d_state + 1, dtype=jnp.float32), (d_inner, d_state)))
    m["D"] = jnp.ones((d_inner,), jnp.float32)
    m["W_out"], _ = _dense(ks[5], d_inner, d_model, bias=False)
    return m


def init_block(key, d_model, n_heads, d_ff, d_state, d_conv, expand):
    k1, k2, k3, k4 = jax.random.split(key, 4)
    bn_scale, bn_shift = _bn(k3, d_model)
    return {"tf1": init_tst_layer(k1, d_model, n_heads, d_ff),
            "mamba": init_mamba(k2, d_model, d_state, d_conv, expand),
            "bn_mamba_scale": bn_scale,
            "bn_mamba_shift": bn_shift,
            "tf2": init_tst_layer(k4, d_model, n_heads, d_ff)}


def init_encoder_ama(key, d_model, n_heads, d_ff, d_state=4, d_conv=4, expand=2, n_layers=1):
    keys = jax.random.split(key, n_layers)
    return {"blocks": [init_block(k, d_model, n_heads, d_ff, d_state, d_conv, expand)
                       for k in keys]}


# ----------------------------- forward pass -----------------------------

def tst_layer_forward(p, x):
    # TSTEncoderLayer: post-norm, BatchNorm, res_attention=False, eval mode
    B, L, D = x.shape
    H, dk, dv = p["n_heads"], p["d_k"], p["d_v"]
    x2d = x.reshape(B * L, D)
    qkv = linear(x2d, p["Wqkv"], p["bqkv"])                       # fused Q|K|V projection
    attn = attention_fused(qkv.reshape(B, L, qkv.shape[-1]), H, dk, dv, p["attn_scale"])
    # to_out projection + residual + BatchNorm fused into one kernel epilogue
    src = linear_res_bn(attn.reshape(B * L, H * dv), p["Wo"], p["bo"], x2d,
                        p["bn_attn_scale"], p["bn_attn_shift"])
    # FFN (Linear->GELU->Linear) + residual + BatchNorm fused into one kernel
    src = ffn_res_bn(src, p["Wff1"], p["bff1"], p["Wff2"], p["bff2"],
                     p["bn_ffn_scale"], p["bn_ffn_shift"])
    return src.reshape(B, L, D)


def mamba_encoder_forward(m, bn_scale, bn_shift, x):
    # Encoder_mamba: z = Mamba(x); z = x + z; z = BatchNorm_eval(z)
    B, L, D = x.shape
    d_inner = m["d_inner"]
    x2d = x.reshape(B * L, D)
    xz = linear(x2d, m["W_in"])                                   # in-proj (no bias)
    y = mamba_inner(xz.reshape(B, L, 2 * d_inner), m)             # conv+SiLU, proj, scan, gate
    out = linear_res_bn(y.reshape(B * L, d_inner), m["W_out"], None, x2d, bn_scale, bn_shift)
    return out.reshape(B, L, D)


def block_forward(p, x):
    x = tst_layer_forward(p["tf1"], x)
    x = mamba_encoder_forward(p["mamba"], p["bn_mamba_scale"], p["bn_mamba_shift"], x)
    x = tst_layer_forward(p["tf2"], x)
    return x


def encoder_ama_forward(params, x):
    for blk in params["blocks"]:
        x = block_forward(blk, x)
    return x


# ----------------------------- main -----------------------------

if __name__ == "__main__":
    B, L, d_model, n_heads, d_ff = 2, 8, 32, 4, 64

    key = jax.random.PRNGKey(0)
    kx, kp = jax.random.split(key)
    x = jax.random.normal(kx, (B, L, d_model), jnp.float32)
    params = init_encoder_ama(kp, d_model, n_heads, d_ff,
                              d_state=4, d_conv=4, expand=2, n_layers=1)

    fwd = jax.jit(partial(encoder_ama_forward, params))
    out = jax.block_until_ready(fwd(x))
    assert out.shape == (B, L, d_model)
    assert bool(jnp.all(jnp.isfinite(out)))
    print("KERNEL_OK")
</pallas_src>

<mosaic_0001>
module attributes {stable_mosaic.version = 11 : i64} {
  func.func @_linear_kernel(%arg0: i32, %arg1: i32, %arg2: i32, %arg3: memref<16x32xf32, #tpu.memory_space<vmem>>, %arg4: memref<32x96xf32, #tpu.memory_space<vmem>>, %arg5: memref<1x96xf32, #tpu.memory_space<vmem>>, %arg6: memref<16x96xf32, #tpu.memory_space<vmem>>, %arg7: memref<16x96xf32, #tpu.memory_space<vmem>>) attributes {dimension_semantics = [#tpu.dimension_semantics<parallel>, #tpu.dimension_semantics<parallel>, #tpu.dimension_semantics<arbitrary>], iteration_bounds = array<i64: 1, 1, 1>, scalar_prefetch = 0 : i64, scratch_operands = 1 : i64, tpu.core_type = #tpu.core_type<tc>, window_params = [{transform_indices = @transform_0, window_bounds = array<i64: 16, 32>}, {transform_indices = @transform_1, window_bounds = array<i64: 32, 96>}, {transform_indices = @transform_2, window_bounds = array<i64: 1, 96>}, {transform_indices = @transform_3, window_bounds = array<i64: 16, 96>}]} {
    %c0_i32 = arith.constant 0 : i32
    %0 = arith.cmpi eq, %arg2, %c0_i32 : i32
    %1 = arith.extui %0 : i1 to i32
    %c0_i32_0 = arith.constant 0 : i32
    %2 = arith.cmpi ne, %1, %c0_i32_0 : i32
    scf.if %2 {
      %cst_10 = arith.constant 0.000000e+00 : f32
      %14 = vector.broadcast %cst_10 : f32 to vector<16x96xf32>
      %c0_11 = arith.constant 0 : index
      %c0_12 = arith.constant 0 : index
      %15 = vector.load %arg7[%c0_11, %c0_12] : memref<16x96xf32, #tpu.memory_space<vmem>>, vector<16x96xf32>
      tpu.vector_store %arg7[%c0_11, %c0_12], %14 {strides = array<i32>} : memref<16x96xf32, #tpu.memory_space<vmem>>, vector<16x96xf32>,
    } else {
    }
    %c0 = arith.constant 0 : index
    %c0_1 = arith.constant 0 : index
    %3 = vector.load %arg7[%c0, %c0_1] : memref<16x96xf32, #tpu.memory_space<vmem>>, vector<16x96xf32>
    %c0_2 = arith.constant 0 : index
    %c0_3 = arith.constant 0 : index
    %4 = vector.load %arg3[%c0_2, %c0_3] : memref<16x32xf32, #tpu.memory_space<vmem>>, vector<16x32xf32>
    %5 = arith.truncf %4 : vector<16x32xf32> to vector<16x32xbf16>
    %c0_4 = arith.constant 0 : index
    %c0_5 = arith.constant 0 : index
    %6 = vector.load %arg4[%c0_4, %c0_5] : memref<32x96xf32, #tpu.memory_space<vmem>>, vector<32x96xf32>
    %7 = arith.truncf %6 : vector<32x96xf32> to vector<32x96xbf16>
    %cst = arith.constant dense<0.000000e+00> : vector<16x96xf32>
    %8 = tpu.matmul %5, %7, %cst {dimension_numbers = #tpu.dot_dimension_numbers<[1], [0], [0], [1], [0, 0, 1, 1], [], []>} : vector<16x32xbf16>, vector<32x96xbf16>, vector<16x96xf32> -> vector<16x96xf32>
    %9 = arith.addf %3, %8 : vector<16x96xf32>
    %c0_6 = arith.constant 0 : index
    %c0_7 = arith.constant 0 : index
    %10 = vector.load %arg7[%c0_6, %c0_7] : memref<16x96xf32, #tpu.memory_space<vmem>>, vector<16x96xf32>
    tpu.vector_store %arg7[%c0_6, %c0_7], %9 {strides = array<i32>} : memref<16x96xf32, #tpu.memory_space<vmem>>, vector<16x96xf32>,
    %c0_i32_8 = arith.constant 0 : i32
    %11 = arith.cmpi eq, %arg2, %c0_i32_8 : i32
    %12 = arith.extui %11 : i1 to i32
    %c0_i32_9 = arith.constant 0 : i32
    %13 = arith.cmpi ne, %12, %c0_i32_9 : i32
    scf.if %13 {
      %c0_10 = arith.constant 0 : index
      %c0_11 = arith.constant 0 : index
      %14 = vector.load %arg7[%c0_10, %c0_11] : memref<16x96xf32, #tpu.memory_space<vmem>>, vector<16x96xf32>
      %c0_12 = arith.constant 0 : index
      %c0_13 = arith.constant 0 : index
      %15 = vector.load %arg5[%c0_12, %c0_13] : memref<1x96xf32, #tpu.memory_space<vmem>>, vector<1x96xf32>
      %16 = vector.broadcast %15 : vector<1x96xf32> to vector<16x96xf32>
      %17 = arith.addf %14, %16 : vector<16x96xf32>
      %c0_14 = arith.constant 0 : index
      %c0_15 = arith.constant 0 : index
      %18 = vector.load %arg6[%c0_14, %c0_15] : memref<16x96xf32, #tpu.memory_space<vmem>>, vector<16x96xf32>
      tpu.vector_store %arg6[%c0_14, %c0_15], %17 {strides = array<i32>} : memref<16x96xf32, #tpu.memory_space<vmem>>, vector<16x96xf32>,
    } else {
    }
    return
  }
  func.func @transform_0(%arg0: i32, %arg1: i32, %arg2: i32) -> (i32, i32) {
    %c0_i32 = arith.constant 0 : i32
    return %arg0, %arg2 : i32, i32
  }
  func.func @transform_1(%arg0: i32, %arg1: i32, %arg2: i32) -> (i32, i32) {
    %c0_i32 = arith.constant 0 : i32
    return %arg2, %arg1 : i32, i32
  }
  func.func @transform_2(%arg0: i32, %arg1: i32, %arg2: i32) -> (i32, i32) {
    %c0_i32 = arith.constant 0 : i32
    %c0_i32_0 = arith.constant 0 : i32
    return %c0_i32, %arg1 : i32, i32
  }
  func.func @transform_3(%arg0: i32, %arg1: i32, %arg2: i32) -> (i32, i32) {
    %c0_i32 = arith.constant 0 : i32
    return %arg0, %arg1 : i32, i32
  }
}

module attributes {stable_mosaic.version = 11 : i64} {
  func.func @_ffn_res_bn_kernel(%arg0: i32, %arg1: memref<16x32xf32, #tpu.memory_space<vmem>>, %arg2: memref<32x64xf32, #tpu.memory_space<vmem>>, %arg3: memref<1x64xf32, #tpu.memory_space<vmem>>, %arg4: memref<64x32xf32, #tpu.memory_space<vmem>>, %arg5: memref<1x32xf32, #tpu.memory_space<vmem>>, %arg6: memref<1x32xf32, #tpu.memory_space<vmem>>, %arg7: memref<1x32xf32, #tpu.memory_space<vmem>>, %arg8: memref<16x32xf32, #tpu.memory_space<vmem>>) attributes {dimension_semantics = [#tpu.dimension_semantics<parallel>], iteration_bounds = array<i64: 1>, scalar_prefetch = 0 : i64, scratch_operands = 0 : i64, tpu.core_type = #tpu.core_type<tc>, window_params = [{transform_indices = @transform_0, window_bounds = array<i64: 16, 32>}, {pipeline_mode = #tpu.pipeline_mode<synchronous>, transform_indices = @transform_1, window_bounds = array<i64: 32, 64>}, {pipeline_mode = #tpu.pipeline_mode<synchronous>, transform_indices = @transform_2, window_bounds = array<i64: 1, 64>}, {pipeline_mode = #tpu.pipeline_mode<synchronous>, transform_indices = @transform_3, window_bounds = array<i64: 64, 32>}, {pipeline_mode = #tpu.pipeline_mode<synchronous>, transform_indices = @transform_4, window_bounds = array<i64: 1, 32>}, {pipeline_mode = #tpu.pipeline_mode<synchronous>, transform_indices = @transform_5, window_bounds = array<i64: 1, 32>}, {pipeline_mode = #tpu.pipeline_mode<synchronous>, transform_indices = @transform_6, window_bounds = array<i64: 1, 32>}, {transform_indices = @transform_7, window_bounds = array<i64: 16, 32>}]} {
    %c0 = arith.constant 0 : index
    %c0_0 = arith.constant 0 : index
    %0 = vector.load %arg1[%c0, %c0_0] : memref<16x32xf32, #tpu.memory_space<vmem>>, vector<16x32xf32>
    %1 = arith.truncf %0 : vector<16x32xf32> to vector<16x32xbf16>
    %c0_1 = arith.constant 0 : index
    %c0_2 = arith.constant 0 : index
    %2 = vector.load %arg2[%c0_1, %c0_2] : memref<32x64xf32, #tpu.memory_space<vmem>>, vector<32x64xf32>
    %3 = arith.truncf %2 : vector<32x64xf32> to vector<32x64xbf16>
    %cst = arith.constant dense<0.000000e+00> : vector<16x64xf32>
    %4 = tpu.matmul %1, %3, %cst {dimension_numbers = #tpu.dot_dimension_numbers<[1], [0], [0], [1], [0, 0, 1, 1], [], []>} : vector<16x32xbf16>, vector<32x64xbf16>, vector<16x64xf32> -> vector<16x64xf32>
    %c0_3 = arith.constant 0 : index
    %c0_4 = arith.constant 0 : index
    %5 = vector.load %arg3[%c0_3, %c0_4] : memref<1x64xf32, #tpu.memory_space<vmem>>, vector<1x64xf32>
    %6 = vector.broadcast %5 : vector<1x64xf32> to vector<16x64xf32>
    %7 = arith.addf %4, %6 : vector<16x64xf32>
    %cst_5 = arith.constant 5.000000e-01 : f32
    %8 = vector.broadcast %cst_5 : f32 to vector<16x64xf32>
    %9 = arith.mulf %8, %7 : vector<16x64xf32>
    %cst_6 = arith.constant 0.707106769 : f32
    %10 = vector.broadcast %cst_6 : f32 to vector<16x64xf32>
    %11 = arith.mulf %7, %10 : vector<16x64xf32>
    %12 = math.erf %11 : vector<16x64xf32>
    %cst_7 = arith.constant 1.000000e+00 : f32
    %13 = vector.broadcast %cst_7 : f32 to vector<16x64xf32>
    %14 = arith.addf %13, %12 : vector<16x64xf32>
    %15 = arith.mulf %9, %14 : vector<16x64xf32>
    %16 = arith.truncf %15 : vector<16x64xf32> to vector<16x64xbf16>
    %c0_8 = arith.constant 0 : index
    %c0_9 = arith.constant 0 : index
    %17 = vector.load %arg4[%c0_8, %c0_9] : memref<64x32xf32, #tpu.memory_space<vmem>>, vector<64x32xf32>
    %18 = arith.truncf %17 : vector<64x32xf32> to vector<64x32xbf16>
    %cst_10 = arith.constant dense<0.000000e+00> : vector<16x32xf32>
    %19 = tpu.matmul %16, %18, %cst_10 {dimension_numbers = #tpu.dot_dimension_numbers<[1], [0], [0], [1], [0, 0, 1, 1], [], []>} : vector<16x64xbf16>, vector<64x32xbf16>, vector<16x32xf32> -> vector<16x32xf32>
    %c0_11 = arith.constant 0 : index
    %c0_12 = arith.constant 0 : index
    %20 = vector.load %arg5[%c0_11, %c0_12] : memref<1x32xf32, #tpu.memory_space<vmem>>, vector<1x32xf32>
    %21 = vector.broadcast %20 : vector<1x32xf32> to vector<16x32xf32>
    %22 = arith.addf %19, %21 : vector<16x32xf32>
    %23 = arith.addf %22, %0 : vector<16x32xf32>
    %c0_13 = arith.constant 0 : index
    %c0_14 = arith.constant 0 : index
    %24 = vector.load %arg6[%c0_13, %c0_14] : memref<1x32xf32, #tpu.memory_space<vmem>>, vector<1x32xf32>
    %25 = vector.broadcast %24 : vector<1x32xf32> to vector<16x32xf32>
    %26 = arith.mulf %23, %25 : vector<16x32xf32>
    %c0_15 = arith.constant 0 : index
    %c0_16 = arith.constant 0 : index
    %27 = vector.load %arg7[%c0_15, %c0_16] : memref<1x32xf32, #tpu.memory_space<vmem>>, vector<1x32xf32>
    %28 = vector.broadcast %27 : vector<1x32xf32> to vector<16x32xf32>
    %29 = arith.addf %26, %28 : vector<16x32xf32>
    %c0_17 = arith.constant 0 : index
    %c0_18 = arith.constant 0 : index
    %30 = vector.load %arg8[%c0_17, %c0_18] : memref<16x32xf32, #tpu.memory_space<vmem>>, vector<16x32xf32>
    tpu.vector_store %arg8[%c0_17, %c0_18], %29 {strides = array<i32>} : memref<16x32xf32, #tpu.memory_space<vmem>>, vector<16x32xf32>,
    return
  }
  func.func @transform_0(%arg0: i32) -> (i32, i32) {
    %c0_i32 = arith.constant 0 : i32
    %c0_i32_0 = arith.constant 0 : i32
    return %arg0, %c0_i32 : i32, i32
  }
  func.func @transform_1(%arg0: i32) -> (i32, i32) {
    %c0_i32 = arith.constant 0 : i32
    %c0_i32_0 = arith.constant 0 : i32
    %c0_i32_1 = arith.constant 0 : i32
    return %c0_i32, %c0_i32_0 : i32, i32
  }
  func.func @transform_2(%arg0: i32) -> (i32, i32) {
    %c0_i32 = arith.constant 0 : i32
    %c0_i32_0 = arith.constant 0 : i32
    %c0_i32_1 = arith.constant 0 : i32
    return %c0_i32, %c0_i32_0 : i32, i32
  }
  func.func @transform_3(%arg0: i32) -> (i32, i32) {
    %c0_i32 = arith.constant 0 : i32
    %c0_i32_0 = arith.constant 0 : i32
    %c0_i32_1 = arith.constant 0 : i32
    return %c0_i32, %c0_i32_0 : i32, i32
  }
  func.func @transform_4(%arg0: i32) -> (i32, i32) {
    %c0_i32 = arith.constant 0 : i32
    %c0_i32_0 = arith.constant 0 : i32
    %c0_i32_1 = arith.constant 0 : i32
    return %c0_i32, %c0_i32_0 : i32, i32
  }
  func.func @transform_5(%arg0: i32) -> (i32, i32) {
    %c0_i32 = arith.constant 0 : i32
    %c0_i32_0 = arith.constant 0 : i32
    %c0_i32_1 = arith.constant 0 : i32
    return %c0_i32, %c0_i32_0 : i32, i32
  }
  func.func @transform_6(%arg0: i32) -> (i32, i32) {
    %c0_i32 = arith.constant 0 : i32
    %c0_i32_0 = arith.constant 0 : i32
    %c0_i32_1 = arith.constant 0 : i32
    return %c0_i32, %c0_i32_0 : i32, i32
  }
  func.func @transform_7(%arg0: i32) -> (i32, i32) {
    %c0_i32 = arith.constant 0 : i32
    %c0_i32_0 = arith.constant 0 : i32
    return %arg0, %c0_i32 : i32, i32
  }
}

module attributes {stable_mosaic.version = 11 : i64} {
  func.func @_linear_res_bn_kernel(%arg0: i32, %arg1: i32, %arg2: i32, %arg3: memref<16x32xf32, #tpu.memory_space<vmem>>, %arg4: memref<32x32xf32, #tpu.memory_space<vmem>>, %arg5: memref<1x32xf32, #tpu.memory_space<vmem>>, %arg6: memref<16x32xf32, #tpu.memory_space<vmem>>, %arg7: memref<1x32xf32, #tpu.memory_space<vmem>>, %arg8: memref<1x32xf32, #tpu.memory_space<vmem>>, %arg9: memref<16x32xf32, #tpu.memory_space<vmem>>, %arg10: memref<16x32xf32, #tpu.memory_space<vmem>>) attributes {dimension_semantics = [#tpu.dimension_semantics<parallel>, #tpu.dimension_semantics<parallel>, #tpu.dimension_semantics<arbitrary>], iteration_bounds = array<i64: 1, 1, 1>, scalar_prefetch = 0 : i64, scratch_operands = 1 : i64, tpu.core_type = #tpu.core_type<tc>, window_params = [{transform_indices = @transform_0, window_bounds = array<i64: 16, 32>}, {transform_indices = @transform_1, window_bounds = array<i64: 32, 32>}, {transform_indices = @transform_2, window_bounds = array<i64: 1, 32>}, {transform_indices = @transform_3, window_bounds = array<i64: 16, 32>}, {transform_indices = @transform_4, window_bounds = array<i64: 1, 32>}, {transform_indices = @transform_5, window_bounds = array<i64: 1, 32>}, {transform_indices = @transform_6, window_bounds = array<i64: 16, 32>}]} {
    %c0_i32 = arith.constant 0 : i32
    %0 = arith.cmpi eq, %arg2, %c0_i32 : i32
    %1 = arith.extui %0 : i1 to i32
    %c0_i32_0 = arith.constant 0 : i32
    %2 = arith.cmpi ne, %1, %c0_i32_0 : i32
    scf.if %2 {
      %cst_10 = arith.constant 0.000000e+00 : f32
      %14 = vector.broadcast %cst_10 : f32 to vector<16x32xf32>
      %c0_11 = arith.constant 0 : index
      %c0_12 = arith.constant 0 : index
      %15 = vector.load %arg10[%c0_11, %c0_12] : memref<16x32xf32, #tpu.memory_space<vmem>>, vector<16x32xf32>
      tpu.vector_store %arg10[%c0_11, %c0_12], %14 {strides = array<i32>} : memref<16x32xf32, #tpu.memory_space<vmem>>, vector<16x32xf32>,
    } else {
    }
    %c0 = arith.constant 0 : index
    %c0_1 = arith.constant 0 : index
    %3 = vector.load %arg10[%c0, %c0_1] : memref<16x32xf32, #tpu.memory_space<vmem>>, vector<16x32xf32>
    %c0_2 = arith.constant 0 : index
    %c0_3 = arith.constant 0 : index
    %4 = vector.load %arg3[%c0_2, %c0_3] : memref<16x32xf32, #tpu.memory_space<vmem>>, vector<16x32xf32>
    %5 = arith.truncf %4 : vector<16x32xf32> to vector<16x32xbf16>
    %c0_4 = arith.constant 0 : index
    %c0_5 = arith.constant 0 : index
    %6 = vector.load %arg4[%c0_4, %c0_5] : memref<32x32xf32, #tpu.memory_space<vmem>>, vector<32x32xf32>
    %7 = arith.truncf %6 : vector<32x32xf32> to vector<32x32xbf16>
    %cst = arith.constant dense<0.000000e+00> : vector<16x32xf32>
    %8 = tpu.matmul %5, %7, %cst {dimension_numbers = #tpu.dot_dimension_numbers<[1], [0], [0], [1], [0, 0, 1, 1], [], []>} : vector<16x32xbf16>, vector<32x32xbf16>, vector<16x32xf32> -> vector<16x32xf32>
    %9 = arith.addf %3, %8 : vector<16x32xf32>
    %c0_6 = arith.constant 0 : index
    %c0_7 = arith.constant 0 : index
    %10 = vector.load %arg10[%c0_6, %c0_7] : memref<16x32xf32, #tpu.memory_space<vmem>>, vector<16x32xf32>
    tpu.vector_store %arg10[%c0_6, %c0_7], %9 {strides = array<i32>} : memref<16x32xf32, #tpu.memory_space<vmem>>, vector<16x32xf32>,
    %c0_i32_8 = arith.constant 0 : i32
    %11 = arith.cmpi eq, %arg2, %c0_i32_8 : i32
    %12 = arith.extui %11 : i1 to i32
    %c0_i32_9 = arith.constant 0 : i32
    %13 = arith.cmpi ne, %12, %c0_i32_9 : i32
    scf.if %13 {
      %c0_10 = arith.constant 0 : index
      %c0_11 = arith.constant 0 : index
      %14 = vector.load %arg10[%c0_10, %c0_11] : memref<16x32xf32, #tpu.memory_space<vmem>>, vector<16x32xf32>
      %c0_12 = arith.constant 0 : index
      %c0_13 = arith.constant 0 : index
      %15 = vector.load %arg5[%c0_12, %c0_13] : memref<1x32xf32, #tpu.memory_space<vmem>>, vector<1x32xf32>
      %16 = vector.broadcast %15 : vector<1x32xf32> to vector<16x32xf32>
      %17 = arith.addf %14, %16 : vector<16x32xf32>
      %c0_14 = arith.constant 0 : index
      %c0_15 = arith.constant 0 : index
      %18 = vector.load %arg6[%c0_14, %c0_15] : memref<16x32xf32, #tpu.memory_space<vmem>>, vector<16x32xf32>
      %19 = arith.addf %17, %18 : vector<16x32xf32>
      %c0_16 = arith.constant 0 : index
      %c0_17 = arith.constant 0 : index
      %20 = vector.load %arg7[%c0_16, %c0_17] : memref<1x32xf32, #tpu.memory_space<vmem>>, vector<1x32xf32>
      %21 = vector.broadcast %20 : vector<1x32xf32> to vector<16x32xf32>
      %22 = arith.mulf %19, %21 : vector<16x32xf32>
      %c0_18 = arith.constant 0 : index
      %c0_19 = arith.constant 0 : index
      %23 = vector.load %arg8[%c0_18, %c0_19] : memref<1x32xf32, #tpu.memory_space<vmem>>, vector<1x32xf32>
      %24 = vector.broadcast %23 : vector<1x32xf32> to vector<16x32xf32>
      %25 = arith.addf %22, %24 : vector<16x32xf32>
      %c0_20 = arith.constant 0 : index
      %c0_21 = arith.constant 0 : index
      %26 = vector.load %arg9[%c0_20, %c0_21] : memref<16x32xf32, #tpu.memory_space<vmem>>, vector<16x32xf32>
      tpu.vector_store %arg9[%c0_20, %c0_21], %25 {strides = array<i32>} : memref<16x32xf32, #tpu.memory_space<vmem>>, vector<16x32xf32>,
    } else {
    }
    return
  }
  func.func @transform_0(%arg0: i32, %arg1: i32, %arg2: i32) -> (i32, i32) {
    %c0_i32 = arith.constant 0 : i32
    return %arg0, %arg2 : i32, i32
  }
  func.func @transform_1(%arg0: i32, %arg1: i32, %arg2: i32) -> (i32, i32) {
    %c0_i32 = arith.constant 0 : i32
    return %arg2, %arg1 : i32, i32
  }
  func.func @transform_2(%arg0: i32, %arg1: i32, %arg2: i32) -> (i32, i32) {
    %c0_i32 = arith.constant 0 : i32
    %c0_i32_0 = arith.constant 0 : i32
    return %c0_i32, %arg1 : i32, i32
  }
  func.func @transform_3(%arg0: i32, %arg1: i32, %arg2: i32) -> (i32, i32) {
    %c0_i32 = arith.constant 0 : i32
    return %arg0, %arg1 : i32, i32
  }
  func.func @transform_4(%arg0: i32, %arg1: i32, %arg2: i32) -> (i32, i32) {
    %c0_i32 = arith.constant 0 : i32
    %c0_i32_0 = arith.constant 0 : i32
    return %c0_i32, %arg1 : i32, i32
  }
  func.func @transform_5(%arg0: i32, %arg1: i32, %arg2: i32) -> (i32, i32) {
    %c0_i32 = arith.constant 0 : i32
    %c0_i32_0 = arith.constant 0 : i32
    return %c0_i32, %arg1 : i32, i32
  }
  func.func @transform_6(%arg0: i32, %arg1: i32, %arg2: i32) -> (i32, i32) {
    %c0_i32 = arith.constant 0 : i32
    return %arg0, %arg1 : i32, i32
  }
}

module attributes {stable_mosaic.version = 11 : i64} {
  func.func @_attn_kernel(%arg0: i32, %arg1: memref<1x8x96xf32, #tpu.memory_space<vmem>>, %arg2: memref<1x8x32xf32, #tpu.memory_space<vmem>>) attributes {dimension_semantics = [#tpu.dimension_semantics<parallel>], iteration_bounds = array<i64: 2>, scalar_prefetch = 0 : i64, scratch_operands = 0 : i64, tpu.core_type = #tpu.core_type<tc>, window_params = [{transform_indices = @transform_0, window_bounds = array<i64: 1, 8, 96>}, {transform_indices = @transform_1, window_bounds = array<i64: 1, 8, 32>}]} {
    %c0 = arith.constant 0 : index
    %c0_0 = arith.constant 0 : index
    %c0_1 = arith.constant 0 : index
    %0 = vector.load %arg1[%c0, %c0_0, %c0_1] : memref<1x8x96xf32, #tpu.memory_space<vmem>>, vector<1x8x96xf32>
    %1 = vector.shape_cast %0 : vector<1x8x96xf32> to vector<8x96xf32>
    %2 = vector.extract_strided_slice %1 {offsets = [0, 0], sizes = [8, 8], strides = [1, 1]} : vector<8x96xf32> to vector<8x8xf32>
    %3 = arith.truncf %2 : vector<8x8xf32> to vector<8x8xbf16>
    %4 = vector.extract_strided_slice %1 {offsets = [0, 32], sizes = [8, 8], strides = [1, 1]} : vector<8x96xf32> to vector<8x8xf32>
    %5 = arith.truncf %4 : vector<8x8xf32> to vector<8x8xbf16>
    %6 = vector.extract_strided_slice %1 {offsets = [0, 64], sizes = [8, 8], strides = [1, 1]} : vector<8x96xf32> to vector<8x8xf32>
    %7 = arith.truncf %6 : vector<8x8xf32> to vector<8x8xbf16>
    %cst = arith.constant dense<0.000000e+00> : vector<8x8xf32>
    %8 = tpu.matmul %3, %5, %cst {dimension_numbers = #tpu.dot_dimension_numbers<[1], [1], [0], [0], [0, 0, 1, 0], [], []>} : vector<8x8xbf16>, vector<8x8xbf16>, vector<8x8xf32> -> vector<8x8xf32>
    %cst_2 = arith.constant 0.353553385 : f32
    %9 = vector.broadcast %cst_2 : f32 to vector<8x8xf32>
    %10 = arith.mulf %8, %9 : vector<8x8xf32>
    %cst_3 = arith.constant dense<0xFF800000> : vector<8xf32>
    %11 = vector.multi_reduction <maximumf>, %10, %cst_3 [1] : vector<8x8xf32> to vector<8xf32>
    %12 = vector.shape_cast %11 : vector<8xf32> to vector<8x1xf32>
    %13 = vector.broadcast %12 : vector<8x1xf32> to vector<8x8xf32>
    %14 = arith.subf %10, %13 : vector<8x8xf32>
    %15 = math.exp %14 : vector<8x8xf32>
    %cst_4 = arith.constant dense<0.000000e+00> : vector<8xf32>
    %16 = vector.multi_reduction <add>, %15, %cst_4 [1] : vector<8x8xf32> to vector<8xf32>
    %17 = vector.shape_cast %16 : vector<8xf32> to vector<8x1xf32>
    %18 = tpu.reciprocal %17 {approx = true} : vector<8x1xf32> -> vector<8x1xf32>
    %19 = vector.broadcast %18 : vector<8x1xf32> to vector<8x8xf32>
    %20 = arith.mulf %15, %19 : vector<8x8xf32>
    %21 = arith.truncf %20 : vector<8x8xf32> to vector<8x8xbf16>
    %cst_5 = arith.constant dense<0.000000e+00> : vector<8x8xf32>
    %22 = tpu.matmul %21, %7, %cst_5 {dimension_numbers = #tpu.dot_dimension_numbers<[1], [0], [0], [1], [0, 0, 1, 1], [], []>} : vector<8x8xbf16>, vector<8x8xbf16>, vector<8x8xf32> -> vector<8x8xf32>
    %23 = vector.extract_strided_slice %1 {offsets = [0, 8], sizes = [8, 8], strides = [1, 1]} : vector<8x96xf32> to vector<8x8xf32>
    %24 = arith.truncf %23 : vector<8x8xf32> to vector<8x8xbf16>
    %25 = vector.extract_strided_slice %1 {offsets = [0, 40], sizes = [8, 8], strides = [1, 1]} : vector<8x96xf32> to vector<8x8xf32>
    %26 = arith.truncf %25 : vector<8x8xf32> to vector<8x8xbf16>
    %27 = vector.extract_strided_slice %1 {offsets = [0, 72], sizes = [8, 8], strides = [1, 1]} : vector<8x96xf32> to vector<8x8xf32>
    %28 = arith.truncf %27 : vector<8x8xf32> to vector<8x8xbf16>
    %cst_6 = arith.constant dense<0.000000e+00> : vector<8x8xf32>
    %29 = tpu.matmul %24, %26, %cst_6 {dimension_numbers = #tpu.dot_dimension_numbers<[1], [1], [0], [0], [0, 0, 1, 0], [], []>} : vector<8x8xbf16>, vector<8x8xbf16>, vector<8x8xf32> -> vector<8x8xf32>
    %cst_7 = arith.constant 0.353553385 : f32
    %30 = vector.broadcast %cst_7 : f32 to vector<8x8xf32>
    %31 = arith.mulf %29, %30 : vector<8x8xf32>
    %cst_8 = arith.constant dense<0xFF800000> : vector<8xf32>
    %32 = vector.multi_reduction <maximumf>, %31, %cst_8 [1] : vector<8x8xf32> to vector<8xf32>
    %33 = vector.shape_cast %32 : vector<8xf32> to vector<8x1xf32>
    %34 = vector.broadcast %33 : vector<8x1xf32> to vector<8x8xf32>
    %35 = arith.subf %31, %34 : vector<8x8xf32>
    %36 = math.exp %35 : vector<8x8xf32>
    %cst_9 = arith.constant dense<0.000000e+00> : vector<8xf32>
    %37 = vector.multi_reduction <add>, %36, %cst_9 [1] : vector<8x8xf32> to vector<8xf32>
    %38 = vector.shape_cast %37 : vector<8xf32> to vector<8x1xf32>
    %39 = tpu.reciprocal %38 {approx = true} : vector<8x1xf32> -> vector<8x1xf32>
    %40 = vector.broadcast %39 : vector<8x1xf32> to vector<8x8xf32>
    %41 = arith.mulf %36, %40 : vector<8x8xf32>
    %42 = arith.truncf %41 : vector<8x8xf32> to vector<8x8xbf16>
    %cst_10 = arith.constant dense<0.000000e+00> : vector<8x8xf32>
    %43 = tpu.matmul %42, %28, %cst_10 {dimension_numbers = #tpu.dot_dimension_numbers<[1], [0], [0], [1], [0, 0, 1, 1], [], []>} : vector<8x8xbf16>, vector<8x8xbf16>, vector<8x8xf32> -> vector<8x8xf32>
    %44 = vector.extract_strided_slice %1 {offsets = [0, 16], sizes = [8, 8], strides = [1, 1]} : vector<8x96xf32> to vector<8x8xf32>
    %45 = arith.truncf %44 : vector<8x8xf32> to vector<8x8xbf16>
    %46 = vector.extract_strided_slice %1 {offsets = [0, 48], sizes = [8, 8], strides = [1, 1]} : vector<8x96xf32> to vector<8x8xf32>
    %47 = arith.truncf %46 : vector<8x8xf32> to vector<8x8xbf16>
    %48 = vector.extract_strided_slice %1 {offsets = [0, 80], sizes = [8, 8], strides = [1, 1]} : vector<8x96xf32> to vector<8x8xf32>
    %49 = arith.truncf %48 : vector<8x8xf32> to vector<8x8xbf16>
    %cst_11 = arith.constant dense<0.000000e+00> : vector<8x8xf32>
    %50 = tpu.matmul %45, %47, %cst_11 {dimension_numbers = #tpu.dot_dimension_numbers<[1], [1], [0], [0], [0, 0, 1, 0], [], []>} : vector<8x8xbf16>, vector<8x8xbf16>, vector<8x8xf32> -> vector<8x8xf32>
    %cst_12 = arith.constant 0.353553385 : f32
    %51 = vector.broadcast %cst_12 : f32 to vector<8x8xf32>
    %52 = arith.mulf %50, %51 : vector<8x8xf32>
    %cst_13 = arith.constant dense<0xFF800000> : vector<8xf32>
    %53 = vector.multi_reduction <maximumf>, %52, %cst_13 [1] : vector<8x8xf32> to vector<8xf32>
    %54 = vector.shape_cast %53 : vector<8xf32> to vector<8x1xf32>
    %55 = vector.broadcast %54 : vector<8x1xf32> to vector<8x8xf32>
    %56 = arith.subf %52, %55 : vector<8x8xf32>
    %57 = math.exp %56 : vector<8x8xf32>
    %cst_14 = arith.constant dense<0.000000e+00> : vector<8xf32>
    %58 = vector.multi_reduction <add>, %57, %cst_14 [1] : vector<8x8xf32> to vector<8xf32>
    %59 = vector.shape_cast %58 : vector<8xf32> to vector<8x1xf32>
    %60 = tpu.reciprocal %59 {approx = true} : vector<8x1xf32> -> vector<8x1xf32>
    %61 = vector.broadcast %60 : vector<8x1xf32> to vector<8x8xf32>
    %62 = arith.mulf %57, %61 : vector<8x8xf32>
    %63 = arith.truncf %62 : vector<8x8xf32> to vector<8x8xbf16>
    %cst_15 = arith.constant dense<0.000000e+00> : vector<8x8xf32>
    %64 = tpu.matmul %63, %49, %cst_15 {dimension_numbers = #tpu.dot_dimension_numbers<[1], [0], [0], [1], [0, 0, 1, 1], [], []>} : vector<8x8xbf16>, vector<8x8xbf16>, vector<8x8xf32> -> vector<8x8xf32>
    %65 = vector.extract_strided_slice %1 {offsets = [0, 24], sizes = [8, 8], strides = [1, 1]} : vector<8x96xf32> to vector<8x8xf32>
    %66 = arith.truncf %65 : vector<8x8xf32> to vector<8x8xbf16>
    %67 = vector.extract_strided_slice %1 {offsets = [0, 56], sizes = [8, 8], strides = [1, 1]} : vector<8x96xf32> to vector<8x8xf32>
    %68 = arith.truncf %67 : vector<8x8xf32> to vector<8x8xbf16>
    %69 = vector.extract_strided_slice %1 {offsets = [0, 88], sizes = [8, 8], strides = [1, 1]} : vector<8x96xf32> to vector<8x8xf32>
    %70 = arith.truncf %69 : vector<8x8xf32> to vector<8x8xbf16>
    %cst_16 = arith.constant dense<0.000000e+00> : vector<8x8xf32>
    %71 = tpu.matmul %66, %68, %cst_16 {dimension_numbers = #tpu.dot_dimension_numbers<[1], [1], [0], [0], [0, 0, 1, 0], [], []>} : vector<8x8xbf16>, vector<8x8xbf16>, vector<8x8xf32> -> vector<8x8xf32>
    %cst_17 = arith.constant 0.353553385 : f32
    %72 = vector.broadcast %cst_17 : f32 to vector<8x8xf32>
    %73 = arith.mulf %71, %72 : vector<8x8xf32>
    %cst_18 = arith.constant dense<0xFF800000> : vector<8xf32>
    %74 = vector.multi_reduction <maximumf>, %73, %cst_18 [1] : vector<8x8xf32> to vector<8xf32>
    %75 = vector.shape_cast %74 : vector<8xf32> to vector<8x1xf32>
    %76 = vector.broadcast %75 : vector<8x1xf32> to vector<8x8xf32>
    %77 = arith.subf %73, %76 : vector<8x8xf32>
    %78 = math.exp %77 : vector<8x8xf32>
    %cst_19 = arith.constant dense<0.000000e+00> : vector<8xf32>
    %79 = vector.multi_reduction <add>, %78, %cst_19 [1] : vector<8x8xf32> to vector<8xf32>
    %80 = vector.shape_cast %79 : vector<8xf32> to vector<8x1xf32>
    %81 = tpu.reciprocal %80 {approx = true} : vector<8x1xf32> -> vector<8x1xf32>
    %82 = vector.broadcast %81 : vector<8x1xf32> to vector<8x8xf32>
    %83 = arith.mulf %78, %82 : vector<8x8xf32>
    %84 = arith.truncf %83 : vector<8x8xf32> to vector<8x8xbf16>
    %cst_20 = arith.constant dense<0.000000e+00> : vector<8x8xf32>
    %85 = tpu.matmul %84, %70, %cst_20 {dimension_numbers = #tpu.dot_dimension_numbers<[1], [0], [0], [1], [0, 0, 1, 1], [], []>} : vector<8x8xbf16>, vector<8x8xbf16>, vector<8x8xf32> -> vector<8x8xf32>
    %86 = tpu.concatenate %22, %43, %64, %85 in 1 : vector<8x8xf32>, vector<8x8xf32>, vector<8x8xf32>, vector<8x8xf32> -> vector<8x32xf32>
    %c0_21 = arith.constant 0 : index
    %c0_22 = arith.constant 0 : index
    %c0_23 = arith.constant 0 : index
    %87 = vector.load %arg2[%c0_21, %c0_22, %c0_23] : memref<1x8x32xf32, #tpu.memory_space<vmem>>, vector<1x8x32xf32>
    %88 = vector.shape_cast %87 : vector<1x8x32xf32> to vector<8x32xf32>
    %89 = vector.shape_cast %86 : vector<8x32xf32> to vector<1x8x32xf32>
    tpu.vector_store %arg2[%c0_21, %c0_22, %c0_23], %89 {strides = array<i32>} : memref<1x8x32xf32, #tpu.memory_space<vmem>>, vector<1x8x32xf32>,
    return
  }
  func.func @transform_0(%arg0: i32) -> (i32, i32, i32) {
    %c0_i32 = arith.constant 0 : i32
    %c0_i32_0 = arith.constant 0 : i32
    %c0_i32_1 = arith.constant 0 : i32
    return %arg0, %c0_i32, %c0_i32_0 : i32, i32, i32
  }
  func.func @transform_1(%arg0: i32) -> (i32, i32, i32) {
    %c0_i32 = arith.constant 0 : i32
    %c0_i32_0 = arith.constant 0 : i32
    %c0_i32_1 = arith.constant 0 : i32
    return %arg0, %c0_i32, %c0_i32_0 : i32, i32, i32
  }
}

module attributes {stable_mosaic.version = 11 : i64} {
  func.func @_linear_kernel(%arg0: i32, %arg1: i32, %arg2: i32, %arg3: memref<16x32xf32, #tpu.memory_space<vmem>>, %arg4: memref<32x128xf32, #tpu.memory_space<vmem>>, %arg5: memref<1x128xf32, #tpu.memory_space<vmem>>, %arg6: memref<16x128xf32, #tpu.memory_space<vmem>>, %arg7: memref<16x128xf32, #tpu.memory_space<vmem>>) attributes {dimension_semantics = [#tpu.dimension_semantics<parallel>, #tpu.dimension_semantics<parallel>, #tpu.dimension_semantics<arbitrary>], iteration_bounds = array<i64: 1, 1, 1>, scalar_prefetch = 0 : i64, scratch_operands = 1 : i64, tpu.core_type = #tpu.core_type<tc>, window_params = [{transform_indices = @transform_0, window_bounds = array<i64: 16, 32>}, {transform_indices = @transform_1, window_bounds = array<i64: 32, 128>}, {transform_indices = @transform_2, window_bounds = array<i64: 1, 128>}, {transform_indices = @transform_3, window_bounds = array<i64: 16, 128>}]} {
    %c0_i32 = arith.constant 0 : i32
    %0 = arith.cmpi eq, %arg2, %c0_i32 : i32
    %1 = arith.extui %0 : i1 to i32
    %c0_i32_0 = arith.constant 0 : i32
    %2 = arith.cmpi ne, %1, %c0_i32_0 : i32
    scf.if %2 {
      %cst_10 = arith.constant 0.000000e+00 : f32
      %14 = vector.broadcast %cst_10 : f32 to vector<16x128xf32>
      %c0_11 = arith.constant 0 : index
      %c0_12 = arith.constant 0 : index
      %15 = vector.load %arg7[%c0_11, %c0_12] : memref<16x128xf32, #tpu.memory_space<vmem>>, vector<16x128xf32>
      tpu.vector_store %arg7[%c0_11, %c0_12], %14 {strides = array<i32>} : memref<16x128xf32, #tpu.memory_space<vmem>>, vector<16x128xf32>,
    } else {
    }
    %c0 = arith.constant 0 : index
    %c0_1 = arith.constant 0 : index
    %3 = vector.load %arg7[%c0, %c0_1] : memref<16x128xf32, #tpu.memory_space<vmem>>, vector<16x128xf32>
    %c0_2 = arith.constant 0 : index
    %c0_3 = arith.constant 0 : index
    %4 = vector.load %arg3[%c0_2, %c0_3] : memref<16x32xf32, #tpu.memory_space<vmem>>, vector<16x32xf32>
    %5 = arith.truncf %4 : vector<16x32xf32> to vector<16x32xbf16>
    %c0_4 = arith.constant 0 : index
    %c0_5 = arith.constant 0 : index
    %6 = vector.load %arg4[%c0_4, %c0_5] : memref<32x128xf32, #tpu.memory_space<vmem>>, vector<32x128xf32>
    %7 = arith.truncf %6 : vector<32x128xf32> to vector<32x128xbf16>
    %cst = arith.constant dense<0.000000e+00> : vector<16x128xf32>
    %8 = tpu.matmul %5, %7, %cst {dimension_numbers = #tpu.dot_dimension_numbers<[1], [0], [0], [1], [0, 0, 1, 1], [], []>} : vector<16x32xbf16>, vector<32x128xbf16>, vector<16x128xf32> -> vector<16x128xf32>
    %9 = arith.addf %3, %8 : vector<16x128xf32>
    %c0_6 = arith.constant 0 : index
    %c0_7 = arith.constant 0 : index
    %10 = vector.load %arg7[%c0_6, %c0_7] : memref<16x128xf32, #tpu.memory_space<vmem>>, vector<16x128xf32>
    tpu.vector_store %arg7[%c0_6, %c0_7], %9 {strides = array<i32>} : memref<16x128xf32, #tpu.memory_space<vmem>>, vector<16x128xf32>,
    %c0_i32_8 = arith.constant 0 : i32
    %11 = arith.cmpi eq, %arg2, %c0_i32_8 : i32
    %12 = arith.extui %11 : i1 to i32
    %c0_i32_9 = arith.constant 0 : i32
    %13 = arith.cmpi ne, %12, %c0_i32_9 : i32
    scf.if %13 {
      %c0_10 = arith.constant 0 : index
      %c0_11 = arith.constant 0 : index
      %14 = vector.load %arg7[%c0_10, %c0_11] : memref<16x128xf32, #tpu.memory_space<vmem>>, vector<16x128xf32>
      %c0_12 = arith.constant 0 : index
      %c0_13 = arith.constant 0 : index
      %15 = vector.load %arg5[%c0_12, %c0_13] : memref<1x128xf32, #tpu.memory_space<vmem>>, vector<1x128xf32>
      %16 = vector.broadcast %15 : vector<1x128xf32> to vector<16x128xf32>
      %17 = arith.addf %14, %16 : vector<16x128xf32>
      %c0_14 = arith.constant 0 : index
      %c0_15 = arith.constant 0 : index
      %18 = vector.load %arg6[%c0_14, %c0_15] : memref<16x128xf32, #tpu.memory_space<vmem>>, vector<16x128xf32>
      tpu.vector_store %arg6[%c0_14, %c0_15], %17 {strides = array<i32>} : memref<16x128xf32, #tpu.memory_space<vmem>>, vector<16x128xf32>,
    } else {
    }
    return
  }
  func.func @transform_0(%arg0: i32, %arg1: i32, %arg2: i32) -> (i32, i32) {
    %c0_i32 = arith.constant 0 : i32
    return %arg0, %arg2 : i32, i32
  }
  func.func @transform_1(%arg0: i32, %arg1: i32, %arg2: i32) -> (i32, i32) {
    %c0_i32 = arith.constant 0 : i32
    return %arg2, %arg1 : i32, i32
  }
  func.func @transform_2(%arg0: i32, %arg1: i32, %arg2: i32) -> (i32, i32) {
    %c0_i32 = arith.constant 0 : i32
    %c0_i32_0 = arith.constant 0 : i32
    return %c0_i32, %arg1 : i32, i32
  }
  func.func @transform_3(%arg0: i32, %arg1: i32, %arg2: i32) -> (i32, i32) {
    %c0_i32 = arith.constant 0 : i32
    return %arg0, %arg1 : i32, i32
  }
}

module attributes {stable_mosaic.version = 11 : i64} {
  func.func @_linear_res_bn_kernel(%arg0: i32, %arg1: i32, %arg2: i32, %arg3: memref<16x64xf32, #tpu.memory_space<vmem>>, %arg4: memref<64x32xf32, #tpu.memory_space<vmem>>, %arg5: memref<1x32xf32, #tpu.memory_space<vmem>>, %arg6: memref<16x32xf32, #tpu.memory_space<vmem>>, %arg7: memref<1x32xf32, #tpu.memory_space<vmem>>, %arg8: memref<1x32xf32, #tpu.memory_space<vmem>>, %arg9: memref<16x32xf32, #tpu.memory_space<vmem>>, %arg10: memref<16x32xf32, #tpu.memory_space<vmem>>) attributes {dimension_semantics = [#tpu.dimension_semantics<parallel>, #tpu.dimension_semantics<parallel>, #tpu.dimension_semantics<arbitrary>], iteration_bounds = array<i64: 1, 1, 1>, scalar_prefetch = 0 : i64, scratch_operands = 1 : i64, tpu.core_type = #tpu.core_type<tc>, window_params = [{transform_indices = @transform_0, window_bounds = array<i64: 16, 64>}, {transform_indices = @transform_1, window_bounds = array<i64: 64, 32>}, {transform_indices = @transform_2, window_bounds = array<i64: 1, 32>}, {transform_indices = @transform_3, window_bounds = array<i64: 16, 32>}, {transform_indices = @transform_4, window_bounds = array<i64: 1, 32>}, {transform_indices = @transform_5, window_bounds = array<i64: 1, 32>}, {transform_indices = @transform_6, window_bounds = array<i64: 16, 32>}]} {
    %c0_i32 = arith.constant 0 : i32
    %0 = arith.cmpi eq, %arg2, %c0_i32 : i32
    %1 = arith.extui %0 : i1 to i32
    %c0_i32_0 = arith.constant 0 : i32
    %2 = arith.cmpi ne, %1, %c0_i32_0 : i32
    scf.if %2 {
      %cst_10 = arith.constant 0.000000e+00 : f32
      %14 = vector.broadcast %cst_10 : f32 to vector<16x32xf32>
      %c0_11 = arith.constant 0 : index
      %c0_12 = arith.constant 0 : index
      %15 = vector.load %arg10[%c0_11, %c0_12] : memref<16x32xf32, #tpu.memory_space<vmem>>, vector<16x32xf32>
      tpu.vector_store %arg10[%c0_11, %c0_12], %14 {strides = array<i32>} : memref<16x32xf32, #tpu.memory_space<vmem>>, vector<16x32xf32>,
    } else {
    }
    %c0 = arith.constant 0 : index
    %c0_1 = arith.constant 0 : index
    %3 = vector.load %arg10[%c0, %c0_1] : memref<16x32xf32, #tpu.memory_space<vmem>>, vector<16x32xf32>
    %c0_2 = arith.constant 0 : index
    %c0_3 = arith.constant 0 : index
    %4 = vector.load %arg3[%c0_2, %c0_3] : memref<16x64xf32, #tpu.memory_space<vmem>>, vector<16x64xf32>
    %5 = arith.truncf %4 : vector<16x64xf32> to vector<16x64xbf16>
    %c0_4 = arith.constant 0 : index
    %c0_5 = arith.constant 0 : index
    %6 = vector.load %arg4[%c0_4, %c0_5] : memref<64x32xf32, #tpu.memory_space<vmem>>, vector<64x32xf32>
    %7 = arith.truncf %6 : vector<64x32xf32> to vector<64x32xbf16>
    %cst = arith.constant dense<0.000000e+00> : vector<16x32xf32>
    %8 = tpu.matmul %5, %7, %cst {dimension_numbers = #tpu.dot_dimension_numbers<[1], [0], [0], [1], [0, 0, 1, 1], [], []>} : vector<16x64xbf16>, vector<64x32xbf16>, vector<16x32xf32> -> vector<16x32xf32>
    %9 = arith.addf %3, %8 : vector<16x32xf32>
    %c0_6 = arith.constant 0 : index
    %c0_7 = arith.constant 0 : index
    %10 = vector.load %arg10[%c0_6, %c0_7] : memref<16x32xf32, #tpu.memory_space<vmem>>, vector<16x32xf32>
    tpu.vector_store %arg10[%c0_6, %c0_7], %9 {strides = array<i32>} : memref<16x32xf32, #tpu.memory_space<vmem>>, vector<16x32xf32>,
    %c0_i32_8 = arith.constant 0 : i32
    %11 = arith.cmpi eq, %arg2, %c0_i32_8 : i32
    %12 = arith.extui %11 : i1 to i32
    %c0_i32_9 = arith.constant 0 : i32
    %13 = arith.cmpi ne, %12, %c0_i32_9 : i32
    scf.if %13 {
      %c0_10 = arith.constant 0 : index
      %c0_11 = arith.constant 0 : index
      %14 = vector.load %arg10[%c0_10, %c0_11] : memref<16x32xf32, #tpu.memory_space<vmem>>, vector<16x32xf32>
      %c0_12 = arith.constant 0 : index
      %c0_13 = arith.constant 0 : index
      %15 = vector.load %arg5[%c0_12, %c0_13] : memref<1x32xf32, #tpu.memory_space<vmem>>, vector<1x32xf32>
      %16 = vector.broadcast %15 : vector<1x32xf32> to vector<16x32xf32>
      %17 = arith.addf %14, %16 : vector<16x32xf32>
      %c0_14 = arith.constant 0 : index
      %c0_15 = arith.constant 0 : index
      %18 = vector.load %arg6[%c0_14, %c0_15] : memref<16x32xf32, #tpu.memory_space<vmem>>, vector<16x32xf32>
      %19 = arith.addf %17, %18 : vector<16x32xf32>
      %c0_16 = arith.constant 0 : index
      %c0_17 = arith.constant 0 : index
      %20 = vector.load %arg7[%c0_16, %c0_17] : memref<1x32xf32, #tpu.memory_space<vmem>>, vector<1x32xf32>
      %21 = vector.broadcast %20 : vector<1x32xf32> to vector<16x32xf32>
      %22 = arith.mulf %19, %21 : vector<16x32xf32>
      %c0_18 = arith.constant 0 : index
      %c0_19 = arith.constant 0 : index
      %23 = vector.load %arg8[%c0_18, %c0_19] : memref<1x32xf32, #tpu.memory_space<vmem>>, vector<1x32xf32>
      %24 = vector.broadcast %23 : vector<1x32xf32> to vector<16x32xf32>
      %25 = arith.addf %22, %24 : vector<16x32xf32>
      %c0_20 = arith.constant 0 : index
      %c0_21 = arith.constant 0 : index
      %26 = vector.load %arg9[%c0_20, %c0_21] : memref<16x32xf32, #tpu.memory_space<vmem>>, vector<16x32xf32>
      tpu.vector_store %arg9[%c0_20, %c0_21], %25 {strides = array<i32>} : memref<16x32xf32, #tpu.memory_space<vmem>>, vector<16x32xf32>,
    } else {
    }
    return
  }
  func.func @transform_0(%arg0: i32, %arg1: i32, %arg2: i32) -> (i32, i32) {
    %c0_i32 = arith.constant 0 : i32
    return %arg0, %arg2 : i32, i32
  }
  func.func @transform_1(%arg0: i32, %arg1: i32, %arg2: i32) -> (i32, i32) {
    %c0_i32 = arith.constant 0 : i32
    return %arg2, %arg1 : i32, i32
  }
  func.func @transform_2(%arg0: i32, %arg1: i32, %arg2: i32) -> (i32, i32) {
    %c0_i32 = arith.constant 0 : i32
    %c0_i32_0 = arith.constant 0 : i32
    return %c0_i32, %arg1 : i32, i32
  }
  func.func @transform_3(%arg0: i32, %arg1: i32, %arg2: i32) -> (i32, i32) {
    %c0_i32 = arith.constant 0 : i32
    return %arg0, %arg1 : i32, i32
  }
  func.func @transform_4(%arg0: i32, %arg1: i32, %arg2: i32) -> (i32, i32) {
    %c0_i32 = arith.constant 0 : i32
    %c0_i32_0 = arith.constant 0 : i32
    return %c0_i32, %arg1 : i32, i32
  }
  func.func @transform_5(%arg0: i32, %arg1: i32, %arg2: i32) -> (i32, i32) {
    %c0_i32 = arith.constant 0 : i32
    %c0_i32_0 = arith.constant 0 : i32
    return %c0_i32, %arg1 : i32, i32
  }
  func.func @transform_6(%arg0: i32, %arg1: i32, %arg2: i32) -> (i32, i32) {
    %c0_i32 = arith.constant 0 : i32
    return %arg0, %arg1 : i32, i32
  }
}

module attributes {stable_mosaic.version = 11 : i64} {
  func.func @_mamba_inner_kernel(%arg0: i32, %arg1: memref<1x8x128xf32, #tpu.memory_space<vmem>>, %arg2: memref<4x64xf32, #tpu.memory_space<vmem>>, %arg3: memref<1x64xf32, #tpu.memory_space<vmem>>, %arg4: memref<64x10xf32, #tpu.memory_space<vmem>>, %arg5: memref<2x64xf32, #tpu.memory_space<vmem>>, %arg6: memref<1x64xf32, #tpu.memory_space<vmem>>, %arg7: memref<4x64xf32, #tpu.memory_space<vmem>>, %arg8: memref<1x64xf32, #tpu.memory_space<vmem>>, %arg9: memref<1x8x64xf32, #tpu.memory_space<vmem>>, %arg10: memref<32x64xf32, #tpu.memory_space<vmem>>, %arg11: memref<32x64xf32, #tpu.memory_space<vmem>>, %arg12: memref<32x64xf32, #tpu.memory_space<vmem>>, %arg13: memref<8x64xf32, #tpu.memory_space<vmem>>) attributes {dimension_semantics = [#tpu.dimension_semantics<parallel>], iteration_bounds = array<i64: 2>, scalar_prefetch = 0 : i64, scratch_operands = 4 : i64, tpu.core_type = #tpu.core_type<tc>, window_params = [{transform_indices = @transform_0, window_bounds = array<i64: 1, 8, 128>}, {pipeline_mode = #tpu.pipeline_mode<synchronous>, transform_indices = @transform_1, window_bounds = array<i64: 4, 64>}, {pipeline_mode = #tpu.pipeline_mode<synchronous>, transform_indices = @transform_2, window_bounds = array<i64: 1, 64>}, {pipeline_mode = #tpu.pipeline_mode<synchronous>, transform_indices = @transform_3, window_bounds = array<i64: 64, 10>}, {pipeline_mode = #tpu.pipeline_mode<synchronous>, transform_indices = @transform_4, window_bounds = array<i64: 2, 64>}, {pipeline_mode = #tpu.pipeline_mode<synchronous>, transform_indices = @transform_5, window_bounds = array<i64: 1, 64>}, {pipeline_mode = #tpu.pipeline_mode<synchronous>, transform_indices = @transform_6, window_bounds = array<i64: 4, 64>}, {pipeline_mode = #tpu.pipeline_mode<synchronous>, transform_indices = @transform_7, window_bounds = array<i64: 1, 64>}, {transform_indices = @transform_8, window_bounds = array<i64: 1, 8, 64>}]} {
    %c0 = arith.constant 0 : index
    %c0_0 = arith.constant 0 : index
    %c0_1 = arith.constant 0 : index
    %0 = vector.load %arg1[%c0, %c0_0, %c0_1] : memref<1x8x128xf32, #tpu.memory_space<vmem>>, vector<1x8x64xf32>
    %1 = vector.shape_cast %0 : vector<1x8x64xf32> to vector<8x64xf32>
    %c0_2 = arith.constant 0 : index
    %c0_3 = arith.constant 0 : index
    %c64 = arith.constant 64 : index
    %2 = vector.load %arg1[%c0_2, %c0_3, %c64] : memref<1x8x128xf32, #tpu.memory_space<vmem>>, vector<1x8x64xf32>
    %3 = vector.shape_cast %2 : vector<1x8x64xf32> to vector<8x64xf32>
    %c0_4 = arith.constant 0 : index
    %c0_5 = arith.constant 0 : index
    %4 = vector.load %arg3[%c0_4, %c0_5] : memref<1x64xf32, #tpu.memory_space<vmem>>, vector<1x64xf32>
    %5 = vector.shape_cast %4 : vector<1x64xf32> to vector<1x64xf32>
    %6 = vector.broadcast %5 : vector<1x64xf32> to vector<8x64xf32>
    %7 = tpu.iota {dimensions = array<i32: 0>} : vector<8x64xi32>
    %c3_i32 = arith.constant 3 : i32
    %8 = vector.broadcast %c3_i32 : i32 to vector<8x64xi32>
    %9 = arith.cmpi sge, %7, %8 : vector<8x64xi32>
    %c3_i32_6 = arith.constant 3 : i32
    %10 = tpu.dynamic_rotate %1 by %c3_i32_6 dim 0 : vector<8x64xf32>, i32 -> vector<8x64xf32>
    %cst = arith.constant 0.000000e+00 : f32
    %11 = vector.broadcast %cst : f32 to vector<8x64xf32>
    %12 = arith.select %9, %10, %11 : vector<8x64xi1>, vector<8x64xf32>
    %c0_7 = arith.constant 0 : index
    %c0_8 = arith.constant 0 : index
    %13 = vector.load %arg2[%c0_7, %c0_8] : memref<4x64xf32, #tpu.memory_space<vmem>>, vector<1x64xf32>
    %14 = vector.broadcast %13 : vector<1x64xf32> to vector<8x64xf32>
    %15 = arith.mulf %14, %12 : vector<8x64xf32>
    %16 = arith.addf %6, %15 : vector<8x64xf32>
    %c2_i32 = arith.constant 2 : i32
    %17 = vector.broadcast %c2_i32 : i32 to vector<8x64xi32>
    %18 = arith.cmpi sge, %7, %17 : vector<8x64xi32>
    %c2_i32_9 = arith.constant 2 : i32
    %19 = tpu.dynamic_rotate %1 by %c2_i32_9 dim 0 : vector<8x64xf32>, i32 -> vector<8x64xf32>
    %cst_10 = arith.constant 0.000000e+00 : f32
    %20 = vector.broadcast %cst_10 : f32 to vector<8x64xf32>
    %21 = arith.select %18, %19, %20 : vector<8x64xi1>, vector<8x64xf32>
    %c1 = arith.constant 1 : index
    %c0_11 = arith.constant 0 : index
    %22 = vector.load %arg2[%c1, %c0_11] : memref<4x64xf32, #tpu.memory_space<vmem>>, vector<1x64xf32>
    %23 = vector.broadcast %22 : vector<1x64xf32> to vector<8x64xf32>
    %24 = arith.mulf %23, %21 : vector<8x64xf32>
    %25 = arith.addf %16, %24 : vector<8x64xf32>
    %c1_i32 = arith.constant 1 : i32
    %26 = vector.broadcast %c1_i32 : i32 to vector<8x64xi32>
    %27 = arith.cmpi sge, %7, %26 : vector<8x64xi32>
    %c1_i32_12 = arith.constant 1 : i32
    %28 = tpu.dynamic_rotate %1 by %c1_i32_12 dim 0 : vector<8x64xf32>, i32 -> vector<8x64xf32>
    %cst_13 = arith.constant 0.000000e+00 : f32
    %29 = vector.broadcast %cst_13 : f32 to vector<8x64xf32>
    %30 = arith.select %27, %28, %29 : vector<8x64xi1>, vector<8x64xf32>
    %c2 = arith.constant 2 : index
    %c0_14 = arith.constant 0 : index
    %31 = vector.load %arg2[%c2, %c0_14] : memref<4x64xf32, #tpu.memory_space<vmem>>, vector<1x64xf32>
    %32 = vector.broadcast %31 : vector<1x64xf32> to vector<8x64xf32>
    %33 = arith.mulf %32, %30 : vector<8x64xf32>
    %34 = arith.addf %25, %33 : vector<8x64xf32>
    %c3 = arith.constant 3 : index
    %c0_15 = arith.constant 0 : index
    %35 = vector.load %arg2[%c3, %c0_15] : memref<4x64xf32, #tpu.memory_space<vmem>>, vector<1x64xf32>
    %36 = vector.broadcast %35 : vector<1x64xf32> to vector<8x64xf32>
    %37 = arith.mulf %36, %1 : vector<8x64xf32>
    %38 = arith.addf %34, %37 : vector<8x64xf32>
    %39 = arith.negf %38 : vector<8x64xf32>
    %40 = math.exp %39 : vector<8x64xf32>
    %cst_16 = arith.constant 1.000000e+00 : f32
    %41 = vector.broadcast %cst_16 : f32 to vector<8x64xf32>
    %42 = arith.addf %41, %40 : vector<8x64xf32>
    %43 = arith.divf %41, %42 : vector<8x64xf32>
    %44 = arith.mulf %38, %43 : vector<8x64xf32>
    %c0_17 = arith.constant 0 : index
    %c0_18 = arith.constant 0 : index
    %45 = vector.load %arg4[%c0_17, %c0_18] : memref<64x10xf32, #tpu.memory_space<vmem>>, vector<64x10xf32>
    %cst_19 = arith.constant dense<0.000000e+00> : vector<8x10xf32>
    %46 = tpu.matmul %44, %45, %cst_19 {dimension_numbers = #tpu.dot_dimension_numbers<[1], [0], [0], [1], [0, 0, 1, 1], [], []>} : vector<8x64xf32>, vector<64x10xf32>, vector<8x10xf32> -> vector<8x10xf32>
    %47 = vector.extract_strided_slice %46 {offsets = [0, 0], sizes = [8, 2], strides = [1, 1]} : vector<8x10xf32> to vector<8x2xf32>
    %48 = vector.extract_strided_slice %46 {offsets = [0, 2], sizes = [8, 4], strides = [1, 1]} : vector<8x10xf32> to vector<8x4xf32>
    %49 = vector.extract_strided_slice %46 {offsets = [0, 6], sizes = [8, 4], strides = [1, 1]} : vector<8x10xf32> to vector<8x4xf32>
    %c0_20 = arith.constant 0 : index
    %c0_21 = arith.constant 0 : index
    %50 = vector.load %arg5[%c0_20, %c0_21] : memref<2x64xf32, #tpu.memory_space<vmem>>, vector<2x64xf32>
    %cst_22 = arith.constant dense<0.000000e+00> : vector<8x64xf32>
    %51 = tpu.matmul %47, %50, %cst_22 {dimension_numbers = #tpu.dot_dimension_numbers<[1], [0], [0], [1], [0, 0, 1, 1], [], []>} : vector<8x2xf32>, vector<2x64xf32>, vector<8x64xf32> -> vector<8x64xf32>
    %c0_23 = arith.constant 0 : index
    %c0_24 = arith.constant 0 : index
    %52 = vector.load %arg6[%c0_23, %c0_24] : memref<1x64xf32, #tpu.memory_space<vmem>>, vector<1x64xf32>
    %53 = vector.broadcast %52 : vector<1x64xf32> to vector<8x64xf32>
    %54 = arith.addf %51, %53 : vector<8x64xf32>
    %cst_25 = arith.constant 0.000000e+00 : f32
    %55 = vector.broadcast %cst_25 : f32 to vector<8x64xf32>
    %56 = arith.maximumf %54, %55 : vector<8x64xf32>
    %57 = math.absf %54 : vector<8x64xf32>
    %cst_26 = arith.constant 0.000000e+00 : f32
    %58 = vector.broadcast %cst_26 : f32 to vector<8x64xf32>
    %59 = arith.subf %58, %57 : vector<8x64xf32>
    %60 = math.exp %59 : vector<8x64xf32>
    %61 = math.log1p %60 : vector<8x64xf32>
    %62 = arith.addf %56, %61 : vector<8x64xf32>
    %c0_27 = arith.constant 0 : index
    %c0_28 = arith.constant 0 : index
    %63 = vector.load %arg7[%c0_27, %c0_28] : memref<4x64xf32, #tpu.memory_space<vmem>>, vector<4x64xf32>
    %64 = arith.mulf %62, %44 : vector<8x64xf32>
    %65 = vector.extract_strided_slice %63 {offsets = [0, 0], sizes = [1, 64], strides = [1, 1]} : vector<4x64xf32> to vector<1x64xf32>
    %66 = vector.broadcast %65 : vector<1x64xf32> to vector<8x64xf32>
    %67 = arith.mulf %62, %66 : vector<8x64xf32>
    %68 = math.exp %67 : vector<8x64xf32>
    %c0_29 = arith.constant 0 : index
    %c0_30 = arith.constant 0 : index
    %69 = vector.load %arg10[%c0_29, %c0_30] : memref<32x64xf32, #tpu.memory_space<vmem>>, vector<8x64xf32>
    tpu.vector_store %arg10[%c0_29, %c0_30], %68 {strides = array<i32>} : memref<32x64xf32, #tpu.memory_space<vmem>>, vector<8x64xf32>,
    %70 = vector.extract_strided_slice %48 {offsets = [0, 0], sizes = [8, 1], strides = [1, 1]} : vector<8x4xf32> to vector<8x1xf32>
    %71 = vector.broadcast %70 : vector<8x1xf32> to vector<8x64xf32>
    %72 = arith.mulf %64, %71 : vector<8x64xf32>
    %c0_31 = arith.constant 0 : index
    %c0_32 = arith.constant 0 : index
    %73 = vector.load %arg11[%c0_31, %c0_32] : memref<32x64xf32, #tpu.memory_space<vmem>>, vector<8x64xf32>
    tpu.vector_store %arg11[%c0_31, %c0_32], %72 {strides = array<i32>} : memref<32x64xf32, #tpu.memory_space<vmem>>, vector<8x64xf32>,
    %74 = vector.extract_strided_slice %49 {offsets = [0, 0], sizes = [8, 1], strides = [1, 1]} : vector<8x4xf32> to vector<8x1xf32>
    %75 = vector.shape_cast %74 : vector<8x1xf32> to vector<8x1xf32>
    %76 = vector.broadcast %75 : vector<8x1xf32> to vector<8x64xf32>
    %c0_33 = arith.constant 0 : index
    %c0_34 = arith.constant 0 : index
    %77 = vector.load %arg12[%c0_33, %c0_34] : memref<32x64xf32, #tpu.memory_space<vmem>>, vector<8x64xf32>
    tpu.vector_store %arg12[%c0_33, %c0_34], %76 {strides = array<i32>} : memref<32x64xf32, #tpu.memory_space<vmem>>, vector<8x64xf32>,
    %78 = vector.extract_strided_slice %63 {offsets = [1, 0], sizes = [1, 64], strides = [1, 1]} : vector<4x64xf32> to vector<1x64xf32>
    %79 = vector.broadcast %78 : vector<1x64xf32> to vector<8x64xf32>
    %80 = arith.mulf %62, %79 : vector<8x64xf32>
    %81 = math.exp %80 : vector<8x64xf32>
    %c8 = arith.constant 8 : index
    %c0_35 = arith.constant 0 : index
    %82 = vector.load %arg10[%c8, %c0_35] : memref<32x64xf32, #tpu.memory_space<vmem>>, vector<8x64xf32>
    tpu.vector_store %arg10[%c8, %c0_35], %81 {strides = array<i32>} : memref<32x64xf32, #tpu.memory_space<vmem>>, vector<8x64xf32>,
    %83 = vector.extract_strided_slice %48 {offsets = [0, 1], sizes = [8, 1], strides = [1, 1]} : vector<8x4xf32> to vector<8x1xf32>
    %84 = vector.broadcast %83 : vector<8x1xf32> to vector<8x64xf32>
    %85 = arith.mulf %64, %84 : vector<8x64xf32>
    %c8_36 = arith.constant 8 : index
    %c0_37 = arith.constant 0 : index
    %86 = vector.load %arg11[%c8_36, %c0_37] : memref<32x64xf32, #tpu.memory_space<vmem>>, vector<8x64xf32>
    tpu.vector_store %arg11[%c8_36, %c0_37], %85 {strides = array<i32>} : memref<32x64xf32, #tpu.memory_space<vmem>>, vector<8x64xf32>,
    %87 = vector.extract_strided_slice %49 {offsets = [0, 1], sizes = [8, 1], strides = [1, 1]} : vector<8x4xf32> to vector<8x1xf32>
    %88 = vector.shape_cast %87 : vector<8x1xf32> to vector<8x1xf32>
    %89 = vector.broadcast %88 : vector<8x1xf32> to vector<8x64xf32>
    %c8_38 = arith.constant 8 : index
    %c0_39 = arith.constant 0 : index
    %90 = vector.load %arg12[%c8_38, %c0_39] : memref<32x64xf32, #tpu.memory_space<vmem>>, vector<8x64xf32>
    tpu.vector_store %arg12[%c8_38, %c0_39], %89 {strides = array<i32>} : memref<32x64xf32, #tpu.memory_space<vmem>>, vector<8x64xf32>,
    %91 = vector.extract_strided_slice %63 {offsets = [2, 0], sizes = [1, 64], strides = [1, 1]} : vector<4x64xf32> to vector<1x64xf32>
    %92 = vector.broadcast %91 : vector<1x64xf32> to vector<8x64xf32>
    %93 = arith.mulf %62, %92 : vector<8x64xf32>
    %94 = math.exp %93 : vector<8x64xf32>
    %c16 = arith.constant 16 : index
    %c0_40 = arith.constant 0 : index
    %95 = vector.load %arg10[%c16, %c0_40] : memref<32x64xf32, #tpu.memory_space<vmem>>, vector<8x64xf32>
    tpu.vector_store %arg10[%c16, %c0_40], %94 {strides = array<i32>} : memref<32x64xf32, #tpu.memory_space<vmem>>, vector<8x64xf32>,
    %96 = vector.extract_strided_slice %48 {offsets = [0, 2], sizes = [8, 1], strides = [1, 1]} : vector<8x4xf32> to vector<8x1xf32>
    %97 = vector.broadcast %96 : vector<8x1xf32> to vector<8x64xf32>
    %98 = arith.mulf %64, %97 : vector<8x64xf32>
    %c16_41 = arith.constant 16 : index
    %c0_42 = arith.constant 0 : index
    %99 = vector.load %arg11[%c16_41, %c0_42] : memref<32x64xf32, #tpu.memory_space<vmem>>, vector<8x64xf32>
    tpu.vector_store %arg11[%c16_41, %c0_42], %98 {strides = array<i32>} : memref<32x64xf32, #tpu.memory_space<vmem>>, vector<8x64xf32>,
    %100 = vector.extract_strided_slice %49 {offsets = [0, 2], sizes = [8, 1], strides = [1, 1]} : vector<8x4xf32> to vector<8x1xf32>
    %101 = vector.shape_cast %100 : vector<8x1xf32> to vector<8x1xf32>
    %102 = vector.broadcast %101 : vector<8x1xf32> to vector<8x64xf32>
    %c16_43 = arith.constant 16 : index
    %c0_44 = arith.constant 0 : index
    %103 = vector.load %arg12[%c16_43, %c0_44] : memref<32x64xf32, #tpu.memory_space<vmem>>, vector<8x64xf32>
    tpu.vector_store %arg12[%c16_43, %c0_44], %102 {strides = array<i32>} : memref<32x64xf32, #tpu.memory_space<vmem>>, vector<8x64xf32>,
    %104 = vector.extract_strided_slice %63 {offsets = [3, 0], sizes = [1, 64], strides = [1, 1]} : vector<4x64xf32> to vector<1x64xf32>
    %105 = vector.broadcast %104 : vector<1x64xf32> to vector<8x64xf32>
    %106 = arith.mulf %62, %105 : vector<8x64xf32>
    %107 = math.exp %106 : vector<8x64xf32>
    %c24 = arith.constant 24 : index
    %c0_45 = arith.constant 0 : index
    %108 = vector.load %arg10[%c24, %c0_45] : memref<32x64xf32, #tpu.memory_space<vmem>>, vector<8x64xf32>
    tpu.vector_store %arg10[%c24, %c0_45], %107 {strides = array<i32>} : memref<32x64xf32, #tpu.memory_space<vmem>>, vector<8x64xf32>,
    %109 = vector.extract_strided_slice %48 {offsets = [0, 3], sizes = [8, 1], strides = [1, 1]} : vector<8x4xf32> to vector<8x1xf32>
    %110 = vector.broadcast %109 : vector<8x1xf32> to vector<8x64xf32>
    %111 = arith.mulf %64, %110 : vector<8x64xf32>
    %c24_46 = arith.constant 24 : index
    %c0_47 = arith.constant 0 : index
    %112 = vector.load %arg11[%c24_46, %c0_47] : memref<32x64xf32, #tpu.memory_space<vmem>>, vector<8x64xf32>
    tpu.vector_store %arg11[%c24_46, %c0_47], %111 {strides = array<i32>} : memref<32x64xf32, #tpu.memory_space<vmem>>, vector<8x64xf32>,
    %113 = vector.extract_strided_slice %49 {offsets = [0, 3], sizes = [8, 1], strides = [1, 1]} : vector<8x4xf32> to vector<8x1xf32>
    %114 = vector.shape_cast %113 : vector<8x1xf32> to vector<8x1xf32>
    %115 = vector.broadcast %114 : vector<8x1xf32> to vector<8x64xf32>
    %c24_48 = arith.constant 24 : index
    %c0_49 = arith.constant 0 : index
    %116 = vector.load %arg12[%c24_48, %c0_49] : memref<32x64xf32, #tpu.memory_space<vmem>>, vector<8x64xf32>
    tpu.vector_store %arg12[%c24_48, %c0_49], %115 {strides = array<i32>} : memref<32x64xf32, #tpu.memory_space<vmem>>, vector<8x64xf32>,
    %cst_50 = arith.constant 0.000000e+00 : f32
    %117 = vector.broadcast %cst_50 : f32 to vector<1x64xf32>
    %cst_51 = arith.constant 0.000000e+00 : f32
    %118 = vector.broadcast %cst_51 : f32 to vector<1x64xf32>
    %cst_52 = arith.constant 0.000000e+00 : f32
    %119 = vector.broadcast %cst_52 : f32 to vector<1x64xf32>
    %cst_53 = arith.constant 0.000000e+00 : f32
    %120 = vector.broadcast %cst_53 : f32 to vector<1x64xf32>
    %c0_i32 = arith.constant 0 : i32
    %c8_i32 = arith.constant 8 : i32
    %121 = arith.addi %c0_i32, %c8_i32 : i32
    %c1_i32_54 = arith.constant 1 : i32
    %122:4 = scf.for %arg14 = %c0_i32 to %121 step %c1_i32_54 iter_args(%arg15 = %117, %arg16 = %118, %arg17 = %119, %arg18 = %120) -> (vector<1x64xf32>, vector<1x64xf32>, vector<1x64xf32>, vector<1x64xf32>)  : i32 {
      %cst_64 = arith.constant 0.000000e+00 : f32
      %138 = vector.broadcast %cst_64 : f32 to vector<1x64xf32>
      %c0_i32_65 = arith.constant 0 : i32
      %139 = arith.addi %c0_i32_65, %arg14 : i32
      %140 = arith.index_cast %139 : i32 to index
      %c0_66 = arith.constant 0 : index
      %141 = vector.load %arg10[%140, %c0_66] : memref<32x64xf32, #tpu.memory_space<vmem>>, vector<1x64xf32>
      %142 = arith.mulf %141, %arg15 : vector<1x64xf32>
      %c0_i32_67 = arith.constant 0 : i32
      %143 = arith.addi %c0_i32_67, %arg14 : i32
      %144 = arith.index_cast %143 : i32 to index
      %c0_68 = arith.constant 0 : index
      %145 = vector.load %arg11[%144, %c0_68] : memref<32x64xf32, #tpu.memory_space<vmem>>, vector<1x64xf32>
      %146 = arith.addf %142, %145 : vector<1x64xf32>
      %c0_i32_69 = arith.constant 0 : i32
      %147 = arith.addi %c0_i32_69, %arg14 : i32
      %148 = arith.index_cast %147 : i32 to index
      %c0_70 = arith.constant 0 : index
      %149 = vector.load %arg12[%148, %c0_70] : memref<32x64xf32, #tpu.memory_space<vmem>>, vector<1x64xf32>
      %150 = arith.mulf %146, %149 : vector<1x64xf32>
      %151 = arith.addf %138, %150 : vector<1x64xf32>
      %c8_i32_71 = arith.constant 8 : i32
      %152 = arith.addi %c8_i32_71, %arg14 : i32
      %153 = arith.index_cast %152 : i32 to index
      %c0_72 = arith.constant 0 : index
      %154 = vector.load %arg10[%153, %c0_72] : memref<32x64xf32, #tpu.memory_space<vmem>>, vector<1x64xf32>
      %155 = arith.mulf %154, %arg16 : vector<1x64xf32>
      %c8_i32_73 = arith.constant 8 : i32
      %156 = arith.addi %c8_i32_73, %arg14 : i32
      %157 = arith.index_cast %156 : i32 to index
      %c0_74 = arith.constant 0 : index
      %158 = vector.load %arg11[%157, %c0_74] : memref<32x64xf32, #tpu.memory_space<vmem>>, vector<1x64xf32>
      %159 = arith.addf %155, %158 : vector<1x64xf32>
      %c8_i32_75 = arith.constant 8 : i32
      %160 = arith.addi %c8_i32_75, %arg14 : i32
      %161 = arith.index_cast %160 : i32 to index
      %c0_76 = arith.constant 0 : index
      %162 = vector.load %arg12[%161, %c0_76] : memref<32x64xf32, #tpu.memory_space<vmem>>, vector<1x64xf32>
      %163 = arith.mulf %159, %162 : vector<1x64xf32>
      %164 = arith.addf %151, %163 : vector<1x64xf32>
      %c16_i32 = arith.constant 16 : i32
      %165 = arith.addi %c16_i32, %arg14 : i32
      %166 = arith.index_cast %165 : i32 to index
      %c0_77 = arith.constant 0 : index
      %167 = vector.load %arg10[%166, %c0_77] : memref<32x64xf32, #tpu.memory_space<vmem>>, vector<1x64xf32>
      %168 = arith.mulf %167, %arg17 : vector<1x64xf32>
      %c16_i32_78 = arith.constant 16 : i32
      %169 = arith.addi %c16_i32_78, %arg14 : i32
      %170 = arith.index_cast %169 : i32 to index
      %c0_79 = arith.constant 0 : index
      %171 = vector.load %arg11[%170, %c0_79] : memref<32x64xf32, #tpu.memory_space<vmem>>, vector<1x64xf32>
      %172 = arith.addf %168, %171 : vector<1x64xf32>
      %c16_i32_80 = arith.constant 16 : i32
      %173 = arith.addi %c16_i32_80, %arg14 : i32
      %174 = arith.index_cast %173 : i32 to index
      %c0_81 = arith.constant 0 : index
      %175 = vector.load %arg12[%174, %c0_81] : memref<32x64xf32, #tpu.memory_space<vmem>>, vector<1x64xf32>
      %176 = arith.mulf %172, %175 : vector<1x64xf32>
      %177 = arith.addf %164, %176 : vector<1x64xf32>
      %c24_i32 = arith.constant 24 : i32
      %178 = arith.addi %c24_i32, %arg14 : i32
      %179 = arith.index_cast %178 : i32 to index
      %c0_82 = arith.constant 0 : index
      %180 = vector.load %arg10[%179, %c0_82] : memref<32x64xf32, #tpu.memory_space<vmem>>, vector<1x64xf32>
      %181 = arith.mulf %180, %arg18 : vector<1x64xf32>
      %c24_i32_83 = arith.constant 24 : i32
      %182 = arith.addi %c24_i32_83, %arg14 : i32
      %183 = arith.index_cast %182 : i32 to index
      %c0_84 = arith.constant 0 : index
      %184 = vector.load %arg11[%183, %c0_84] : memref<32x64xf32, #tpu.memory_space<vmem>>, vector<1x64xf32>
      %185 = arith.addf %181, %184 : vector<1x64xf32>
      %c24_i32_85 = arith.constant 24 : i32
      %186 = arith.addi %c24_i32_85, %arg14 : i32
      %187 = arith.index_cast %186 : i32 to index
      %c0_86 = arith.constant 0 : index
      %188 = vector.load %arg12[%187, %c0_86] : memref<32x64xf32, #tpu.memory_space<vmem>>, vector<1x64xf32>
      %189 = arith.mulf %185, %188 : vector<1x64xf32>
      %190 = arith.addf %177, %189 : vector<1x64xf32>
      %191 = arith.index_cast %arg14 : i32 to index
      %c0_87 = arith.constant 0 : index
      %192 = vector.load %arg13[%191, %c0_87] : memref<8x64xf32, #tpu.memory_space<vmem>>, vector<1x64xf32>
      tpu.vector_store %arg13[%191, %c0_87], %190 {strides = array<i32>} : memref<8x64xf32, #tpu.memory_space<vmem>>, vector<1x64xf32>,
      scf.yield %146, %159, %172, %185 : vector<1x64xf32>, vector<1x64xf32>, vector<1x64xf32>, vector<1x64xf32>
    }
    %c8_i32_55 = arith.constant 8 : i32
    %c0_56 = arith.constant 0 : index
    %c0_57 = arith.constant 0 : index
    %123 = vector.load %arg13[%c0_56, %c0_57] : memref<8x64xf32, #tpu.memory_space<vmem>>, vector<8x64xf32>
    %c0_58 = arith.constant 0 : index
    %c0_59 = arith.constant 0 : index
    %124 = vector.load %arg8[%c0_58, %c0_59] : memref<1x64xf32, #tpu.memory_space<vmem>>, vector<1x64xf32>
    %125 = vector.broadcast %124 : vector<1x64xf32> to vector<8x64xf32>
    %126 = arith.mulf %125, %44 : vector<8x64xf32>
    %127 = arith.addf %123, %126 : vector<8x64xf32>
    %128 = arith.negf %3 : vector<8x64xf32>
    %129 = math.exp %128 : vector<8x64xf32>
    %cst_60 = arith.constant 1.000000e+00 : f32
    %130 = vector.broadcast %cst_60 : f32 to vector<8x64xf32>
    %131 = arith.addf %130, %129 : vector<8x64xf32>
    %132 = arith.divf %130, %131 : vector<8x64xf32>
    %133 = arith.mulf %3, %132 : vector<8x64xf32>
    %134 = arith.mulf %127, %133 : vector<8x64xf32>
    %c0_61 = arith.constant 0 : index
    %c0_62 = arith.constant 0 : index
    %c0_63 = arith.constant 0 : index
    %135 = vector.load %arg9[%c0_61, %c0_62, %c0_63] : memref<1x8x64xf32, #tpu.memory_space<vmem>>, vector<1x8x64xf32>
    %136 = vector.shape_cast %135 : vector<1x8x64xf32> to vector<8x64xf32>
    %137 = vector.shape_cast %134 : vector<8x64xf32> to vector<1x8x64xf32>
    tpu.vector_store %arg9[%c0_61, %c0_62, %c0_63], %137 {strides = array<i32>} : memref<1x8x64xf32, #tpu.memory_space<vmem>>, vector<1x8x64xf32>,
    return
  }
  func.func @transform_0(%arg0: i32) -> (i32, i32, i32) {
    %c0_i32 = arith.constant 0 : i32
    %c0_i32_0 = arith.constant 0 : i32
    %c0_i32_1 = arith.constant 0 : i32
    return %arg0, %c0_i32, %c0_i32_0 : i32, i32, i32
  }
  func.func @transform_1(%arg0: i32) -> (i32, i32) {
    %c0_i32 = arith.constant 0 : i32
    %c0_i32_0 = arith.constant 0 : i32
    %c0_i32_1 = arith.constant 0 : i32
    return %c0_i32, %c0_i32_0 : i32, i32
  }
  func.func @transform_2(%arg0: i32) -> (i32, i32) {
    %c0_i32 = arith.constant 0 : i32
    %c0_i32_0 = arith.constant 0 : i32
    %c0_i32_1 = arith.constant 0 : i32
    return %c0_i32, %c0_i32_0 : i32, i32
  }
  func.func @transform_3(%arg0: i32) -> (i32, i32) {
    %c0_i32 = arith.constant 0 : i32
    %c0_i32_0 = arith.constant 0 : i32
    %c0_i32_1 = arith.constant 0 : i32
    return %c0_i32, %c0_i32_0 : i32, i32
  }
  func.func @transform_4(%arg0: i32) -> (i32, i32) {
    %c0_i32 = arith.constant 0 : i32
    %c0_i32_0 = arith.constant 0 : i32
    %c0_i32_1 = arith.constant 0 : i32
    return %c0_i32, %c0_i32_0 : i32, i32
  }
  func.func @transform_5(%arg0: i32) -> (i32, i32) {
    %c0_i32 = arith.constant 0 : i32
    %c0_i32_0 = arith.constant 0 : i32
    %c0_i32_1 = arith.constant 0 : i32
    return %c0_i32, %c0_i32_0 : i32, i32
  }
  func.func @transform_6(%arg0: i32) -> (i32, i32) {
    %c0_i32 = arith.constant 0 : i32
    %c0_i32_0 = arith.constant 0 : i32
    %c0_i32_1 = arith.constant 0 : i32
    return %c0_i32, %c0_i32_0 : i32, i32
  }
  func.func @transform_7(%arg0: i32) -> (i32, i32) {
    %c0_i32 = arith.constant 0 : i32
    %c0_i32_0 = arith.constant 0 : i32
    %c0_i32_1 = arith.constant 0 : i32
    return %c0_i32, %c0_i32_0 : i32, i32
  }
  func.func @transform_8(%arg0: i32) -> (i32, i32, i32) {
    %c0_i32 = arith.constant 0 : i32
    %c0_i32_0 = arith.constant 0 : i32
    %c0_i32_1 = arith.constant 0 : i32
    return %arg0, %c0_i32, %c0_i32_0 : i32, i32, i32
  }
}

module attributes {stable_mosaic.version = 11 : i64} {
  func.func @_linear_kernel(%arg0: i32, %arg1: i32, %arg2: i32, %arg3: memref<16x32xf32, #tpu.memory_space<vmem>>, %arg4: memref<32x96xf32, #tpu.memory_space<vmem>>, %arg5: memref<1x96xf32, #tpu.memory_space<vmem>>, %arg6: memref<16x96xf32, #tpu.memory_space<vmem>>, %arg7: memref<16x96xf32, #tpu.memory_space<vmem>>) attributes {dimension_semantics = [#tpu.dimension_semantics<parallel>, #tpu.dimension_semantics<parallel>, #tpu.dimension_semantics<arbitrary>], iteration_bounds = array<i64: 1, 1, 1>, scalar_prefetch = 0 : i64, scratch_operands = 1 : i64, tpu.core_type = #tpu.core_type<tc>, window_params = [{transform_indices = @transform_0, window_bounds = array<i64: 16, 32>}, {transform_indices = @transform_1, window_bounds = array<i64: 32, 96>}, {transform_indices = @transform_2, window_bounds = array<i64: 1, 96>}, {transform_indices = @transform_3, window_bounds = array<i64: 16, 96>}]} {
    %c0_i32 = arith.constant 0 : i32
    %0 = arith.cmpi eq, %arg2, %c0_i32 : i32
    %1 = arith.extui %0 : i1 to i32
    %c0_i32_0 = arith.constant 0 : i32
    %2 = arith.cmpi ne, %1, %c0_i32_0 : i32
    scf.if %2 {
      %cst_10 = arith.constant 0.000000e+00 : f32
      %14 = vector.broadcast %cst_10 : f32 to vector<16x96xf32>
      %c0_11 = arith.constant 0 : index
      %c0_12 = arith.constant 0 : index
      %15 = vector.load %arg7[%c0_11, %c0_12] : memref<16x96xf32, #tpu.memory_space<vmem>>, vector<16x96xf32>
      tpu.vector_store %arg7[%c0_11, %c0_12], %14 {strides = array<i32>} : memref<16x96xf32, #tpu.memory_space<vmem>>, vector<16x96xf32>,
    } else {
    }
    %c0 = arith.constant 0 : index
    %c0_1 = arith.constant 0 : index
    %3 = vector.load %arg7[%c0, %c0_1] : memref<16x96xf32, #tpu.memory_space<vmem>>, vector<16x96xf32>
    %c0_2 = arith.constant 0 : index
    %c0_3 = arith.constant 0 : index
    %4 = vector.load %arg3[%c0_2, %c0_3] : memref<16x32xf32, #tpu.memory_space<vmem>>, vector<16x32xf32>
    %5 = arith.truncf %4 : vector<16x32xf32> to vector<16x32xbf16>
    %c0_4 = arith.constant 0 : index
    %c0_5 = arith.constant 0 : index
    %6 = vector.load %arg4[%c0_4, %c0_5] : memref<32x96xf32, #tpu.memory_space<vmem>>, vector<32x96xf32>
    %7 = arith.truncf %6 : vector<32x96xf32> to vector<32x96xbf16>
    %cst = arith.constant dense<0.000000e+00> : vector<16x96xf32>
    %8 = tpu.matmul %5, %7, %cst {dimension_numbers = #tpu.dot_dimension_numbers<[1], [0], [0], [1], [0, 0, 1, 1], [], []>} : vector<16x32xbf16>, vector<32x96xbf16>, vector<16x96xf32> -> vector<16x96xf32>
    %9 = arith.addf %3, %8 : vector<16x96xf32>
    %c0_6 = arith.constant 0 : index
    %c0_7 = arith.constant 0 : index
    %10 = vector.load %arg7[%c0_6, %c0_7] : memref<16x96xf32, #tpu.memory_space<vmem>>, vector<16x96xf32>
    tpu.vector_store %arg7[%c0_6, %c0_7], %9 {strides = array<i32>} : memref<16x96xf32, #tpu.memory_space<vmem>>, vector<16x96xf32>,
    %c0_i32_8 = arith.constant 0 : i32
    %11 = arith.cmpi eq, %arg2, %c0_i32_8 : i32
    %12 = arith.extui %11 : i1 to i32
    %c0_i32_9 = arith.constant 0 : i32
    %13 = arith.cmpi ne, %12, %c0_i32_9 : i32
    scf.if %13 {
      %c0_10 = arith.constant 0 : index
      %c0_11 = arith.constant 0 : index
      %14 = vector.load %arg7[%c0_10, %c0_11] : memref<16x96xf32, #tpu.memory_space<vmem>>, vector<16x96xf32>
      %c0_12 = arith.constant 0 : index
      %c0_13 = arith.constant 0 : index
      %15 = vector.load %arg5[%c0_12, %c0_13] : memref<1x96xf32, #tpu.memory_space<vmem>>, vector<1x96xf32>
      %16 = vector.broadcast %15 : vector<1x96xf32> to vector<16x96xf32>
      %17 = arith.addf %14, %16 : vector<16x96xf32>
      %c0_14 = arith.constant 0 : index
      %c0_15 = arith.constant 0 : index
      %18 = vector.load %arg6[%c0_14, %c0_15] : memref<16x96xf32, #tpu.memory_space<vmem>>, vector<16x96xf32>
      tpu.vector_store %arg6[%c0_14, %c0_15], %17 {strides = array<i32>} : memref<16x96xf32, #tpu.memory_space<vmem>>, vector<16x96xf32>,
    } else {
    }
    return
  }
  func.func @transform_0(%arg0: i32, %arg1: i32, %arg2: i32) -> (i32, i32) {
    %c0_i32 = arith.constant 0 : i32
    return %arg0, %arg2 : i32, i32
  }
  func.func @transform_1(%arg0: i32, %arg1: i32, %arg2: i32) -> (i32, i32) {
    %c0_i32 = arith.constant 0 : i32
    return %arg2, %arg1 : i32, i32
  }
  func.func @transform_2(%arg0: i32, %arg1: i32, %arg2: i32) -> (i32, i32) {
    %c0_i32 = arith.constant 0 : i32
    %c0_i32_0 = arith.constant 0 : i32
    return %c0_i32, %arg1 : i32, i32
  }
  func.func @transform_3(%arg0: i32, %arg1: i32, %arg2: i32) -> (i32, i32) {
    %c0_i32 = arith.constant 0 : i32
    return %arg0, %arg1 : i32, i32
  }
}

module attributes {stable_mosaic.version = 11 : i64} {
  func.func @_ffn_res_bn_kernel(%arg0: i32, %arg1: memref<16x32xf32, #tpu.memory_space<vmem>>, %arg2: memref<32x64xf32, #tpu.memory_space<vmem>>, %arg3: memref<1x64xf32, #tpu.memory_space<vmem>>, %arg4: memref<64x32xf32, #tpu.memory_space<vmem>>, %arg5: memref<1x32xf32, #tpu.memory_space<vmem>>, %arg6: memref<1x32xf32, #tpu.memory_space<vmem>>, %arg7: memref<1x32xf32, #tpu.memory_space<vmem>>, %arg8: memref<16x32xf32, #tpu.memory_space<vmem>>) attributes {dimension_semantics = [#tpu.dimension_semantics<parallel>], iteration_bounds = array<i64: 1>, scalar_prefetch = 0 : i64, scratch_operands = 0 : i64, tpu.core_type = #tpu.core_type<tc>, window_params = [{transform_indices = @transform_0, window_bounds = array<i64: 16, 32>}, {pipeline_mode = #tpu.pipeline_mode<synchronous>, transform_indices = @transform_1, window_bounds = array<i64: 32, 64>}, {pipeline_mode = #tpu.pipeline_mode<synchronous>, transform_indices = @transform_2, window_bounds = array<i64: 1, 64>}, {pipeline_mode = #tpu.pipeline_mode<synchronous>, transform_indices = @transform_3, window_bounds = array<i64: 64, 32>}, {pipeline_mode = #tpu.pipeline_mode<synchronous>, transform_indices = @transform_4, window_bounds = array<i64: 1, 32>}, {pipeline_mode = #tpu.pipeline_mode<synchronous>, transform_indices = @transform_5, window_bounds = array<i64: 1, 32>}, {pipeline_mode = #tpu.pipeline_mode<synchronous>, transform_indices = @transform_6, window_bounds = array<i64: 1, 32>}, {transform_indices = @transform_7, window_bounds = array<i64: 16, 32>}]} {
    %c0 = arith.constant 0 : index
    %c0_0 = arith.constant 0 : index
    %0 = vector.load %arg1[%c0, %c0_0] : memref<16x32xf32, #tpu.memory_space<vmem>>, vector<16x32xf32>
    %1 = arith.truncf %0 : vector<16x32xf32> to vector<16x32xbf16>
    %c0_1 = arith.constant 0 : index
    %c0_2 = arith.constant 0 : index
    %2 = vector.load %arg2[%c0_1, %c0_2] : memref<32x64xf32, #tpu.memory_space<vmem>>, vector<32x64xf32>
    %3 = arith.truncf %2 : vector<32x64xf32> to vector<32x64xbf16>
    %cst = arith.constant dense<0.000000e+00> : vector<16x64xf32>
    %4 = tpu.matmul %1, %3, %cst {dimension_numbers = #tpu.dot_dimension_numbers<[1], [0], [0], [1], [0, 0, 1, 1], [], []>} : vector<16x32xbf16>, vector<32x64xbf16>, vector<16x64xf32> -> vector<16x64xf32>
    %c0_3 = arith.constant 0 : index
    %c0_4 = arith.constant 0 : index
    %5 = vector.load %arg3[%c0_3, %c0_4] : memref<1x64xf32, #tpu.memory_space<vmem>>, vector<1x64xf32>
    %6 = vector.broadcast %5 : vector<1x64xf32> to vector<16x64xf32>
    %7 = arith.addf %4, %6 : vector<16x64xf32>
    %cst_5 = arith.constant 5.000000e-01 : f32
    %8 = vector.broadcast %cst_5 : f32 to vector<16x64xf32>
    %9 = arith.mulf %8, %7 : vector<16x64xf32>
    %cst_6 = arith.constant 0.707106769 : f32
    %10 = vector.broadcast %cst_6 : f32 to vector<16x64xf32>
    %11 = arith.mulf %7, %10 : vector<16x64xf32>
    %12 = math.erf %11 : vector<16x64xf32>
    %cst_7 = arith.constant 1.000000e+00 : f32
    %13 = vector.broadcast %cst_7 : f32 to vector<16x64xf32>
    %14 = arith.addf %13, %12 : vector<16x64xf32>
    %15 = arith.mulf %9, %14 : vector<16x64xf32>
    %16 = arith.truncf %15 : vector<16x64xf32> to vector<16x64xbf16>
    %c0_8 = arith.constant 0 : index
    %c0_9 = arith.constant 0 : index
    %17 = vector.load %arg4[%c0_8, %c0_9] : memref<64x32xf32, #tpu.memory_space<vmem>>, vector<64x32xf32>
    %18 = arith.truncf %17 : vector<64x32xf32> to vector<64x32xbf16>
    %cst_10 = arith.constant dense<0.000000e+00> : vector<16x32xf32>
    %19 = tpu.matmul %16, %18, %cst_10 {dimension_numbers = #tpu.dot_dimension_numbers<[1], [0], [0], [1], [0, 0, 1, 1], [], []>} : vector<16x64xbf16>, vector<64x32xbf16>, vector<16x32xf32> -> vector<16x32xf32>
    %c0_11 = arith.constant 0 : index
    %c0_12 = arith.constant 0 : index
    %20 = vector.load %arg5[%c0_11, %c0_12] : memref<1x32xf32, #tpu.memory_space<vmem>>, vector<1x32xf32>
    %21 = vector.broadcast %20 : vector<1x32xf32> to vector<16x32xf32>
    %22 = arith.addf %19, %21 : vector<16x32xf32>
    %23 = arith.addf %22, %0 : vector<16x32xf32>
    %c0_13 = arith.constant 0 : index
    %c0_14 = arith.constant 0 : index
    %24 = vector.load %arg6[%c0_13, %c0_14] : memref<1x32xf32, #tpu.memory_space<vmem>>, vector<1x32xf32>
    %25 = vector.broadcast %24 : vector<1x32xf32> to vector<16x32xf32>
    %26 = arith.mulf %23, %25 : vector<16x32xf32>
    %c0_15 = arith.constant 0 : index
    %c0_16 = arith.constant 0 : index
    %27 = vector.load %arg7[%c0_15, %c0_16] : memref<1x32xf32, #tpu.memory_space<vmem>>, vector<1x32xf32>
    %28 = vector.broadcast %27 : vector<1x32xf32> to vector<16x32xf32>
    %29 = arith.addf %26, %28 : vector<16x32xf32>
    %c0_17 = arith.constant 0 : index
    %c0_18 = arith.constant 0 : index
    %30 = vector.load %arg8[%c0_17, %c0_18] : memref<16x32xf32, #tpu.memory_space<vmem>>, vector<16x32xf32>
    tpu.vector_store %arg8[%c0_17, %c0_18], %29 {strides = array<i32>} : memref<16x32xf32, #tpu.memory_space<vmem>>, vector<16x32xf32>,
    return
  }
  func.func @transform_0(%arg0: i32) -> (i32, i32) {
    %c0_i32 = arith.constant 0 : i32
    %c0_i32_0 = arith.constant 0 : i32
    return %arg0, %c0_i32 : i32, i32
  }
  func.func @transform_1(%arg0: i32) -> (i32, i32) {
    %c0_i32 = arith.constant 0 : i32
    %c0_i32_0 = arith.constant 0 : i32
    %c0_i32_1 = arith.constant 0 : i32
    return %c0_i32, %c0_i32_0 : i32, i32
  }
  func.func @transform_2(%arg0: i32) -> (i32, i32) {
    %c0_i32 = arith.constant 0 : i32
    %c0_i32_0 = arith.constant 0 : i32
    %c0_i32_1 = arith.constant 0 : i32
    return %c0_i32, %c0_i32_0 : i32, i32
  }
  func.func @transform_3(%arg0: i32) -> (i32, i32) {
    %c0_i32 = arith.constant 0 : i32
    %c0_i32_0 = arith.constant 0 : i32
    %c0_i32_1 = arith.constant 0 : i32
    return %c0_i32, %c0_i32_0 : i32, i32
  }
  func.func @transform_4(%arg0: i32) -> (i32, i32) {
    %c0_i32 = arith.constant 0 : i32
    %c0_i32_0 = arith.constant 0 : i32
    %c0_i32_1 = arith.constant 0 : i32
    return %c0_i32, %c0_i32_0 : i32, i32
  }
  func.func @transform_5(%arg0: i32) -> (i32, i32) {
    %c0_i32 = arith.constant 0 : i32
    %c0_i32_0 = arith.constant 0 : i32
    %c0_i32_1 = arith.constant 0 : i32
    return %c0_i32, %c0_i32_0 : i32, i32
  }
  func.func @transform_6(%arg0: i32) -> (i32, i32) {
    %c0_i32 = arith.constant 0 : i32
    %c0_i32_0 = arith.constant 0 : i32
    %c0_i32_1 = arith.constant 0 : i32
    return %c0_i32, %c0_i32_0 : i32, i32
  }
  func.func @transform_7(%arg0: i32) -> (i32, i32) {
    %c0_i32 = arith.constant 0 : i32
    %c0_i32_0 = arith.constant 0 : i32
    return %arg0, %c0_i32 : i32, i32
  }
}

</mosaic_0001>

<bundles_post_ra>
// kernel: encoder_ama_forward.14
= control target key start
LH: loop header
LB: loop body
LE: loop exit
PB: predicated region body
PF: predicated region fallthrough
CT: control target
= control target key end

     0   :  { %v229_v0 = vmov 0.0   ;;  %vm230_vm0 = vmmov 0   ;;  %vm43_vm1 = vcmask 261120   ;;  %vm118_vm2 = vcmask 523264   ;;  %s338_s1 = inlined_call_operand.vmem [shape: f32[32,64], index: 1, kind: input, shape index: {}]   ;;  %s339_s0 = inlined_call_operand.vmem [shape: f32[16,32], index: 0, kind: input, shape index: {}]   ;;  %s340_s3 = inlined_call_operand.vmem [shape: f32[64,32], index: 3, kind: input, shape index: {}]   ;;  %s341_s2 = inlined_call_operand.vmem [shape: f32[1,64], index: 2, kind: input, shape index: {}]   ;;  %s342_s4 = inlined_call_operand.vmem [shape: f32[1,32], index: 4, kind: input, shape index: {}]   ;;  %s343_s5 = inlined_call_operand.vmem [shape: f32[1,32], index: 5, kind: input, shape index: {}]   ;;  %s344_s6 = inlined_call_operand.vmem [shape: f32[1,32], index: 6, kind: input, shape index: {}]   ;;  %s345_s7 = inlined_call_operand.vmem [shape: f32[16,32], index: 7, kind: output, shape index: {}]  }
   0x1   :  { %203 = vmatprep.subr.bf16.mxu0 %v229_v0  ;;  %v30_v1 = vld [vmem:[%s338_s1] sm:$0xff]  ;;  %v31_v2 = vld [vmem:[%s338_s1 + $0x8] sm:$0xff]  ;;  %v32_v3 = vld [vmem:[%s338_s1 + $0x10] sm:$0xff]  ;;  %207 = vmatprep.mubr.msk.bf16.mxu0 %vm230_vm0, %v229_v0 }
   0x2   :  { %v34_v4 = vpack.c.bf16 %v31_v2, %v30_v1  ;;  %v33_v5 = vld [vmem:[%s338_s1 + $0x18] sm:$0xff]  ;;  %211 = vmatprep.subr.bf16.mxu1 %v229_v0  ;;  %219 = vmatprep.mubr.msk.bf16.mxu1 %vm230_vm0, %v229_v0  ;;  %v27_v7 = vld [vmem:[%s339_s0] sm:$0xff]  ;;  %v289_v8 = vld [vmem:[%s339_s0 + $0x8] sm:$0xff] }
   0x3   :  { %v35_v6 = vpack.c.bf16 %v33_v5, %v32_v3  ;;  %v29_v9 = vpack.c.bf16 %v289_v8, %v27_v7  ;;  %v99_v10 = vld [vmem:[%s340_s3] sm:$0xff]  ;;  %v100_v11 = vld [vmem:[%s340_s3 + $0x8] sm:$0xff]  ;;  %v101_v13 = vld [vmem:[%s340_s3 + $0x10] sm:$0xff] }
   0x4   :  { %204 = vmatpush3.bf16.msra.mxu0 %v34_v4  ;;  %v107_v12 = vpack.c.bf16 %v100_v11, %v99_v10  ;;  %v102_v14 = vld [vmem:[%s340_s3 + $0x18] sm:$0xff]  ;;  %v103_v16 = vld [vmem:[%s340_s3 + $0x20] sm:$0xff]  ;;  %v104_v17 = vld [vmem:[%s340_s3 + $0x28] sm:$0xff] }
   0x5   :  { %205 = vmatprep.subr.bf16.mxu0 %v229_v0  ;;  %v108_v15 = vpack.c.bf16 %v102_v14, %v101_v13  ;;  %v109_v18 = vpack.c.bf16 %v104_v17, %v103_v16  ;;  %v105_v19 = vld [vmem:[%s340_s3 + $0x30] sm:$0xff]  ;;  %v106_v20 = vld [vmem:[%s340_s3 + $0x38] sm:$0xff]  ;;  %v189_v22 = vld [vmem:[%s341_s2] ss:$0 sm:$0xff] }
   0x6   :  { %212 = vmatpush3.bf16.msra.mxu1 %v107_v12  ;;  %v110_v21 = vpack.c.bf16 %v106_v20, %v105_v19  ;;  %v191_v40 = vld [vmem:[%s342_s4] ss:$0 sm:$0xff] }
   0x7   :  { %213 = vmatprep.subr.bf16.mxu1 %v229_v0  ;;  %v193_v44 = vld [vmem:[%s343_s5] ss:$0 sm:$0xff] }
   0x8   :  { %206 = vmatpush3.bf16.msra.mxu0 %v35_v6  ;;  %v194_v49 = vld [vmem:[%s344_s6] ss:$0 sm:$0xff] }
   0xa   :  { %214 = vmatpush3.bf16.msra.mxu1 %v108_v15 }
   0xb   :  { %208 = vmatmul.mubr.msk.bf16.vlgmr.msra.gmra.mrb[0].mxu0 %vm43_vm1, %v29_v9  ;;  %215 = vmatprep.subr.bf16.mxu1 %v229_v0 }
   0xe   :  { %216 = vmatpush3.bf16.msra.mxu1 %v109_v18 }
   0xf   :  { %217 = vmatprep.subr.bf16.mxu1 %v229_v0 }
  0x12   :  { %218 = vmatpush3.bf16.msra.mxu1 %v110_v21 }
  0xde   :  { %v81_v23 = vpop.f32.mrb[0].mxu0 }
  0xdf   :  { %v82_v24 = vadd.f32 %v189_v22, %v81_v23  ;;  %v209_v25 = vpop.f32.mrb[1].mxu0 }
  0xe0   :  { %v84_v26 = vpop.f32.mrb[2].mxu0 }
  0xe1   :  { %v90_v27 = vmul.f32 0.70710677, %v82_v24  ;;  %v85_v28 = vadd.f32 %v189_v22, %v84_v26  ;;  %v210_v29 = vpop.f32.mrb[3].mxu0  ;;  %v88_v34 = vmul.f32 0.5, %v82_v24 }
  0xe3   :  { %225 = verf.f32 %v90_v27  ;;  %v91_v30 = vmul.f32 0.70710677, %v85_v28  ;;  %v89_v35 = vmul.f32 0.5, %v85_v28 }
  0xe5   :  { %227 = verf.f32 %v91_v30 }
  0xed   :  { %v226_v31 = vpop.eup %225 }
  0xee   :  { %v94_v32 = vadd.f32 1.0, %v226_v31 }
  0xef   :  { %v228_v33 = vpop.eup %227 }
  0xf0   :  { %v95_v36 = vadd.f32 1.0, %v228_v33  ;;  %v96_v37 = vmul.f32 %v94_v32, %v88_v34 }
  0xf2   :  { %v97_v38 = vmul.f32 %v95_v36, %v89_v35 }
  0xf4   :  { %v98_v39 = vpack.c.bf16 %v97_v38, %v96_v37 }
  0xf6   :  { %220 = vmatmul.mubr.msk.bf16.vlgmr.msra.gmra.mrb[0].mxu1 %vm118_vm2, %v98_v39 }
 0x1c9   :  { %v156_v41 = vpop.f32.mrb[0].mxu1 }
 0x1ca   :  { %v157_v42 = vadd.f32 %v191_v40, %v156_v41  ;;  %v221_v43 = vpop.f32.mrb[1].mxu1 }
 0x1cb   :  { %v159_v45 = vpop.f32.mrb[2].mxu1 }
 0x1cc   :  { %v163_v46 = vadd.f32 %v157_v42, %v27_v7  ;;  %v160_v47 = vadd.f32 %v191_v40, %v159_v45  ;;  %v222_v48 = vpop.f32.mrb[3].mxu1 }
 0x1ce   :  { %v172_v50 = vmul.f32 %v193_v44, %v163_v46  ;;  %v164_v51 = vadd.f32 %v160_v47, %v289_v8 }
 0x1d0   :  { %v181_v52 = vadd.f32 %v194_v49, %v172_v50  ;;  %v173_v53 = vmul.f32 %v193_v44, %v164_v51 }
 0x1d2   :  { %183 = vst.msk [vmem:[%s345_s7] sm:$0xff] %vm43_vm1, %v181_v52  ;;  %v182_v54 = vadd.f32 %v194_v49, %v173_v53 }
 0x1d4   :  { %184 = vst.msk [vmem:[%s345_s7 + $0x8] sm:$0xff] %vm43_vm1, %v182_v54 }

// kernel: encoder_ama_forward.11
= control target key start
LH: loop header
LB: loop body
LE: loop exit
PB: predicated region body
PF: predicated region fallthrough
CT: control target
= control target key end

     0   :  { %8 = vsyncpa [#allocation4], 0  ;;  %s160_s12 = smov [#allocation3]   ;;  %s224_s0 = inlined_call_operand.hbm [shape: f32[16,32], index: 0, kind: input, shape index: {}]   ;;  %s225_s1 = inlined_call_operand.vmem [shape: f32[32,96], index: 1, kind: input, shape index: {}]   ;;  %s226_s2 = inlined_call_operand.vmem [shape: f32[1,96], index: 2, kind: input, shape index: {}]   ;;  %s227_s3 = inlined_call_operand.vmem [shape: f32[16,96], index: 3, kind: output, shape index: {}]  }
   0x1   :  { %s14_s13 = sshll.u32 %s160_s12, 4  ;;  %s136_s16 = scalar_lea.hbm %s224_s0, 256  ;;  %s15_s13 = int_to_ptr.vmem [resolvable:$true] %s14_s13 }
   0x2   :  { %p137_p0 = scmp.ne.s32.totalorder %s224_s0, %s136_s16  ;;  %p140_p1 = scmp.lt.u32.totalorder %s136_s16, %s224_s0 }
   0x4   :  { %p142_p2 = pnand %p140_p1, %p137_p0 }
   0x6   :  { %145 = shalt.err (!%p142_p2)
}
   0x7   :  { %s146_s21 = scalar_lea.vmem %s15_s13, 256  ;;  %p151_p4 = scmp.lt.s32.totalorder %s15_s13, %s15_s13 }
   0x8   :  { %p147_p3 = scmp.ne.s32.totalorder %s15_s13, %s146_s21  ;;  %p152_p5 = scmp.lt.s32.totalorder %s146_s21, %s146_s21 }
   0xa   :  { %p153_p6 = por %p152_p5, %p151_p4 }
   0xc   :  { %p154_p7 = pnand %p153_p6, %p147_p3 }
   0xe   :  { %157 = shalt.err (!%p154_p7)
}
   0xf   :  { %s161_s22 = smov 128   ;;  %s162_s23 = smov 8  }
  0x10   :  { %20 = dma.hbm_to_vmem [thread:$0]  %s224_s0, 256, %s15_s13, [#allocation4], %s161_s22, %s161_s22, %s162_s23  }
  0x11   :  { %158 = dma.done.wait [#allocation4], 256  }
  0x12   :  { %159 = vsyncadd [#allocation4], 4294967040  ;;  %vm33_vm0 = vcmask 785408   ;;  %v163_v0 = vmov 0.0   ;;  %vm164_vm1 = vmmov 0   ;;  %v41_v1 = vld [vmem:[%s225_s1] sm:$0xff] }
  0x13   :  { %34 = vst.msk [vmem:[#allocation2] sm:$0xff] %vm33_vm0, %v163_v0  ;;  %35 = vst.msk [vmem:[#allocation2 + $0x8] sm:$0xff] %vm33_vm0, %v163_v0  ;;  %123 = vmatprep.subr.bf16.mxu0 %v163_v0  ;;  %127 = vmatprep.mubr.msk.bf16.mxu0 %vm164_vm1, %v163_v0  ;;  %v42_v2 = vld [vmem:[%s225_s1 + $0x8] sm:$0xff]  ;;  %v43_v3 = vld [vmem:[%s225_s1 + $0x10] sm:$0xff]  ;;  %vm47_vm2 = vcmask 261120  }
  0x14   :  { %v45_v4 = vpack.c.bf16 %v42_v2, %v41_v1  ;;  %v44_v5 = vld [vmem:[%s225_s1 + $0x18] sm:$0xff]  ;;  %v38_v7 = vld [vmem:[#allocation3] sm:$0xff]  ;;  %v119_v18 = vld [vmem:[%s226_s2] ss:$0 sm:$0xff] }
  0x15   :  { %v46_v6 = vpack.c.bf16 %v44_v5, %v43_v3  ;;  %v39_v8 = vld [vmem:[#allocation3 + $0x8] sm:$0xff] }
  0x16   :  { %124 = vmatpush3.bf16.msra.mxu0 %v45_v4  ;;  %v40_v9 = vpack.c.bf16 %v39_v8, %v38_v7 }
  0x17   :  { %125 = vmatprep.subr.bf16.mxu0 %v163_v0 }
  0x1a   :  { %126 = vmatpush3.bf16.msra.mxu0 %v46_v6  ;;  %v36_v10 = vld [vmem:[#allocation2] sm:$0xff]  ;;  %v37_v12 = vld [vmem:[#allocation2 + $0x8] sm:$0xff] }
  0x1d   :  { %128 = vmatmul.mubr.msk.bf16.vlgmr.msra.gmra.mrb[0].mxu0 %vm47_vm2, %v40_v9 }
  0xf0   :  { %v85_v11 = vpop.f32.mrb[0].mxu0 }
  0xf1   :  { %v92_v13 = vadd.f32 %v85_v11, %v36_v10  ;;  %v129_v14 = vpop.f32.mrb[1].mxu0 }
  0xf2   :  { %v88_v15 = vpop.f32.mrb[2].mxu0 }
  0xf3   :  { %95 = vst.msk [vmem:[#allocation2] sm:$0xff] %vm33_vm0, %v92_v13  ;;  %v93_v16 = vadd.f32 %v88_v15, %v37_v12  ;;  %v130_v17 = vpop.f32.mrb[3].mxu0 }
  0xf5   :  { %96 = vst.msk [vmem:[#allocation2 + $0x8] sm:$0xff] %vm33_vm0, %v93_v16 }
  0xfa   :  { %v100_v19 = vld [vmem:[#allocation2] sm:$0xff] }
  0xfb   :  { %v109_v20 = vadd.f32 %v119_v18, %v100_v19 }
  0xfc   :  { %v101_v21 = vld [vmem:[#allocation2 + $0x8] sm:$0xff] }
  0xfd   :  { %111 = vst.msk [vmem:[%s227_s3] sm:$0xff] %vm33_vm0, %v109_v20  ;;  %v110_v22 = vadd.f32 %v119_v18, %v101_v21 }
  0xff   :  { %112 = vst.msk [vmem:[%s227_s3 + $0x8] sm:$0xff] %vm33_vm0, %v110_v22 }
 0x100   :  { %117 = vsyncpa [#allocation4], 1 }

// kernel: encoder_ama_forward.13
= control target key start
LH: loop header
LB: loop body
LE: loop exit
PB: predicated region body
PF: predicated region fallthrough
CT: control target
= control target key end

     0   :  { %vm28_vm0 = vcmask 261120   ;;  %v150_v0 = vmov 0.0   ;;  %vm151_vm1 = vmmov 0   ;;  %s233_s1 = inlined_call_operand.vmem [shape: f32[32,32], index: 1, kind: input, shape index: {}]   ;;  %s234_s0 = inlined_call_operand.vmem [shape: f32[16,32], index: 0, kind: input, shape index: {}]   ;;  %s235_s2 = inlined_call_operand.vmem [shape: f32[1,32], index: 2, kind: input, shape index: {}]   ;;  %s236_s3 = inlined_call_operand.vmem [shape: f32[16,32], index: 3, kind: input, shape index: {}]   ;;  %s237_s4 = inlined_call_operand.vmem [shape: f32[1,32], index: 4, kind: input, shape index: {}]   ;;  %s238_s5 = inlined_call_operand.vmem [shape: f32[1,32], index: 5, kind: input, shape index: {}]   ;;  %s239_s6 = inlined_call_operand.vmem [shape: f32[16,32], index: 6, kind: output, shape index: {}]  }
   0x1   :  { %140 = vmatprep.subr.bf16.mxu0 %v150_v0  ;;  %v36_v1 = vld [vmem:[%s233_s1] sm:$0xff]  ;;  %v37_v2 = vld [vmem:[%s233_s1 + $0x8] sm:$0xff]  ;;  %v38_v3 = vld [vmem:[%s233_s1 + $0x10] sm:$0xff]  ;;  %144 = vmatprep.mubr.msk.bf16.mxu0 %vm151_vm1, %v150_v0  ;;  %29 = vst.msk [vmem:[#allocation2] sm:$0xff] %vm28_vm0, %v150_v0 }
   0x2   :  { %30 = vst.msk [vmem:[#allocation2 + $0x8] sm:$0xff] %vm28_vm0, %v150_v0  ;;  %v40_v4 = vpack.c.bf16 %v37_v2, %v36_v1  ;;  %v39_v5 = vld [vmem:[%s233_s1 + $0x18] sm:$0xff]  ;;  %v33_v7 = vld [vmem:[%s234_s0] sm:$0xff]  ;;  %v34_v8 = vld [vmem:[%s234_s0 + $0x8] sm:$0xff] }
   0x3   :  { %v41_v6 = vpack.c.bf16 %v39_v5, %v38_v3  ;;  %v35_v9 = vpack.c.bf16 %v34_v8, %v33_v7  ;;  %v134_v18 = vld [vmem:[%s235_s2] ss:$0 sm:$0xff]  ;;  %v106_v24 = vld [vmem:[%s236_s3 + $0x8] sm:$0xff] }
   0x4   :  { %141 = vmatpush3.bf16.msra.mxu0 %v40_v4  ;;  %v105_v20 = vld [vmem:[%s236_s3] sm:$0xff] }
   0x5   :  { %142 = vmatprep.subr.bf16.mxu0 %v150_v0  ;;  %v135_v22 = vld [vmem:[%s237_s4] ss:$0 sm:$0xff] }
   0x6   :  { %v136_v27 = vld [vmem:[%s238_s5] ss:$0 sm:$0xff] }
   0x8   :  { %143 = vmatpush3.bf16.msra.mxu0 %v41_v6  ;;  %v31_v10 = vld [vmem:[#allocation2] sm:$0xff] }
   0x9   :  { %v32_v12 = vld [vmem:[#allocation2 + $0x8] sm:$0xff] }
   0xb   :  { %145 = vmatmul.mubr.msk.bf16.vlgmr.msra.gmra.mrb[0].mxu0 %vm28_vm0, %v35_v9 }
  0xde   :  { %v80_v11 = vpop.f32.mrb[0].mxu0 }
  0xdf   :  { %v87_v13 = vadd.f32 %v80_v11, %v31_v10  ;;  %v146_v14 = vpop.f32.mrb[1].mxu0 }
  0xe0   :  { %v83_v15 = vpop.f32.mrb[2].mxu0 }
  0xe1   :  { %89 = vst.msk [vmem:[#allocation2] sm:$0xff] %vm28_vm0, %v87_v13  ;;  %v88_v16 = vadd.f32 %v83_v15, %v32_v12  ;;  %v147_v17 = vpop.f32.mrb[3].mxu0 }
  0xe3   :  { %90 = vst.msk [vmem:[#allocation2 + $0x8] sm:$0xff] %vm28_vm0, %v88_v16 }
  0xe8   :  { %v94_v19 = vld [vmem:[#allocation2] sm:$0xff] }
  0xe9   :  { %v103_v21 = vadd.f32 %v134_v18, %v94_v19 }
  0xea   :  { %v95_v23 = vld [vmem:[#allocation2 + $0x8] sm:$0xff] }
  0xeb   :  { %v107_v25 = vadd.f32 %v105_v20, %v103_v21  ;;  %v104_v26 = vadd.f32 %v134_v18, %v95_v23 }
  0xed   :  { %v116_v28 = vmul.f32 %v135_v22, %v107_v25  ;;  %v108_v29 = vadd.f32 %v106_v24, %v104_v26 }
  0xef   :  { %v125_v30 = vadd.f32 %v136_v27, %v116_v28  ;;  %v117_v31 = vmul.f32 %v135_v22, %v108_v29 }
  0xf1   :  { %127 = vst.msk [vmem:[%s239_s6] sm:$0xff] %vm28_vm0, %v125_v30  ;;  %v126_v32 = vadd.f32 %v136_v27, %v117_v31 }
  0xf3   :  { %128 = vst.msk [vmem:[%s239_s6 + $0x8] sm:$0xff] %vm28_vm0, %v126_v32 }

// kernel: encoder_ama_forward.12
= control target key start
LH: loop header
LB: loop body
LE: loop exit
PB: predicated region body
PF: predicated region fallthrough
CT: control target
= control target key end

     0   :  { %s787_s6 = smov 0   ;;  %s877_s0 = inlined_call_operand.vmem [shape: f32[2,8,96], index: 0, kind: input, shape index: {}]   ;;  %s878_s1 = inlined_call_operand.vmem [shape: f32[2,8,32], index: 1, kind: output, shape index: {}]  }
   0x1 LB: > { %s632_s7 = sadd.s32 4294967295, %s759_s6   ;;  %p636_p0 = scmp.ge.s32.totalorder %s759_s6, 1  ;;  %s759_s6 = sphi %s787_s6, %s11_s6  }
   0x2   : > { %p86_p1 = scmp.lt.s32.totalorder %s759_s6, 3 }
   0x4   : > { %p87_p2 = pnand %p636_p0, %p86_p1 }
   0x5   : > { %p104_p3 = scmp.lt.s32.totalorder (!%p87_p2), %s632_s7, 1  ;;  %v761_v0 = vmov (!%p87_p2), 0.0   ;;  %vm762_vm0 = vmmov (!%p87_p2), 0   ;;  %s763_s12 = smov (!%p87_p2), 96   ;;  %vm118_vm1 = vcmask (!%p87_p2), 64512   ;;  %vm183_vm2 = vcmask (!%p87_p2), 1043456  }
   0x6   : > { %90 = sbr.rel (%p87_p2) target bundleno = 1600 (0x640), region = 24  ;;  %665 = vmatprep.subr.bf16.mxu0 (!%p87_p2), %v761_v0  ;;  %667 = vmatprep.mubr.msk.bf16.mxu0 (!%p87_p2), %vm762_vm0, %v761_v0  ;;  %s764_s13 = smov (!%p87_p2), 64   ;;  %vm573_vm3 = vcmask (!%p87_p2), 130048   ;;  %vm575_vm4 = vcmask (!%p87_p2), 195584   ;;  %vm577_vm5 = vcmask (!%p87_p2), 261120  }
   0x7   : > { %671 = vmatprep.subr.bf16.mxu1 (!%p87_p2), %v761_v0  ;;  %673 = vmatprep.mubr.msk.bf16.mxu1 (!%p87_p2), %vm762_vm0, %v761_v0  ;;  %s765_s14 = smov (!%p87_p2), 88   ;;  %s766_s15 = smov (!%p87_p2), 72  }
   0x8   : > { %s767_s16 = smov (!%p87_p2), 120   ;;  %s768_s17 = smov (!%p87_p2), 80  }
   0x9   : > { %s769_s18 = smov (!%p87_p2), 112   ;;  %s770_s19 = smov (!%p87_p2), 104  }
   0xa   : > { %s771_s20 = smov (!%p87_p2), 56   ;;  %s772_s21 = smov (!%p87_p2), 48  }
   0xb   : > { %s773_s22 = smov (!%p87_p2), 40   ;;  %s774_s23 = smov (!%p87_p2), 8  }
   0xc   : > { %s775_s24 = smov (!%p87_p2), 16   ;;  %s776_s25 = smov (!%p87_p2), 24  }
   0xd   : > { %s880_s7 = smov (!%p104_p3, %s632_s7), 1 }
   0xe   : > { %s637_s8 = sshll.u32 %s880_s7, 3 }
   0xf   : > { %s107_s11 = scalar_lea.vmem %s877_s0, %s637_s8  ;;  %s111_s28 = scalar_lea.vmem %s878_s1, %s637_s8 }
  0x10   : > { %v113_v1 = vld [vmem:[%s107_s11] sm:$0xff] }
  0x11   : > { %v809_v2 = vpack.c.bf16 %v113_v1, %v113_v1 }
  0x13   : > { %116 = vrot.lane.b32.xlu0 %v809_v2, %s763_s12  ;;  %178 = vrot.lane.b32.xlu1 %v809_v2, %s764_s13 }
  0x17   : > { %229 = vrot.lane.b32.xlu1 %v809_v2, %s765_s14 }
  0x85   : > { %v117_v3 = vpop.permute.xlu0 %116  ;;  %v179_v11 = vpop.permute.xlu1 %178 }
  0x86   : > { %v123_v4 = vsel %vm118_vm1, %v117_v3, 0  ;;  %v185_v12 = vsel %vm183_vm2, %v179_v11, 0 }
  0x87   : > { %666 = vmatpush3.bf16.xpose.msra.mxu0 %v123_v4  ;;  %672 = vmatpush3.bf16.msra.mxu1 %v185_v12 }
  0x88   : > { %683 = vmatprep.subr.bf16.mxu0 %v761_v0  ;;  %677 = vmatprep.subr.bf16.mxu1 %v761_v0 }
  0x89   : > { %v230_v18 = vpop.permute.xlu1 %229 }
  0x8a   : > { %v235_v24 = vsel %vm118_vm1, %v230_v18, 0 }
  0x8e   : > { %668 = vmatmul.mubr.msk.bf16.vlgmr.msra.gmra.mrb[0].mxu0 %vm118_vm1, %v809_v2 }
  0x8f   : > { %685 = vmatprep.mubr.msk.bf16.mxu0 %vm762_vm0, %v761_v0 }
 0x161   : > { %v159_v5 = vpop.f32.mrb[0].mxu0 }
 0x162   : > { %v165_v6 = vmul.f32 0.35355338, %v159_v5  ;;  %v669_v7 = vpop.f32.mrb[1].mxu0 }
 0x163   : > { %v162_v8 = vpop.f32.mrb[2].mxu0 }
 0x164   : > { %v670_v9 = vpop.f32.mrb[3].mxu0  ;;  %v166_v10 = vsel %vm118_vm1, %v165_v6, -inf }
 0x165   : > { %167 = vmax.xlane.f32.xlu0 %v166_v10 }
 0x17b   : > { %451 = vrot.lane.b32.xlu0 %v809_v2, %s766_s15 }
 0x1f2   : > { %v168_v13 = vpop.xlane.xlu0 %167 }
 0x1f3   : > { %v169_v14 = vsub.f32 %v165_v6, %v168_v13 }
 0x1f5   : > { %v170_v15 = vmul.f32 1.442695, %v169_v14 }
 0x1f6   : > { %v452_v27 = vpop.permute.xlu0 %451 }
 0x1f7   : > { %737 = vpow2.f32 %v170_v15  ;;  %v457_v29 = vsel %vm118_vm1, %v452_v27, 0 }
 0x201   : > { %v738_v16 = vpop.eup %737 }
 0x202   : > { %v172_v17 = vsel %vm118_vm1, %v738_v16, 0.0 }
 0x203   : > { %173 = vadd.xlane.f32.xlu1 %v172_v17 }
 0x214   : > { %227 = vrot.lane.b32.xlu1 %v809_v2, %s767_s16 }
 0x218   : > { %340 = vrot.lane.b32.xlu1 %v809_v2, %s768_s17 }
 0x21c   : > { %338 = vrot.lane.b32.xlu1 %v809_v2, %s769_s18 }
 0x220   : > { %449 = vrot.lane.b32.xlu1 %v809_v2, %s770_s19 }
 0x290   : > { %v174_v19 = vpop.xlane.xlu1 %173 }
 0x291   : > { %739 = vrcp.f32 %v174_v19 }
 0x294   : > { %v228_v22 = vpop.permute.xlu1 %227 }
 0x298   : > { %v341_v25 = vpop.permute.xlu1 %340 }
 0x299   : > { %v346_v26 = vsel %vm118_vm1, %v341_v25, 0 }
 0x29b   : > { %v740_v20 = vpop.eup %739 }
 0x29c   : > { %v176_v21 = vmul.f32 %v740_v20, %v738_v16  ;;  %v339_v28 = vpop.permute.xlu1 %338 }
 0x29e   : > { %v177_v23 = vpack.c.bf16 %v176_v21, %v176_v21 }
 0x2a0   : > { %674 = vmatmul.mubr.msk.bf16.vlgmr.msra.gmra.mrb[0].mxu1 %vm118_vm1, %v177_v23  ;;  %v450_v30 = vpop.permute.xlu1 %449 }
 0x2a1   : > { %678 = vmatpush3.bf16.xpose.msra.mxu1 %v235_v24  ;;  %679 = vmatprep.mubr.msk.bf16.mxu1 %vm762_vm0, %v761_v0 }
 0x2a2   : > { %689 = vmatprep.subr.bf16.mxu1 %v761_v0 }
 0x2a8   : > { %680 = vmatmul.mubr.msk.bf16.vlgmr.msra.gmra.mrb[4].mxu1 %vm118_vm1, %v228_v22 }
 0x2a9   : > { %690 = vmatpush3.bf16.xpose.msra.mxu1 %v346_v26  ;;  %691 = vmatprep.mubr.msk.bf16.mxu1 %vm762_vm0, %v761_v0 }
 0x2aa   : > { %701 = vmatprep.subr.bf16.mxu1 %v761_v0 }
 0x2b0   : > { %692 = vmatmul.mubr.msk.bf16.vlgmr.msra.gmra.mrb[8].mxu1 %vm118_vm1, %v339_v28 }
 0x2b1   : > { %702 = vmatpush3.bf16.xpose.msra.mxu1 %v457_v29  ;;  %703 = vmatprep.mubr.msk.bf16.mxu1 %vm762_vm0, %v761_v0 }
 0x2b8   : > { %704 = vmatmul.mubr.msk.bf16.vlgmr.msra.gmra.mrb[12].mxu1 %vm118_vm1, %v450_v30 }
 0x373   : > { %v844_v31 = vpop.f32.mrb[0].mxu1 }
 0x374   : > { %v675_v32 = vpop.f32.mrb[1].mxu1 }
 0x375   : > { %v224_v33 = vpop.f32.mrb[2].mxu1 }
 0x376   : > { %v676_v34 = vpop.f32.mrb[3].mxu1 }
 0x37b   : > { %v271_v35 = vpop.f32.mrb[4].mxu1 }
 0x37c   : > { %v277_v36 = vmul.f32 0.35355338, %v271_v35  ;;  %v681_v37 = vpop.f32.mrb[5].mxu1 }
 0x37d   : > { %v274_v38 = vpop.f32.mrb[6].mxu1 }
 0x37e   : > { %v682_v39 = vpop.f32.mrb[7].mxu1  ;;  %v278_v40 = vsel %vm118_vm1, %v277_v36, -inf }
 0x37f   : > { %279 = vmax.xlane.f32.xlu1 %v278_v40 }
 0x383   : > { %v382_v41 = vpop.f32.mrb[8].mxu1 }
 0x384   : > { %v388_v42 = vmul.f32 0.35355338, %v382_v41  ;;  %v693_v43 = vpop.f32.mrb[9].mxu1 }
 0x385   : > { %v385_v44 = vpop.f32.mrb[10].mxu1 }
 0x386   : > { %v389_v45 = vsel %vm118_vm1, %v388_v42, -inf  ;;  %v694_v46 = vpop.f32.mrb[11].mxu1 }
 0x387   : > { %390 = vmax.xlane.f32.xlu0 %v389_v45 }
 0x38b   : > { %v493_v47 = vpop.f32.mrb[12].mxu1 }
 0x38c   : > { %v499_v48 = vmul.f32 0.35355338, %v493_v47  ;;  %v705_v49 = vpop.f32.mrb[13].mxu1 }
 0x38d   : > { %v496_v50 = vpop.f32.mrb[14].mxu1 }
 0x38e   : > { %v500_v51 = vsel %vm118_vm1, %v499_v48, -inf  ;;  %v706_v52 = vpop.f32.mrb[15].mxu1 }
 0x38f   : > { %501 = vmax.xlane.f32.xlu1 %v500_v51 }
 0x40c   : > { %v280_v53 = vpop.xlane.xlu1 %279 }
 0x40d   : > { %v281_v54 = vsub.f32 %v277_v36, %v280_v53 }
 0x40f   : > { %v282_v55 = vmul.f32 1.442695, %v281_v54 }
 0x411   : > { %741 = vpow2.f32 %v282_v55 }
 0x414   : > { %v391_v63 = vpop.xlane.xlu0 %390 }
 0x415   : > { %v392_v1 = vsub.f32 %v388_v42, %v391_v63 }
 0x417   : > { %v393_v3 = vmul.f32 1.442695, %v392_v1 }
 0x41b   : > { %v742_v56 = vpop.eup %741 }
 0x41c   : > { %v502_v57 = vpop.xlane.xlu1 %501  ;;  %v284_v58 = vsel %vm118_vm1, %v742_v56, 0.0 }
 0x41d   : > { %v503_v59 = vsub.f32 %v499_v48, %v502_v57  ;;  %285 = vadd.xlane.f32.xlu1 %v284_v58 }
 0x41f   : > { %v504_v60 = vmul.f32 1.442695, %v503_v59 }
 0x421   : > { %743 = vpow2.f32 %v504_v60 }
 0x422   : > { %745 = vpow2.f32 %v393_v3 }
 0x42b   : > { %v744_v61 = vpop.eup %743 }
 0x42c   : > { %v506_v62 = vsel %vm118_vm1, %v744_v61, 0.0  ;;  %v746_v4 = vpop.eup %745 }
 0x42d   : > { %507 = vadd.xlane.f32.xlu0 %v506_v62  ;;  %v395_v5 = vsel %vm118_vm1, %v746_v4, 0.0 }
 0x42e   : > { %290 = vrot.lane.b32.xlu1 %v809_v2, %s771_s20 }
 0x443   : > { %401 = vrot.lane.b32.xlu0 %v809_v2, %s772_s21 }
 0x452   : > { %396 = vadd.xlane.f32.xlu1 %v395_v5 }
 0x463   : > { %512 = vrot.lane.b32.xlu1 %v809_v2, %s773_s22 }
 0x4aa   : > { %v286_v6 = vpop.xlane.xlu1 %285 }
 0x4ab   : > { %747 = vrcp.f32 %v286_v6 }
 0x4ae   : > { %v291_v7 = vpop.permute.xlu1 %290 }
 0x4af   : > { %v296_v8 = vsel %vm183_vm2, %v291_v7, 0 }
 0x4b0   : > { %684 = vmatpush3.bf16.msra.mxu0 %v296_v8 }
 0x4b1   : > { %695 = vmatprep.subr.bf16.mxu0 %v761_v0 }
 0x4b5   : > { %v748_v9 = vpop.eup %747 }
 0x4b6   : > { %v288_v10 = vmul.f32 %v748_v9, %v742_v56 }
 0x4b8   : > { %v289_v11 = vpack.c.bf16 %v288_v10, %v288_v10 }
 0x4ba   : > { %686 = vmatmul.mubr.msk.bf16.vlgmr.msra.gmra.mrb[4].mxu0 %vm118_vm1, %v289_v11  ;;  %v508_v12 = vpop.xlane.xlu0 %507 }
 0x4bb   : > { %697 = vmatprep.mubr.msk.bf16.mxu0 %vm762_vm0, %v761_v0 }
 0x4be   : > { %v402_v13 = vpop.permute.xlu0 %401 }
 0x4bf   : > { %v407_v2 = vsel %vm183_vm2, %v402_v13, 0 }
 0x4c0   : > { %696 = vmatpush3.bf16.msra.mxu0 %v407_v2 }
 0x4c1   : > { %707 = vmatprep.subr.bf16.mxu0 %v761_v0 }
 0x4df   : > { %v397_v14 = vpop.xlane.xlu1 %396 }
 0x4e0   : > { %749 = vrcp.f32 %v397_v14 }
 0x4e1   : > { %751 = vrcp.f32 %v508_v12 }
 0x4e3   : > { %v513_v16 = vpop.permute.xlu1 %512 }
 0x4e4   : > { %v518_v18 = vsel %vm183_vm2, %v513_v16, 0 }
 0x4ea   : > { %v750_v15 = vpop.eup %749 }
 0x4eb   : > { %v399_v17 = vmul.f32 %v750_v15, %v746_v4  ;;  %v752_v20 = vpop.eup %751 }
 0x4ec   : > { %v510_v21 = vmul.f32 %v752_v20, %v744_v61 }
 0x4ed   : > { %v400_v19 = vpack.c.bf16 %v399_v17, %v399_v17 }
 0x4ee   : > { %v511_v22 = vpack.c.bf16 %v510_v21, %v510_v21 }
 0x4ef   : > { %698 = vmatmul.mubr.msk.bf16.vlgmr.msra.gmra.mrb[8].mxu0 %vm118_vm1, %v400_v19 }
 0x4f0   : > { %708 = vmatpush3.bf16.msra.mxu0 %v518_v18  ;;  %709 = vmatprep.mubr.msk.bf16.mxu0 %vm762_vm0, %v761_v0 }
 0x4f7   : > { %710 = vmatmul.mubr.msk.bf16.vlgmr.msra.gmra.mrb[12].mxu0 %vm118_vm1, %v511_v22 }
 0x58d   : > { %v332_v23 = vpop.f32.mrb[4].mxu0 }
 0x58e   : > { %561 = vrot.lane.b32.xlu1 %v332_v23, %s774_s23  ;;  %v687_v24 = vpop.f32.mrb[5].mxu0 }
 0x58f   : > { %v335_v25 = vpop.f32.mrb[6].mxu0 }
 0x590   : > { %v688_v26 = vpop.f32.mrb[7].mxu0 }
 0x5c2   : > { %v443_v27 = vpop.f32.mrb[8].mxu0 }
 0x5c3   : > { %565 = vrot.lane.b32.xlu0 %v443_v27, %s775_s24  ;;  %v699_v28 = vpop.f32.mrb[9].mxu0 }
 0x5c4   : > { %v446_v29 = vpop.f32.mrb[10].mxu0 }
 0x5c5   : > { %v700_v30 = vpop.f32.mrb[11].mxu0 }
 0x5ca   : > { %v554_v32 = vpop.f32.mrb[12].mxu0 }
 0x5cb   : > { %569 = vrot.lane.b32.xlu1 %v554_v32, %s776_s25  ;;  %v711_v0 = vpop.f32.mrb[13].mxu0 }
 0x5cc   : > { %v557_v33 = vpop.f32.mrb[14].mxu0 }
 0x5cd   : > { %v712_v34 = vpop.f32.mrb[15].mxu0 }
 0x600   : > { %v562_v35 = vpop.permute.xlu1 %561 }
 0x601   : > { %v572_v37 = vsel %vm118_vm1, %v844_v31, %v562_v35 }
 0x635   : > { %v566_v36 = vpop.permute.xlu0 %565 }
 0x636   : > { %v574_v38 = vsel %vm573_vm3, %v572_v37, %v566_v36 }
 0x63d   : > { %v570_v39 = vpop.permute.xlu1 %569 }
 0x63e   : > { %v576_v40 = vsel %vm575_vm4, %v574_v38, %v570_v39 }
 0x63f   : > { %578 = vst.msk [vmem:[%s111_s28] sm:$0xff] %vm577_vm5, %v576_v40 }
 0x640 PF: > { %s11_s6 = sadd.s32 1, %s759_s6  }
 0x641   : > { %p8_p4 = scmp.ge.s32.totalorder %s11_s6, 4  }
 0x643   :  { %10 = sbr.rel (!%p8_p4) target bundleno = 1 (0x1), region = 54 }

// kernel: encoder_ama_forward.15
= control target key start
LH: loop header
LB: loop body
LE: loop exit
PB: predicated region body
PF: predicated region fallthrough
CT: control target
= control target key end

     0   :  { %v116_v0 = vmov 0.0   ;;  %vm117_vm0 = vmmov 0   ;;  %vm32_vm1 = vcmask 261120   ;;  %s165_s1 = inlined_call_operand.vmem [shape: f32[32,128], index: 1, kind: input, shape index: {}]   ;;  %s166_s0 = inlined_call_operand.vmem [shape: f32[16,32], index: 0, kind: input, shape index: {}]   ;;  %s167_s2 = inlined_call_operand.vmem [shape: f32[1,128], index: 2, kind: input, shape index: {}]   ;;  %s168_s3 = inlined_call_operand.vmem [shape: f32[16,128], index: 3, kind: output, shape index: {}]  }
   0x1   :  { %106 = vmatprep.subr.bf16.mxu0 %v116_v0  ;;  %v26_v1 = vld [vmem:[%s165_s1] sm:$0xff]  ;;  %v27_v2 = vld [vmem:[%s165_s1 + $0x8] sm:$0xff]  ;;  %v28_v3 = vld [vmem:[%s165_s1 + $0x10] sm:$0xff]  ;;  %110 = vmatprep.mubr.msk.bf16.mxu0 %vm117_vm0, %v116_v0 }
   0x2   :  { %v30_v4 = vpack.c.bf16 %v27_v2, %v26_v1  ;;  %v29_v5 = vld [vmem:[%s165_s1 + $0x18] sm:$0xff]  ;;  %v23_v7 = vld [vmem:[%s166_s0] sm:$0xff]  ;;  %v24_v8 = vld [vmem:[%s166_s0 + $0x8] sm:$0xff] }
   0x3   :  { %v31_v6 = vpack.c.bf16 %v29_v5, %v28_v3  ;;  %v25_v9 = vpack.c.bf16 %v24_v8, %v23_v7  ;;  %v102_v10 = vld [vmem:[%s167_s2] ss:$0 sm:$0xff] }
   0x4   :  { %107 = vmatpush3.bf16.msra.mxu0 %v30_v4 }
   0x5   :  { %108 = vmatprep.subr.bf16.mxu0 %v116_v0 }
   0x8   :  { %109 = vmatpush3.bf16.msra.mxu0 %v31_v6 }
   0xb   :  { %111 = vmatmul.mubr.msk.bf16.vlgmr.msra.gmra.mrb[0].mxu0 %vm32_vm1, %v25_v9 }
  0xde   :  { %v70_v11 = vpop.f32.mrb[0].mxu0 }
  0xdf   :  { %v93_v12 = vadd.f32 %v102_v10, %v70_v11  ;;  %v112_v13 = vpop.f32.mrb[1].mxu0 }
  0xe0   :  { %v73_v14 = vpop.f32.mrb[2].mxu0 }
  0xe1   :  { %95 = vst [vmem:[%s168_s3] sm:$0xff] %v93_v12  ;;  %v94_v15 = vadd.f32 %v102_v10, %v73_v14  ;;  %v113_v16 = vpop.f32.mrb[3].mxu0 }
  0xe3   :  { %96 = vst [vmem:[%s168_s3 + $0x8] sm:$0xff] %v94_v15 }

// kernel: encoder_ama_forward.17
= control target key start
LH: loop header
LB: loop body
LE: loop exit
PB: predicated region body
PF: predicated region fallthrough
CT: control target
= control target key end

     0   :  { %vm28_vm0 = vcmask 261120   ;;  %v163_v0 = vmov 0.0   ;;  %vm164_vm1 = vmmov 0   ;;  %vm48_vm2 = vcmask 523264   ;;  %s257_s1 = inlined_call_operand.vmem [shape: f32[64,32], index: 1, kind: input, shape index: {}]   ;;  %s258_s0 = inlined_call_operand.vmem [shape: f32[16,64], index: 0, kind: input, shape index: {}]   ;;  %s259_s2 = inlined_call_operand.vmem [shape: f32[1,32], index: 2, kind: input, shape index: {}]   ;;  %s260_s3 = inlined_call_operand.vmem [shape: f32[16,32], index: 3, kind: input, shape index: {}]   ;;  %s261_s4 = inlined_call_operand.vmem [shape: f32[1,32], index: 4, kind: input, shape index: {}]   ;;  %s262_s5 = inlined_call_operand.vmem [shape: f32[1,32], index: 5, kind: input, shape index: {}]   ;;  %s263_s6 = inlined_call_operand.vmem [shape: f32[16,32], index: 6, kind: output, shape index: {}]  }
   0x1   :  { %149 = vmatprep.subr.bf16.mxu0 %v163_v0  ;;  %v36_v1 = vld [vmem:[%s257_s1] sm:$0xff]  ;;  %v37_v2 = vld [vmem:[%s257_s1 + $0x8] sm:$0xff]  ;;  %v38_v3 = vld [vmem:[%s257_s1 + $0x10] sm:$0xff]  ;;  %157 = vmatprep.mubr.msk.bf16.mxu0 %vm164_vm1, %v163_v0  ;;  %29 = vst.msk [vmem:[#allocation2] sm:$0xff] %vm28_vm0, %v163_v0 }
   0x2   :  { %30 = vst.msk [vmem:[#allocation2 + $0x8] sm:$0xff] %vm28_vm0, %v163_v0  ;;  %v44_v4 = vpack.c.bf16 %v37_v2, %v36_v1  ;;  %v39_v5 = vld [vmem:[%s257_s1 + $0x18] sm:$0xff]  ;;  %v40_v7 = vld [vmem:[%s257_s1 + $0x20] sm:$0xff]  ;;  %v41_v8 = vld [vmem:[%s257_s1 + $0x28] sm:$0xff] }
   0x3   :  { %v45_v6 = vpack.c.bf16 %v39_v5, %v38_v3  ;;  %v46_v9 = vpack.c.bf16 %v41_v8, %v40_v7  ;;  %v42_v10 = vld [vmem:[%s257_s1 + $0x30] sm:$0xff]  ;;  %v43_v11 = vld [vmem:[%s257_s1 + $0x38] sm:$0xff]  ;;  %v33_v13 = vld [vmem:[%s258_s0] sm:$0xff] }
   0x4   :  { %150 = vmatpush3.bf16.msra.mxu0 %v44_v4  ;;  %v47_v12 = vpack.c.bf16 %v43_v11, %v42_v10  ;;  %v34_v14 = vld [vmem:[%s258_s0 + $0x8] sm:$0xff]  ;;  %v141_v24 = vld [vmem:[%s259_s2] ss:$0 sm:$0xff] }
   0x5   :  { %151 = vmatprep.subr.bf16.mxu0 %v163_v0  ;;  %v35_v15 = vpack.c.bf16 %v34_v14, %v33_v13  ;;  %v112_v26 = vld [vmem:[%s260_s3] sm:$0xff]  ;;  %v113_v28 = vld [vmem:[%s260_s3 + $0x8] sm:$0xff] }
   0x6   :  { %v142_v29 = vld [vmem:[%s261_s4] ss:$0 sm:$0xff] }
   0x7   :  { %v143_v33 = vld [vmem:[%s262_s5] ss:$0 sm:$0xff] }
   0x8   :  { %152 = vmatpush3.bf16.msra.mxu0 %v45_v6  ;;  %v31_v16 = vld [vmem:[#allocation2] sm:$0xff] }
   0x9   :  { %153 = vmatprep.subr.bf16.mxu0 %v163_v0  ;;  %v32_v18 = vld [vmem:[#allocation2 + $0x8] sm:$0xff] }
   0xc   :  { %154 = vmatpush3.bf16.msra.mxu0 %v46_v9 }
   0xd   :  { %155 = vmatprep.subr.bf16.mxu0 %v163_v0 }
  0x10   :  { %156 = vmatpush3.bf16.msra.mxu0 %v47_v12 }
  0x13   :  { %158 = vmatmul.mubr.msk.bf16.vlgmr.msra.gmra.mrb[0].mxu0 %vm48_vm2, %v35_v15 }
  0xe6   :  { %v86_v17 = vpop.f32.mrb[0].mxu0 }
  0xe7   :  { %v93_v19 = vadd.f32 %v86_v17, %v31_v16  ;;  %v159_v20 = vpop.f32.mrb[1].mxu0 }
  0xe8   :  { %v89_v21 = vpop.f32.mrb[2].mxu0 }
  0xe9   :  { %96 = vst.msk [vmem:[#allocation2] sm:$0xff] %vm28_vm0, %v93_v19  ;;  %v94_v22 = vadd.f32 %v89_v21, %v32_v18  ;;  %v160_v23 = vpop.f32.mrb[3].mxu0 }
  0xeb   :  { %97 = vst.msk [vmem:[#allocation2 + $0x8] sm:$0xff] %vm28_vm0, %v94_v22 }
  0xf0   :  { %v101_v25 = vld [vmem:[#allocation2] sm:$0xff] }
  0xf1   :  { %v110_v27 = vadd.f32 %v141_v24, %v101_v25 }
  0xf2   :  { %v102_v30 = vld [vmem:[#allocation2 + $0x8] sm:$0xff] }
  0xf3   :  { %v114_v31 = vadd.f32 %v112_v26, %v110_v27  ;;  %v111_v32 = vadd.f32 %v141_v24, %v102_v30 }
  0xf5   :  { %v123_v34 = vmul.f32 %v142_v29, %v114_v31  ;;  %v115_v35 = vadd.f32 %v113_v28, %v111_v32 }
  0xf7   :  { %v132_v36 = vadd.f32 %v143_v33, %v123_v34  ;;  %v124_v37 = vmul.f32 %v142_v29, %v115_v35 }
  0xf9   :  { %134 = vst.msk [vmem:[%s263_s6] sm:$0xff] %vm28_vm0, %v132_v36  ;;  %v133_v38 = vadd.f32 %v143_v33, %v124_v37 }
  0xfb   :  { %135 = vst.msk [vmem:[%s263_s6 + $0x8] sm:$0xff] %vm28_vm0, %v133_v38 }

// kernel: encoder_ama_forward.16
= control target key start
LH: loop header
LB: loop body
LE: loop exit
PB: predicated region body
PF: predicated region fallthrough
CT: control target
= control target key end

     0   :  { %s1058_s27 = smov 0   ;;  %s1179_s0 = inlined_call_operand.vmem [shape: f32[2,8,128], index: 0, kind: input, shape index: {}]   ;;  %s1180_s1 = inlined_call_operand.vmem [shape: f32[4,64], index: 1, kind: input, shape index: {}]   ;;  %s1181_s2 = inlined_call_operand.vmem [shape: f32[1,64], index: 2, kind: input, shape index: {}]   ;;  %s1182_s3 = inlined_call_operand.vmem [shape: f32[64,10], index: 3, kind: input, shape index: {}]   ;;  %s1183_s4 = inlined_call_operand.vmem [shape: f32[2,64], index: 4, kind: input, shape index: {}]   ;;  %s1184_s5 = inlined_call_operand.vmem [shape: f32[1,64], index: 5, kind: input, shape index: {}]   ;;  %s1185_s6 = inlined_call_operand.vmem [shape: f32[4,64], index: 6, kind: input, shape index: {}]   ;;  %s1186_s7 = inlined_call_operand.vmem [shape: f32[1,64], index: 7, kind: input, shape index: {}]   ;;  %s1187_s8 = inlined_call_operand.vmem [shape: f32[2,8,64], index: 8, kind: output, shape index: {}]  }
   0x1 LB: > { %s787_s28 = sadd.s32 4294967295, %s979_s27   ;;  %p791_p0 = scmp.ge.s32.totalorder %s979_s27, 1  ;;  %s979_s27 = sphi %s1058_s27, %s18_s27  }
   0x2   : > { %p261_p1 = scmp.lt.s32.totalorder %s979_s27, 3 }
   0x4   : > { %p262_p2 = pnand %p791_p0, %p261_p1 }
   0x5   : > { %v355_v0 = vld [vmem:[%s1182_s3] sm:$0xff] (!%p262_p2)  ;;  %v356_v1 = vld [vmem:[%s1182_s3 + $0x8] sm:$0xff] (!%p262_p2)  ;;  %v357_v2 = vld [vmem:[%s1182_s3 + $0x10] sm:$0xff] (!%p262_p2)  ;;  %v309_v3 = vlaneseq (!%p262_p2)  ;;  %v1001_v4 = vmov (!%p262_p2), 0.0|0.0   ;;  %vm1002_vm0 = vmmov (!%p262_p2), 0   ;;  %v1003_v7 = vmov (!%p262_p2), 0.0  }
   0x6   : > { %265 = sbr.rel (%p262_p2) target bundleno = 690 (0x2b2), region = 52  ;;  %852 = vmatprep.subr.bf16.mxu0 (!%p262_p2), %v1001_v4  ;;  %v853_v5 = vpack.c.bf16 (!%p262_p2), %v356_v1, %v355_v0  ;;  %v358_v6 = vld [vmem:[%s1182_s3 + $0x18] sm:$0xff] (!%p262_p2)  ;;  %844 = vmatprep.mubr.msk.f32.mxu0 (!%p262_p2), %vm1002_vm0, %v1003_v7  ;;  %p293_p3 = scmp.lt.s32.totalorder (!%p262_p2), %s787_s28, 1  ;;  %v1004_v8 = vmov (!%p262_p2), 4   ;;  %v1005_v11 = vmov (!%p262_p2), 2   ;;  %v359_v12 = vld [vmem:[%s1182_s3 + $0x20] sm:$0xff] (!%p262_p2) }
   0x7   : > { %847 = vmatprep.subr.mxu1 (!%p262_p2), %v1003_v7  ;;  %926 = vset.pattern.permute.xlu1 (!%p262_p2), %v1004_v8  ;;  %v856_v9 = vpack.c.bf16 (!%p262_p2), %v358_v6, %v357_v2  ;;  %v1079_v10 = vshrl.u32 (!%p262_p2), %v309_v3, 7  ;;  %v360_v13 = vld [vmem:[%s1182_s3 + $0x28] sm:$0xff] (!%p262_p2)  ;;  %v361_v14 = vld [vmem:[%s1182_s3 + $0x30] sm:$0xff] (!%p262_p2)  ;;  %v795_v17 = vld [vmem:[%s1180_s1] ss:$0 sm:$0xff] (!%p262_p2)  ;;  %vm363_vm4 = vcmask (!%p262_p2), 523264  }
   0x8   : > { %854 = vmatpush3.bf16.msra.mxu0 (!%p262_p2), %v853_v5  ;;  %924 = vset.pattern.permute.xlu0 (!%p262_p2), %v1005_v11  ;;  %v859_v15 = vpack.c.bf16 (!%p262_p2), %v360_v13, %v359_v12  ;;  %v362_v18 = vld [vmem:[%s1182_s3 + $0x38] sm:$0xff] (!%p262_p2)  ;;  %v796_v21 = vld [vmem:[%s1180_s1 + $0x1] ss:$0 sm:$0xff] (!%p262_p2)  ;;  %v794_v23 = vld [vmem:[%s1181_s2] ss:$0 sm:$0xff] (!%p262_p2)  ;;  %vm449_vm5 = vcmask (!%p262_p2), 1041408  }
   0x9   : > { %855 = vmatprep.subr.bf16.mxu0 (!%p262_p2), %v1001_v4  ;;  %849 = vmatprep.mubr.msk.f32.mxu1 (!%p262_p2), %vm1002_vm0, %v1003_v7  ;;  %vm311_vm1 = vcmp.ge.s32.totalorder (!%p262_p2), %v1079_v10, 3  ;;  %vm321_vm2 = vcmp.ge.s32.totalorder (!%p262_p2), %v1079_v10, 2  ;;  %vm331_vm3 = vcmp.ge.s32.totalorder (!%p262_p2), %v1079_v10, 1  ;;  %v797_v27 = vld [vmem:[%s1180_s1 + $0x2] ss:$0 sm:$0xff] (!%p262_p2)  ;;  %v862_v28 = vpack.c.bf16 (!%p262_p2), %v362_v18, %v361_v14  ;;  %s1156_s25 = smov (!%p262_p2), 0  }
   0xa   : > { %v798_v31 = vld [vmem:[%s1180_s1 + $0x3] ss:$0 sm:$0xff] (!%p262_p2)  ;;  %v437_v43 = vld [vmem:[%s1183_s4] sm:$0x3] (!%p262_p2)  ;;  %vm445_vm6 = vcmask (!%p262_p2), 15360   ;;  %v1006_v46 = vmov (!%p262_p2), 5  }
   0xb   : > { %848 = vmatpush3.msk.msra.mxu1 (!%p262_p2), %vm449_vm5, %v437_v43  ;;  %v1007_v47 = vmov (!%p262_p2), 3   ;;  %v1008_v48 = vmov (!%p262_p2), 6   ;;  %v1009_v49 = vmov (!%p262_p2), 7   ;;  %v1010_v50 = vmov (!%p262_p2), 8   ;;  %v801_v60 = vld [vmem:[%s1184_s5] ss:$0 sm:$0xff] (!%p262_p2) }
   0xc   : > { %857 = vmatpush3.bf16.msra.mxu0 (!%p262_p2), %v856_v9  ;;  %v1011_v51 = vmov (!%p262_p2), 9   ;;  %v542_v7 = vsub.s32 (!%p262_p2), 0, %v1079_v10  ;;  %v538_v9 = vld [vmem:[%s1185_s6] sm:$0xf] (!%p262_p2)  ;;  %v561_v11 = vsub.s32 (!%p262_p2), 1, %v1079_v10  ;;  %v580_v12 = vsub.s32 (!%p262_p2), 2, %v1079_v10 }
   0xd   : > { %s1189_s28 = smov (!%p293_p3, %s787_s28), 1  ;;  %858 = vmatprep.subr.bf16.mxu0 %v1001_v4  ;;  %v599_v13 = vsub.s32 3, %v1079_v10  ;;  %v985_v43 = vmov 0.0  }
   0xe   : > { %s792_s19 = sshll.u32 %s1189_s28, 3  ;;  %v543_v18 = vrot.slane %v538_v9, %v542_v7 }
   0xf   : > { %s296_s24 = scalar_lea.vmem %s1179_s0, %s792_s19  ;;  %s1097_s29 = scalar_lea.vmem %s1187_s8, %s792_s19 }
  0x10   : > { %v1099_v16 = vld [vmem:[%s296_s24] sm:$0xff]  ;;  %860 = vmatpush3.bf16.msra.mxu0 %v859_v15 }
  0x11   : > { %v312_v19 = vrot.slane %v1099_v16, 5  ;;  %v322_v20 = vrot.slane %v1099_v16, 6  ;;  %v332_v22 = vrot.slane %v1099_v16, 7  ;;  %861 = vmatprep.subr.bf16.mxu0 %v1001_v4  ;;  %v346_v35 = vmul.f32 %v798_v31, %v1099_v16 }
  0x13   : > { %v313_v24 = vsel %vm311_vm1, %v312_v19, 0.0  ;;  %v323_v25 = vsel %vm321_vm2, %v322_v20, 0.0  ;;  %v333_v26 = vsel %vm331_vm3, %v332_v22, 0.0  ;;  %v562_v20 = vrot.slane %v538_v9, %v561_v11 }
  0x14   : > { %v319_v29 = vmul.f32 %v795_v17, %v313_v24  ;;  %v329_v30 = vmul.f32 %v796_v21, %v323_v25  ;;  %v339_v33 = vmul.f32 %v797_v27, %v333_v26  ;;  %863 = vmatpush3.bf16.msra.mxu0 %v862_v28  ;;  %v581_v21 = vrot.slane %v538_v9, %v580_v12 }
  0x16   : > { %v320_v32 = vadd.f32 %v794_v23, %v319_v29  ;;  %v600_v23 = vrot.slane %v538_v9, %v599_v13 }
  0x18   : > { %v330_v34 = vadd.f32 %v329_v30, %v320_v32 }
  0x1a   : > { %v340_v36 = vadd.f32 %v339_v33, %v330_v34 }
  0x1c   : > { %v347_v37 = vadd.f32 %v346_v35, %v340_v36 }
  0x1e   : > { %v799_v38 = vmul.f32 -1.442695, %v347_v37 }
  0x20   : > { %933 = vpow2.f32 %v799_v38 }
  0x2a   : > { %v934_v39 = vpop.eup %933 }
  0x2b   : > { %v351_v40 = vadd.f32 1.0, %v934_v39 }
  0x2d   : > { %935 = vrcp.f32 %v351_v40 }
  0x37   : > { %v936_v41 = vpop.eup %935 }
  0x38   : > { %v1126_v42 = vmul.f32 %v936_v41, %v347_v37  ;;  %v981_v41 = vmov 0.0  }
  0x3a   : > { %845 = vmatmul.mubr.msk.f32.vlgmr.msra.gmra.mrb[0].mxu0 %vm363_vm4, %v1126_v42 }
 0x10d   : > { %v433_v44 = vpop.f32.mrb[0].mxu0 }
 0x10e   : > { %587 = vperm.xlu1 %926, %v433_v44   ;;  %549 = vperm.xlu0 %924, %v433_v44   ;;  %v846_v45 = vpop.f32.mrb[1].mxu0 }
 0x10f   : > { %850 = vmatmul.mubr.msk.f32.vlgmr.msra.gmra.mrb[0].mxu1 %vm445_vm6, %v433_v44  ;;  %v993_v45 = vmov 0.0  }
 0x112   : > { %927 = vset.pattern.permute.xlu1 %v1006_v46  ;;  %925 = vset.pattern.permute.xlu0 %v1007_v47 }
 0x113   : > { %606 = vperm.xlu1 %927, %v433_v44   ;;  %568 = vperm.xlu0 %925, %v433_v44  }
 0x117   : > { %928 = vset.pattern.permute.xlu1 %v1008_v48  ;;  %929 = vset.pattern.permute.xlu0 %v1009_v49 }
 0x118   : > { %555 = vperm.xlu1 %928, %v433_v44   ;;  %574 = vperm.xlu0 %929, %v433_v44  }
 0x11c   : > { %930 = vset.pattern.permute.xlu1 %v1010_v50  ;;  %932 = vset.pattern.permute.xlu0 %v1011_v51 }
 0x11d   : > { %593 = vperm.xlu1 %930, %v433_v44  }
 0x121   : > { %931 = vset.pattern.permute.xlu1 %v1011_v51 }
 0x122   : > { %612 = vperm.xlu1 %931, %v433_v44   ;;  %v989_v44 = vmov 0.0  }
 0x18d   : > { %v588_v52 = vpop.permute.xlu1 %587  ;;  %v550_v53 = vpop.permute.xlu0 %549 }
 0x192   : > { %v607_v54 = vpop.permute.xlu1 %606  ;;  %v569_v55 = vpop.permute.xlu0 %568 }
 0x197   : > { %v556_v56 = vpop.permute.xlu1 %555  ;;  %v575_v57 = vpop.permute.xlu0 %574 }
 0x198   : > { %558 = vst.msk [vmem:[#allocation4] sm:$0xff] %vm363_vm4, %v556_v56  ;;  %577 = vst.msk [vmem:[#allocation4 + $0x8] sm:$0xff] %vm363_vm4, %v575_v57 }
 0x19c   : > { %v594_v58 = vpop.permute.xlu1 %593 }
 0x19d   : > { %596 = vst.msk [vmem:[#allocation4 + $0x10] sm:$0xff] %vm363_vm4, %v594_v58 }
 0x1a1   : > { %v613_v59 = vpop.permute.xlu1 %612 }
 0x1a2   : > { %615 = vst.msk [vmem:[#allocation4 + $0x18] sm:$0xff] %vm363_vm4, %v613_v59 }
 0x1e2   : > { %v519_v61 = vpop.f32.mrb[0].mxu1 }
 0x1e3   : > { %v520_v62 = vadd.f32 %v801_v60, %v519_v61  ;;  %v851_v63 = vpop.f32.mrb[1].mxu1 }
 0x1e5   : > { %v524_v0 = vand.u32 2147483647, %v520_v62  ;;  %v523_v19 = vmax.f32 %v520_v62, 0.0 }
 0x1e7   : > { %v525_v1 = vsub.f32 0.0, %v524_v0 }
 0x1e9   : > { %v526_v2 = vmul.f32 1.442695, %v525_v1 }
 0x1eb   : > { %937 = vpow2.f32 %v526_v2 }
 0x1f5   : > { %v938_v3 = vpop.eup %937 }
 0x1f6   : > { %v528_v4 = vadd.f32 1.0, %v938_v3  ;;  %v531_v5 = vmul.f32 -0.5, %v938_v3  ;;  %v534_v8 = vand.u32 2147483647, %v938_v3 }
 0x1f8   : > { %939 = vlog2.f32 %v528_v4  ;;  %v532_v6 = vadd.f32 1.0, %v531_v5  ;;  %vm535_vm7 = vcmp.lt.f32.partialorder %v534_v8, 0.0004427343 }
 0x1fa   : > { %v533_v17 = vmul.f32 %v938_v3, %v532_v6 }
 0x202   : > { %v940_v14 = vpop.eup %939 }
 0x203   : > { %v530_v15 = vmul.f32 0.6931472, %v940_v14 }
 0x205   : > { %v536_v22 = vsel %vm535_vm7, %v533_v17, %v530_v15 }
 0x206   : > { %v537_v24 = vadd.f32 %v536_v22, %v523_v19 }
 0x208   : > { %v539_v25 = vmul.f32 %v537_v24, %v1126_v42  ;;  %v544_v26 = vmul.f32 %v543_v18, %v537_v24  ;;  %v563_v27 = vmul.f32 %v562_v20, %v537_v24  ;;  %v582_v28 = vmul.f32 %v581_v21, %v537_v24 }
 0x209   : > { %v601_v29 = vmul.f32 %v600_v23, %v537_v24 }
 0x20a   : > { %v545_v30 = vmul.f32 1.442695, %v544_v26  ;;  %v552_v31 = vmul.f32 %v550_v53, %v539_v25  ;;  %v564_v10 = vmul.f32 1.442695, %v563_v27  ;;  %v571_v32 = vmul.f32 %v569_v55, %v539_v25 }
 0x20b   : > { %v583_v33 = vmul.f32 1.442695, %v582_v28  ;;  %v590_v34 = vmul.f32 %v588_v52, %v539_v25  ;;  %v602_v35 = vmul.f32 1.442695, %v601_v29  ;;  %v609_v36 = vmul.f32 %v607_v54, %v539_v25 }
 0x20c   : > { %941 = vpow2.f32 %v545_v30  ;;  %553 = vst.msk [vmem:[#allocation3] sm:$0xff] %vm363_vm4, %v552_v31  ;;  %572 = vst.msk [vmem:[#allocation3 + $0x8] sm:$0xff] %vm363_vm4, %v571_v32 }
 0x20d   : > { %943 = vpow2.f32 %v564_v10  ;;  %591 = vst.msk [vmem:[#allocation3 + $0x10] sm:$0xff] %vm363_vm4, %v590_v34  ;;  %610 = vst.msk [vmem:[#allocation3 + $0x18] sm:$0xff] %vm363_vm4, %v609_v36 }
 0x20e   : > { %945 = vpow2.f32 %v583_v33 }
 0x20f   : > { %947 = vpow2.f32 %v602_v35 }
 0x216   : > { %v942_v37 = vpop.eup %941 }
 0x217   : > { %v944_v38 = vpop.eup %943  ;;  %547 = vst.msk [vmem:[#allocation2] sm:$0xff] %vm363_vm4, %v942_v37 }
 0x218   : > { %v946_v39 = vpop.eup %945  ;;  %566 = vst.msk [vmem:[#allocation2 + $0x8] sm:$0xff] %vm363_vm4, %v944_v38 }
 0x219   : > { %v948_v40 = vpop.eup %947  ;;  %585 = vst.msk [vmem:[#allocation2 + $0x10] sm:$0xff] %vm363_vm4, %v946_v39 }
 0x21a   : > { %604 = vst.msk [vmem:[#allocation2 + $0x18] sm:$0xff] %vm363_vm4, %v948_v40 }
 0x21b LB: >> { %s626_s26 = scalar_lea.vmem [#allocation2], %s999_s25  ;;  %s629_s28 = scalar_lea.vmem [#allocation3], %s999_s25  ;;  %vm670_vm8 = vcmask 516096   ;;  %s999_s25 = sphi %s1156_s25, %s621_s25   ;;  %v995_v45 = vphi %v993_v45, %v631_v45   ;;  %v991_v44 = vphi %v989_v44, %v642_v44   ;;  %v987_v43 = vphi %v985_v43, %v653_v43   ;;  %v983_v41 = vphi %v981_v41, %v664_v41  }
 0x21c   : >> { %v630_v47 = vld [vmem:[%s629_s28] sm:$0x1]  ;;  %v805_v50 = vld [vmem:[%s629_s28 + $0x8] sm:$0x1]  ;;  %s632_s30 = scalar_lea.vmem [#allocation4], %s999_s25  ;;  %s669_s9 = scalar_lea.vmem [#allocation5], %s999_s25 }
 0x21d   : >> { %v633_v51 = vld [vmem:[%s632_s30] sm:$0x1]  ;;  %v808_v54 = vld [vmem:[%s629_s28 + $0x10] sm:$0x1]  ;;  %v806_v55 = vld [vmem:[%s632_s30 + $0x8] sm:$0x1] }
 0x21e   : >> { %v811_v58 = vld [vmem:[%s629_s28 + $0x18] sm:$0x1]  ;;  %v809_v59 = vld [vmem:[%s632_s30 + $0x10] sm:$0x1]  ;;  %s621_s25 = sadd.s32 1, %s999_s25  }
 0x21f   : >> { %v812_v62 = vld [vmem:[%s632_s30 + $0x18] sm:$0x1]  ;;  %p618_p4 = scmp.ge.s32.totalorder %s621_s25, 8  }
 0x220   : > { %v814_v5 = vmul.f32 (%p618_p4), -1.442695, %v1099_v16  ;;  %s1012_s10 = smov (%p618_p4), 64   ;;  %v813_v11 = vld [vmem:[%s1186_s7] ss:$0 sm:$0xff] (%p618_p4) }
 0x221   : >> { %v627_v46 = vld [vmem:[%s626_s26] sm:$0x1]  ;;  %v804_v49 = vld [vmem:[%s626_s26 + $0x8] sm:$0x1]  ;;  %v807_v53 = vld [vmem:[%s626_s26 + $0x10] sm:$0x1]  ;;  %v680_v12 = vmul.f32 (%p618_p4), %v813_v11, %v1126_v42 }
 0x222   : >> { %v628_v48 = vmul.f32 %v995_v45, %v627_v46  ;;  %v639_v52 = vmul.f32 %v991_v44, %v804_v49  ;;  %v650_v56 = vmul.f32 %v987_v43, %v807_v53  ;;  %v810_v57 = vld [vmem:[%s626_s26 + $0x18] sm:$0x1]  ;;  %949 = vpow2.f32 (%p618_p4), %v814_v5 }
 0x223   : >> { %v661_v60 = vmul.f32 %v983_v41, %v810_v57 }
 0x224   : >> { %v631_v45 = vadd.f32 %v630_v47, %v628_v48   ;;  %v642_v44 = vadd.f32 %v805_v50, %v639_v52   ;;  %v653_v43 = vadd.f32 %v808_v54, %v650_v56  }
 0x225   : >> { %v664_v41 = vadd.f32 %v811_v58, %v661_v60  }
 0x226   : >> { %v634_v61 = vmul.f32 %v633_v51, %v631_v45  ;;  %v645_v63 = vmul.f32 %v806_v55, %v642_v44  ;;  %v656_v0 = vmul.f32 %v809_v59, %v653_v43 }
 0x227   : >> { %v667_v2 = vmul.f32 %v812_v62, %v664_v41 }
 0x228   : >> { %v646_v1 = vadd.f32 %v645_v63, %v634_v61  ;;  %620 = sbr.rel (!%p618_p4) target bundleno = 539 (0x21b), region = 102 }
 0x22a   : >> { %v657_v3 = vadd.f32 %v656_v0, %v646_v1 }
 0x22c   : >> { %v668_v4 = vadd.f32 %v667_v2, %v657_v3  ;;  %v950_v6 = vpop.eup (%p618_p4), %949 }
 0x22d   : > { %v685_v7 = vadd.f32 (%p618_p4), 1.0, %v950_v6 }
 0x22e   : >> { %671 = vst.msk [vmem:[%s669_s9] sm:$0x1] %vm670_vm8, %v668_v4 }
 0x22f   : > { %951 = vrcp.f32 %v685_v7 }
 0x235   : > { %v672_v13 = vld [vmem:[#allocation5] sm:$0xff] }
 0x236   : > { %v681_v14 = vadd.f32 %v680_v12, %v672_v13 }
 0x239   : > { %v952_v8 = vpop.eup %951 }
 0x23a   : > { %v688_v9 = vmul.f32 %v952_v8, %v1099_v16 }
 0x23c   : > { %690 = vrot.lane.b32.xlu0 %v688_v9, %s1012_s10 }
 0x2ae   : > { %v691_v15 = vpop.permute.xlu0 %690 }
 0x2af   : > { %v693_v17 = vmul.f32 %v691_v15, %v681_v14 }
 0x2b1   : > { %694 = vst.msk [vmem:[%s1097_s29] sm:$0xff] %vm363_vm4, %v693_v17 }
 0x2b2 PF: > { %s18_s27 = sadd.s32 1, %s979_s27  }
 0x2b3   : > { %p15_p5 = scmp.ge.s32.totalorder %s18_s27, 4  }
 0x2b5   :  { %17 = sbr.rel (!%p15_p5) target bundleno = 1 (0x1), region = 113 }

// kernel: encoder_ama_forward.18
= control target key start
LH: loop header
LB: loop body
LE: loop exit
PB: predicated region body
PF: predicated region fallthrough
CT: control target
= control target key end

     0   :  { %vm19_vm0 = vcmask 785408   ;;  %v118_v0 = vmov 0.0   ;;  %vm119_vm1 = vmmov 0   ;;  %vm33_vm2 = vcmask 261120   ;;  %s173_s1 = inlined_call_operand.vmem [shape: f32[32,96], index: 1, kind: input, shape index: {}]   ;;  %s174_s0 = inlined_call_operand.vmem [shape: f32[16,32], index: 0, kind: input, shape index: {}]   ;;  %s175_s2 = inlined_call_operand.vmem [shape: f32[1,96], index: 2, kind: input, shape index: {}]   ;;  %s176_s3 = inlined_call_operand.vmem [shape: f32[16,96], index: 3, kind: output, shape index: {}]  }
   0x1   :  { %108 = vmatprep.subr.bf16.mxu0 %v118_v0  ;;  %v27_v1 = vld [vmem:[%s173_s1] sm:$0xff]  ;;  %v28_v2 = vld [vmem:[%s173_s1 + $0x8] sm:$0xff]  ;;  %v29_v3 = vld [vmem:[%s173_s1 + $0x10] sm:$0xff]  ;;  %112 = vmatprep.mubr.msk.bf16.mxu0 %vm119_vm1, %v118_v0  ;;  %20 = vst.msk [vmem:[#allocation2] sm:$0xff] %vm19_vm0, %v118_v0 }
   0x2   :  { %21 = vst.msk [vmem:[#allocation2 + $0x8] sm:$0xff] %vm19_vm0, %v118_v0  ;;  %v31_v4 = vpack.c.bf16 %v28_v2, %v27_v1  ;;  %v30_v5 = vld [vmem:[%s173_s1 + $0x18] sm:$0xff]  ;;  %v24_v7 = vld [vmem:[%s174_s0] sm:$0xff]  ;;  %v25_v8 = vld [vmem:[%s174_s0 + $0x8] sm:$0xff] }
   0x3   :  { %v32_v6 = vpack.c.bf16 %v30_v5, %v29_v3  ;;  %v26_v9 = vpack.c.bf16 %v25_v8, %v24_v7  ;;  %v104_v18 = vld [vmem:[%s175_s2] ss:$0 sm:$0xff] }
   0x4   :  { %109 = vmatpush3.bf16.msra.mxu0 %v31_v4 }
   0x5   :  { %110 = vmatprep.subr.bf16.mxu0 %v118_v0 }
   0x8   :  { %111 = vmatpush3.bf16.msra.mxu0 %v32_v6  ;;  %v22_v10 = vld [vmem:[#allocation2] sm:$0xff] }
   0x9   :  { %v23_v12 = vld [vmem:[#allocation2 + $0x8] sm:$0xff] }
   0xb   :  { %113 = vmatmul.mubr.msk.bf16.vlgmr.msra.gmra.mrb[0].mxu0 %vm33_vm2, %v26_v9 }
  0xde   :  { %v71_v11 = vpop.f32.mrb[0].mxu0 }
  0xdf   :  { %v78_v13 = vadd.f32 %v71_v11, %v22_v10  ;;  %v114_v14 = vpop.f32.mrb[1].mxu0 }
  0xe0   :  { %v74_v15 = vpop.f32.mrb[2].mxu0 }
  0xe1   :  { %81 = vst.msk [vmem:[#allocation2] sm:$0xff] %vm19_vm0, %v78_v13  ;;  %v79_v16 = vadd.f32 %v74_v15, %v23_v12  ;;  %v115_v17 = vpop.f32.mrb[3].mxu0 }
  0xe3   :  { %82 = vst.msk [vmem:[#allocation2 + $0x8] sm:$0xff] %vm19_vm0, %v79_v16 }
  0xe8   :  { %v86_v19 = vld [vmem:[#allocation2] sm:$0xff] }
  0xe9   :  { %v95_v20 = vadd.f32 %v104_v18, %v86_v19 }
  0xea   :  { %v87_v21 = vld [vmem:[#allocation2 + $0x8] sm:$0xff] }
  0xeb   :  { %97 = vst.msk [vmem:[%s176_s3] sm:$0xff] %vm19_vm0, %v95_v20  ;;  %v96_v22 = vadd.f32 %v104_v18, %v87_v21 }
  0xed   :  { %98 = vst.msk [vmem:[%s176_s3 + $0x8] sm:$0xff] %vm19_vm0, %v96_v22 }

// kernel: encoder_ama_forward.21
= control target key start
LH: loop header
LB: loop body
LE: loop exit
PB: predicated region body
PF: predicated region fallthrough
CT: control target
= control target key end

     0   :  { %v269_v3 = vmov 0.0   ;;  %vm270_vm0 = vmmov 0   ;;  %s383_s0 = inlined_call_operand.vmem [shape: f32[16,32], index: 0, kind: input, shape index: {}]   ;;  %s384_s1 = inlined_call_operand.vmem [shape: f32[32,64], index: 1, kind: input, shape index: {}]   ;;  %s385_s2 = inlined_call_operand.vmem [shape: f32[1,64], index: 2, kind: input, shape index: {}]   ;;  %s386_s3 = inlined_call_operand.vmem [shape: f32[64,32], index: 3, kind: input, shape index: {}]   ;;  %s387_s4 = inlined_call_operand.vmem [shape: f32[1,32], index: 4, kind: input, shape index: {}]   ;;  %s388_s5 = inlined_call_operand.vmem [shape: f32[1,32], index: 5, kind: input, shape index: {}]   ;;  %s389_s6 = inlined_call_operand.vmem [shape: f32[1,32], index: 6, kind: input, shape index: {}]   ;;  %s390_s7 = inlined_call_operand.hbm [shape: f32[16,32], index: 7, kind: output, shape index: {}]  }
   0x1   :  { %v31_v0 = vld [vmem:[%s384_s1] sm:$0xff]  ;;  %v32_v1 = vld [vmem:[%s384_s1 + $0x8] sm:$0xff]  ;;  %v33_v2 = vld [vmem:[%s384_s1 + $0x10] sm:$0xff]  ;;  %216 = vmatprep.subr.bf16.mxu0 %v269_v3  ;;  %220 = vmatprep.mubr.msk.bf16.mxu0 %vm270_vm0, %v269_v3 }
   0x2   :  { %v35_v4 = vpack.c.bf16 %v32_v1, %v31_v0  ;;  %v34_v5 = vld [vmem:[%s384_s1 + $0x18] sm:$0xff]  ;;  %224 = vmatprep.subr.bf16.mxu1 %v269_v3  ;;  %232 = vmatprep.mubr.msk.bf16.mxu1 %vm270_vm0, %v269_v3 }
   0x3   :  { %12 = vsyncpa [#allocation3], 0  ;;  %v36_v6 = vpack.c.bf16 %v34_v5, %v33_v2  ;;  %v28_v7 = vld [vmem:[%s383_s0] sm:$0xff]  ;;  %v29_v8 = vld [vmem:[%s383_s0 + $0x8] sm:$0xff]  ;;  %vm44_vm1 = vcmask 261120   ;;  %vm119_vm2 = vcmask 523264  }
   0x4   :  { %217 = vmatpush3.bf16.msra.mxu0 %v35_v4  ;;  %v30_v9 = vpack.c.bf16 %v29_v8, %v28_v7  ;;  %v100_v10 = vld [vmem:[%s386_s3] sm:$0xff]  ;;  %v101_v11 = vld [vmem:[%s386_s3 + $0x8] sm:$0xff]  ;;  %v102_v13 = vld [vmem:[%s386_s3 + $0x10] sm:$0xff]  ;;  %s271_s10 = smov [#allocation2]  }
   0x5   :  { %218 = vmatprep.subr.bf16.mxu0 %v269_v3  ;;  %v108_v12 = vpack.c.bf16 %v101_v11, %v100_v10  ;;  %v103_v14 = vld [vmem:[%s386_s3 + $0x18] sm:$0xff]  ;;  %v104_v16 = vld [vmem:[%s386_s3 + $0x20] sm:$0xff]  ;;  %v105_v17 = vld [vmem:[%s386_s3 + $0x28] sm:$0xff]  ;;  %s191_s11 = sshll.u32 %s271_s10, 4  ;;  %s192_s11 = int_to_ptr.vmem [resolvable:$true] %s191_s11 }
   0x6   :  { %v109_v15 = vpack.c.bf16 %v103_v14, %v102_v13  ;;  %v110_v18 = vpack.c.bf16 %v105_v17, %v104_v16  ;;  %v106_v19 = vld [vmem:[%s386_s3 + $0x30] sm:$0xff]  ;;  %v107_v20 = vld [vmem:[%s386_s3 + $0x38] sm:$0xff]  ;;  %v202_v22 = vld [vmem:[%s385_s2] ss:$0 sm:$0xff]  ;;  %p250_p1 = scmp.lt.s32.totalorder %s192_s11, %s192_s11 }
   0x7   :  { %225 = vmatpush3.bf16.msra.mxu1 %v108_v12  ;;  %v111_v21 = vpack.c.bf16 %v107_v20, %v106_v19  ;;  %v204_v40 = vld [vmem:[%s387_s4] ss:$0 sm:$0xff]  ;;  %s245_s4 = scalar_lea.vmem %s192_s11, 256 }
   0x8   :  { %219 = vmatpush3.bf16.msra.mxu0 %v36_v6  ;;  %226 = vmatprep.subr.bf16.mxu1 %v269_v3  ;;  %v206_v44 = vld [vmem:[%s388_s5] ss:$0 sm:$0xff]  ;;  %p246_p0 = scmp.ne.s32.totalorder %s192_s11, %s245_s4  ;;  %p251_p2 = scmp.lt.s32.totalorder %s245_s4, %s245_s4 }
   0x9   :  { %v207_v49 = vld [vmem:[%s389_s6] ss:$0 sm:$0xff] }
   0xa   :  { %p252_p3 = por %p251_p2, %p250_p1 }
   0xb   :  { %221 = vmatmul.mubr.msk.bf16.vlgmr.msra.gmra.mrb[0].mxu0 %vm44_vm1, %v30_v9  ;;  %227 = vmatpush3.bf16.msra.mxu1 %v109_v15 }
   0xc   :  { %228 = vmatprep.subr.bf16.mxu1 %v269_v3  ;;  %p253_p4 = pnand %p252_p3, %p246_p0 }
   0xf   :  { %229 = vmatpush3.bf16.msra.mxu1 %v110_v18 }
  0x10   :  { %230 = vmatprep.subr.bf16.mxu1 %v269_v3 }
  0x13   :  { %231 = vmatpush3.bf16.msra.mxu1 %v111_v21 }
  0xde   :  { %v82_v23 = vpop.f32.mrb[0].mxu0 }
  0xdf   :  { %v83_v24 = vadd.f32 %v202_v22, %v82_v23  ;;  %v222_v25 = vpop.f32.mrb[1].mxu0 }
  0xe0   :  { %v85_v26 = vpop.f32.mrb[2].mxu0 }
  0xe1   :  { %v91_v27 = vmul.f32 0.70710677, %v83_v24  ;;  %v86_v28 = vadd.f32 %v202_v22, %v85_v26  ;;  %v223_v29 = vpop.f32.mrb[3].mxu0  ;;  %v89_v34 = vmul.f32 0.5, %v83_v24 }
  0xe3   :  { %241 = verf.f32 %v91_v27  ;;  %v92_v30 = vmul.f32 0.70710677, %v86_v28  ;;  %v90_v35 = vmul.f32 0.5, %v86_v28 }
  0xe5   :  { %243 = verf.f32 %v92_v30 }
  0xed   :  { %v242_v31 = vpop.eup %241 }
  0xee   :  { %v95_v32 = vadd.f32 1.0, %v242_v31 }
  0xef   :  { %v244_v33 = vpop.eup %243 }
  0xf0   :  { %v96_v36 = vadd.f32 1.0, %v244_v33  ;;  %v97_v37 = vmul.f32 %v95_v32, %v89_v34 }
  0xf2   :  { %v98_v38 = vmul.f32 %v96_v36, %v90_v35 }
  0xf4   :  { %v99_v39 = vpack.c.bf16 %v98_v38, %v97_v37 }
  0xf6   :  { %233 = vmatmul.mubr.msk.bf16.vlgmr.msra.gmra.mrb[0].mxu1 %vm119_vm2, %v99_v39 }
 0x1c9   :  { %v157_v41 = vpop.f32.mrb[0].mxu1 }
 0x1ca   :  { %v158_v42 = vadd.f32 %v204_v40, %v157_v41  ;;  %v234_v43 = vpop.f32.mrb[1].mxu1 }
 0x1cb   :  { %v160_v45 = vpop.f32.mrb[2].mxu1 }
 0x1cc   :  { %v164_v46 = vadd.f32 %v158_v42, %v28_v7  ;;  %v161_v47 = vadd.f32 %v204_v40, %v160_v45  ;;  %v235_v48 = vpop.f32.mrb[3].mxu1 }
 0x1ce   :  { %v173_v50 = vmul.f32 %v206_v44, %v164_v46  ;;  %v165_v51 = vadd.f32 %v161_v47, %v29_v8 }
 0x1d0   :  { %v182_v52 = vadd.f32 %v207_v49, %v173_v50  ;;  %v174_v53 = vmul.f32 %v206_v44, %v165_v51 }
 0x1d2   :  { %184 = vst.msk [vmem:[#allocation2] sm:$0xff] %vm44_vm1, %v182_v52  ;;  %v183_v54 = vadd.f32 %v207_v49, %v174_v53 }
 0x1d4   :  { %185 = vst.msk [vmem:[#allocation2 + $0x8] sm:$0xff] %vm44_vm1, %v183_v54 }
 0x1d5   :  { %256 = shalt.err (!%p253_p4)
}
 0x1d6   :  { %s257_s12 = scalar_lea.hbm %s390_s7, 256 }
 0x1d7   :  { %p258_p5 = scmp.ne.s32.totalorder %s390_s7, %s257_s12  ;;  %p261_p6 = scmp.lt.u32.totalorder %s257_s12, %s390_s7 }
 0x1d9   :  { %p263_p7 = pnand %p261_p6, %p258_p5 }
 0x1db   :  { %266 = shalt.err (!%p263_p7)
}
 0x1dc   :  { %s272_s16 = smov 128   ;;  %s273_s17 = smov 8  }
 0x1dd   :  { %197 = dma.vmem_to_hbm [thread:$0]  %s192_s11, 256, %s390_s7, [#allocation3], %s272_s16, %s272_s16, %s273_s17  }
 0x1de   :  { %267 = dma.done.wait [#allocation3], 256  }
 0x1df   :  { %268 = vsyncadd [#allocation3], 4294967040 }
 0x1e0   :  { %201 = vsyncpa [#allocation3], 1 }

</bundles_post_ra>
